<compile_context>
chip_gen: v5e
topology: v5e:2x2
jax: 0.10.0
libtpu: 0.0.40
codegen_flags: <defaults>
</compile_context>

<pallas_src>
import functools

import numpy as np
import jax
import jax.numpy as jnp
from jax import lax
from jax.experimental import pallas as pl
from jax.experimental.pallas import tpu as pltpu

K = 3                      # 3x3x3 kernel, padding = 1 ("same")
C_MID = 16                 # hidden channels
N_TAPS = K * K * K         # 27 taps
TAP_PAD = 32               # tap axis padded to 32 sublanes for the MXU contraction


def _tap_offsets_and_masks(D, H, W):
    """Static per-tap flat offsets and in-bounds masks for a 'same' 3x3x3 conv.

    For output position q = d*H*W + h*W + w, tap (kd,kh,kw) reads flat index
    q + off with off = (kd-1)*H*W + (kh-1)*W + (kw-1), valid only when the
    shifted (d,h,w) stays inside the volume (zero padding elsewhere).
    """
    S = D * H * W
    d_idx, h_idx, w_idx = np.meshgrid(
        np.arange(D), np.arange(H), np.arange(W), indexing="ij")
    offsets, masks = [], []
    for kd in range(K):
        for kh in range(K):
            for kw in range(K):
                dd, dh, dw = kd - 1, kh - 1, kw - 1
                offsets.append(dd * H * W + dh * W + dw)
                valid = ((d_idx + dd >= 0) & (d_idx + dd < D) &
                         (h_idx + dh >= 0) & (h_idx + dh < H) &
                         (w_idx + dw >= 0) & (w_idx + dw < W))
                masks.append(valid.reshape(S))
    return tuple(offsets), np.stack(masks).astype(np.float32)  # (27,), (27, S)


def _convnet_kernel(x_ref, w1p_ref, b1_ref, wm2_ref, b2_ref, mask_ref,
                    o_ref, xs_ref, *, offsets, nb):
    """Fused conv1 + tanh + conv2 for `nb` batch samples.

    x_ref:    (nb, 1, S)   lane-dense input samples for this grid step
    w1p_ref:  (16, 32)     conv1 weights [cout, tap], tap axis zero-padded 27->32
    b1_ref:   (16, 1)
    wm2_ref:  (27, 16, S)  conv2 weights with the boundary mask folded in
    b2_ref:   (1, 1)
    mask_ref: (27, S)      per-tap validity mask (conv1's shifted-x slab)
    o_ref:    (nb, 1, S)   lane-dense output
    xs_ref:   (32, S)      VMEM scratch: masked shifted-x slab (MXU RHS)
    """
    S = x_ref.shape[-1]

    # Zero the slab once per grid step: rows >= 27 are never written below and stale
    # VMEM could hold NaNs (0 * NaN = NaN even though w1p's pad columns are zero).
    xs_ref[...] = jnp.zeros_like(xs_ref)

    def shifted(v, off):
        # v[..., q] -> v[..., q + off]  (wrap/cross-row junk is masked out)
        if off == 0:
            return v
        return pltpu.roll(v, shift=(-off) % S, axis=1)

    for n in range(nb):                       # samples handled in this grid step
        x = x_ref[n]                          # (1, S)

        # ---- conv1 (Cin=1 -> Cout=16) on the MXU -------------------------------
        # 27 masked rolls of x (VPU/XLU on (1,S)) -> slab, then one (16,32)x(32,S) dot.
        for t, off in enumerate(offsets):
            xs_ref[pl.ds(t, 1), :] = shifted(x, off) * mask_ref[t:t + 1, :]
        acc1 = jnp.dot(w1p_ref[...], xs_ref[...],
                       preferred_element_type=jnp.float32)       # (16, S)
        h = jnp.tanh(acc1 + b1_ref[...])                          # (16, S), tanh on EUP

        # ---- conv2 (Cin=16 -> Cout=1) on the VPU, mask folded into wm2 ---------
        acc2 = jnp.zeros((C_MID, S), jnp.float32)
        for t, off in enumerate(offsets):
            acc2 = acc2 + shifted(h, off) * wm2_ref[t]            # (16,S) * (16,S)
        out_row = jnp.sum(acc2, axis=0, keepdims=True) + b2_ref[...]   # (1, S)
        o_ref[n] = out_row.astype(o_ref.dtype)


def _samples_per_step(batch):
    """Chip-aware batching: whole batch per step on single-TC chips, per-sample on v7x+."""
    try:
        kind = jax.devices()[0].device_kind.lower()
    except Exception:  # pragma: no cover - be safe on exotic backends
        return 1
    if any(tag in kind for tag in ("v2", "v3", "v4", "v5", "v6")):
        return batch           # single TensorCore: amortize rolls / constant reads
    return 1                   # v7x+: "parallel" per-sample steps keep both TCs busy


def convnet_pallas(x_ncdhw, w1, b1, w2, b2):
    """Full ConvNet forward.  Input NCDHW (C=1), weights in PyTorch layout."""
    N, Cin, D, H, W = x_ncdhw.shape
    assert Cin == 1
    S = D * H * W
    # Lane-dense scheme assumes S is a multiple of 128 (512 here); other volumes need
    # padded blocks + masked final store.
    assert S % 128 == 0

    offsets, mask_np = _tap_offsets_and_masks(D, H, W)
    mask = jnp.asarray(mask_np)                                   # (27, S) constant

    x_flat = x_ncdhw.reshape(N, 1, S)                             # lane-dense, no padding
    w1c = w1.reshape(C_MID, N_TAPS)                               # (16, 27) [cout, tap]
    w1p = jnp.pad(w1c, ((0, 0), (0, TAP_PAD - N_TAPS)))           # (16, 32), zero pad taps
    w2c = w2.reshape(C_MID, N_TAPS)                               # (16, 27) [cin, tap]
    wm2 = w2c.T[:, :, None] * mask[:, None, :]                    # (27, 16, S) folded table
    b1c = b1.reshape(C_MID, 1)
    b2c = b2.reshape(1, 1)

    nb = _samples_per_step(N)                                     # 1 (v7x) or N (v2-v6)
    grid = (N // nb,)

    kernel = functools.partial(_convnet_kernel, offsets=offsets, nb=nb)

    out_flat = pl.pallas_call(
        kernel,
        out_shape=jax.ShapeDtypeStruct((N, 1, S), jnp.float32),
        grid_spec=pltpu.PrefetchScalarGridSpec(
            num_scalar_prefetch=0,
            grid=grid,
            in_specs=[
                pl.BlockSpec((nb, 1, S), lambda c: (c, 0, 0)),            # x
                pl.BlockSpec((C_MID, TAP_PAD), lambda c: (0, 0)),         # w1 (padded)
                pl.BlockSpec((C_MID, 1), lambda c: (0, 0)),               # b1
                pl.BlockSpec((N_TAPS, C_MID, S), lambda c: (0, 0, 0)),    # wm2 (mask-folded)
                pl.BlockSpec((1, 1), lambda c: (0, 0)),                   # b2
                pl.BlockSpec((N_TAPS, S), lambda c: (0, 0)),              # mask (conv1 slab)
            ],
            out_specs=pl.BlockSpec((nb, 1, S), lambda c: (c, 0, 0)),
            scratch_shapes=[pltpu.VMEM((TAP_PAD, S), jnp.float32)],       # shifted-x slab
        ),
        compiler_params=pltpu.CompilerParams(
            dimension_semantics=("parallel",)),
    )(x_flat, w1p, b1c, wm2, b2c, mask)

    return out_flat.reshape(N, 1, D, H, W)


convnet_forward = jax.jit(convnet_pallas)


def init_params(key):
    """Deterministic parameter init, PyTorch Conv3d weight/bias shapes."""
    k1, k2, k3, k4 = jax.random.split(key, 4)
    w1 = 0.1 * jax.random.normal(k1, (C_MID, 1, K, K, K), jnp.float32)  # (Cout,Cin,kd,kh,kw)
    b1 = 0.1 * jax.random.normal(k2, (C_MID,), jnp.float32)
    w2 = 0.1 * jax.random.normal(k3, (1, C_MID, K, K, K), jnp.float32)
    b2 = 0.1 * jax.random.normal(k4, (1,), jnp.float32)
    return w1, b1, w2, b2


def _reference(x_ncdhw, w1, b1, w2, b2):
    """Pure-JAX reference (lax conv, full f32 precision) for a correctness check."""
    dn = ("NDHWC", "DHWIO", "NDHWC")
    x = jnp.transpose(x_ncdhw, (0, 2, 3, 4, 1))
    w1_dhwio = jnp.transpose(w1, (2, 3, 4, 1, 0))
    w2_dhwio = jnp.transpose(w2, (2, 3, 4, 1, 0))
    h = lax.conv_general_dilated(x, w1_dhwio, (1, 1, 1), "SAME",
                                 dimension_numbers=dn,
                                 precision=lax.Precision.HIGHEST) + b1
    h = jnp.tanh(h)
    y = lax.conv_general_dilated(h, w2_dhwio, (1, 1, 1), "SAME",
                                 dimension_numbers=dn,
                                 precision=lax.Precision.HIGHEST) + b2
    return jnp.transpose(y, (0, 4, 1, 2, 3))


if __name__ == "__main__":
    key = jax.random.PRNGKey(0)
    kx, kp = jax.random.split(key)

    # Small NCDHW input consistent with Conv3d(in_channels=1, ...).
    N, C, D, H, W = 2, 1, 8, 8, 8
    x = jax.random.normal(kx, (N, C, D, H, W), jnp.float32)
    w1, b1, w2, b2 = init_params(kp)

    out = jax.block_until_ready(convnet_forward(x, w1, b1, w2, b2))
    assert out.shape == (N, 1, D, H, W), out.shape

    ref = _reference(x, w1, b1, w2, b2)
    # 2e-2 tolerance: the MXU f32 contraction may use reduced-precision (bf16-pass)
    # accumulation depending on chip/compiler defaults; genuine layout/mask/tap-order
    # bugs produce O(0.1 - 1) errors and are still caught.
    max_err = float(jnp.max(jnp.abs(out - ref)))
    assert jnp.allclose(out, ref, rtol=2e-2, atol=2e-2), max_err

    print("KERNEL_OK")
</pallas_src>

<mosaic_0001>
module attributes {stable_mosaic.version = 11 : i64} {
  func.func @_convnet_kernel(%arg0: i32, %arg1: memref<1x1x512xf32, #tpu.memory_space<vmem>>, %arg2: memref<16x32xf32, #tpu.memory_space<vmem>>, %arg3: memref<16x1xf32, #tpu.memory_space<vmem>>, %arg4: memref<27x16x512xf32, #tpu.memory_space<vmem>>, %arg5: memref<1x1xf32, #tpu.memory_space<vmem>>, %arg6: memref<27x512xf32, #tpu.memory_space<vmem>>, %arg7: memref<1x1x512xf32, #tpu.memory_space<vmem>>, %arg8: memref<32x512xf32, #tpu.memory_space<vmem>>) attributes {dimension_semantics = [#tpu.dimension_semantics<parallel>], iteration_bounds = array<i64: 2>, scalar_prefetch = 0 : i64, scratch_operands = 1 : i64, tpu.core_type = #tpu.core_type<tc>, window_params = [{transform_indices = @transform_0, window_bounds = array<i64: 1, 1, 512>}, {pipeline_mode = #tpu.pipeline_mode<synchronous>, transform_indices = @transform_1, window_bounds = array<i64: 16, 32>}, {pipeline_mode = #tpu.pipeline_mode<synchronous>, transform_indices = @transform_2, window_bounds = array<i64: 16, 1>}, {pipeline_mode = #tpu.pipeline_mode<synchronous>, transform_indices = @transform_3, window_bounds = array<i64: 27, 16, 512>}, {pipeline_mode = #tpu.pipeline_mode<synchronous>, transform_indices = @transform_4, window_bounds = array<i64: 1, 1>}, {pipeline_mode = #tpu.pipeline_mode<synchronous>, transform_indices = @transform_5, window_bounds = array<i64: 27, 512>}, {transform_indices = @transform_6, window_bounds = array<i64: 1, 1, 512>}]} {
    %cst = arith.constant 0.000000e+00 : f32
    %0 = vector.broadcast %cst : f32 to vector<32x512xf32>
    %c0 = arith.constant 0 : index
    %c0_0 = arith.constant 0 : index
    %1 = vector.load %arg8[%c0, %c0_0] : memref<32x512xf32, #tpu.memory_space<vmem>>, vector<32x512xf32>
    tpu.vector_store %arg8[%c0, %c0_0], %0 {strides = array<i32>} : memref<32x512xf32, #tpu.memory_space<vmem>>, vector<32x512xf32>,
    %c0_1 = arith.constant 0 : index
    %c0_2 = arith.constant 0 : index
    %c0_3 = arith.constant 0 : index
    %2 = vector.load %arg1[%c0_1, %c0_2, %c0_3] : memref<1x1x512xf32, #tpu.memory_space<vmem>>, vector<1x1x512xf32>
    %3 = vector.shape_cast %2 : vector<1x1x512xf32> to vector<1x512xf32>
    %c73_i32 = arith.constant 73 : i32
    %4 = tpu.dynamic_rotate %3 by %c73_i32 dim 1 : vector<1x512xf32>, i32 -> vector<1x512xf32>
    %c0_4 = arith.constant 0 : index
    %c0_5 = arith.constant 0 : index
    %5 = vector.load %arg6[%c0_4, %c0_5] : memref<27x512xf32, #tpu.memory_space<vmem>>, vector<1x512xf32>
    %6 = arith.mulf %4, %5 : vector<1x512xf32>
    %c0_6 = arith.constant 0 : index
    %c0_7 = arith.constant 0 : index
    %7 = vector.load %arg8[%c0_6, %c0_7] : memref<32x512xf32, #tpu.memory_space<vmem>>, vector<1x512xf32>
    tpu.vector_store %arg8[%c0_6, %c0_7], %6 {strides = array<i32>} : memref<32x512xf32, #tpu.memory_space<vmem>>, vector<1x512xf32>,
    %c72_i32 = arith.constant 72 : i32
    %8 = tpu.dynamic_rotate %3 by %c72_i32 dim 1 : vector<1x512xf32>, i32 -> vector<1x512xf32>
    %c1 = arith.constant 1 : index
    %c0_8 = arith.constant 0 : index
    %9 = vector.load %arg6[%c1, %c0_8] : memref<27x512xf32, #tpu.memory_space<vmem>>, vector<1x512xf32>
    %10 = arith.mulf %8, %9 : vector<1x512xf32>
    %c1_9 = arith.constant 1 : index
    %c0_10 = arith.constant 0 : index
    %11 = vector.load %arg8[%c1_9, %c0_10] : memref<32x512xf32, #tpu.memory_space<vmem>>, vector<1x512xf32>
    tpu.vector_store %arg8[%c1_9, %c0_10], %10 {strides = array<i32>} : memref<32x512xf32, #tpu.memory_space<vmem>>, vector<1x512xf32>,
    %c71_i32 = arith.constant 71 : i32
    %12 = tpu.dynamic_rotate %3 by %c71_i32 dim 1 : vector<1x512xf32>, i32 -> vector<1x512xf32>
    %c2 = arith.constant 2 : index
    %c0_11 = arith.constant 0 : index
    %13 = vector.load %arg6[%c2, %c0_11] : memref<27x512xf32, #tpu.memory_space<vmem>>, vector<1x512xf32>
    %14 = arith.mulf %12, %13 : vector<1x512xf32>
    %c2_12 = arith.constant 2 : index
    %c0_13 = arith.constant 0 : index
    %15 = vector.load %arg8[%c2_12, %c0_13] : memref<32x512xf32, #tpu.memory_space<vmem>>, vector<1x512xf32>
    tpu.vector_store %arg8[%c2_12, %c0_13], %14 {strides = array<i32>} : memref<32x512xf32, #tpu.memory_space<vmem>>, vector<1x512xf32>,
    %c65_i32 = arith.constant 65 : i32
    %16 = tpu.dynamic_rotate %3 by %c65_i32 dim 1 : vector<1x512xf32>, i32 -> vector<1x512xf32>
    %c3 = arith.constant 3 : index
    %c0_14 = arith.constant 0 : index
    %17 = vector.load %arg6[%c3, %c0_14] : memref<27x512xf32, #tpu.memory_space<vmem>>, vector<1x512xf32>
    %18 = arith.mulf %16, %17 : vector<1x512xf32>
    %c3_15 = arith.constant 3 : index
    %c0_16 = arith.constant 0 : index
    %19 = vector.load %arg8[%c3_15, %c0_16] : memref<32x512xf32, #tpu.memory_space<vmem>>, vector<1x512xf32>
    tpu.vector_store %arg8[%c3_15, %c0_16], %18 {strides = array<i32>} : memref<32x512xf32, #tpu.memory_space<vmem>>, vector<1x512xf32>,
    %c64_i32 = arith.constant 64 : i32
    %20 = tpu.dynamic_rotate %3 by %c64_i32 dim 1 : vector<1x512xf32>, i32 -> vector<1x512xf32>
    %c4 = arith.constant 4 : index
    %c0_17 = arith.constant 0 : index
    %21 = vector.load %arg6[%c4, %c0_17] : memref<27x512xf32, #tpu.memory_space<vmem>>, vector<1x512xf32>
    %22 = arith.mulf %20, %21 : vector<1x512xf32>
    %c4_18 = arith.constant 4 : index
    %c0_19 = arith.constant 0 : index
    %23 = vector.load %arg8[%c4_18, %c0_19] : memref<32x512xf32, #tpu.memory_space<vmem>>, vector<1x512xf32>
    tpu.vector_store %arg8[%c4_18, %c0_19], %22 {strides = array<i32>} : memref<32x512xf32, #tpu.memory_space<vmem>>, vector<1x512xf32>,
    %c63_i32 = arith.constant 63 : i32
    %24 = tpu.dynamic_rotate %3 by %c63_i32 dim 1 : vector<1x512xf32>, i32 -> vector<1x512xf32>
    %c5 = arith.constant 5 : index
    %c0_20 = arith.constant 0 : index
    %25 = vector.load %arg6[%c5, %c0_20] : memref<27x512xf32, #tpu.memory_space<vmem>>, vector<1x512xf32>
    %26 = arith.mulf %24, %25 : vector<1x512xf32>
    %c5_21 = arith.constant 5 : index
    %c0_22 = arith.constant 0 : index
    %27 = vector.load %arg8[%c5_21, %c0_22] : memref<32x512xf32, #tpu.memory_space<vmem>>, vector<1x512xf32>
    tpu.vector_store %arg8[%c5_21, %c0_22], %26 {strides = array<i32>} : memref<32x512xf32, #tpu.memory_space<vmem>>, vector<1x512xf32>,
    %c57_i32 = arith.constant 57 : i32
    %28 = tpu.dynamic_rotate %3 by %c57_i32 dim 1 : vector<1x512xf32>, i32 -> vector<1x512xf32>
    %c6 = arith.constant 6 : index
    %c0_23 = arith.constant 0 : index
    %29 = vector.load %arg6[%c6, %c0_23] : memref<27x512xf32, #tpu.memory_space<vmem>>, vector<1x512xf32>
    %30 = arith.mulf %28, %29 : vector<1x512xf32>
    %c6_24 = arith.constant 6 : index
    %c0_25 = arith.constant 0 : index
    %31 = vector.load %arg8[%c6_24, %c0_25] : memref<32x512xf32, #tpu.memory_space<vmem>>, vector<1x512xf32>
    tpu.vector_store %arg8[%c6_24, %c0_25], %30 {strides = array<i32>} : memref<32x512xf32, #tpu.memory_space<vmem>>, vector<1x512xf32>,
    %c56_i32 = arith.constant 56 : i32
    %32 = tpu.dynamic_rotate %3 by %c56_i32 dim 1 : vector<1x512xf32>, i32 -> vector<1x512xf32>
    %c7 = arith.constant 7 : index
    %c0_26 = arith.constant 0 : index
    %33 = vector.load %arg6[%c7, %c0_26] : memref<27x512xf32, #tpu.memory_space<vmem>>, vector<1x512xf32>
    %34 = arith.mulf %32, %33 : vector<1x512xf32>
    %c7_27 = arith.constant 7 : index
    %c0_28 = arith.constant 0 : index
    %35 = vector.load %arg8[%c7_27, %c0_28] : memref<32x512xf32, #tpu.memory_space<vmem>>, vector<1x512xf32>
    tpu.vector_store %arg8[%c7_27, %c0_28], %34 {strides = array<i32>} : memref<32x512xf32, #tpu.memory_space<vmem>>, vector<1x512xf32>,
    %c55_i32 = arith.constant 55 : i32
    %36 = tpu.dynamic_rotate %3 by %c55_i32 dim 1 : vector<1x512xf32>, i32 -> vector<1x512xf32>
    %c8 = arith.constant 8 : index
    %c0_29 = arith.constant 0 : index
    %37 = vector.load %arg6[%c8, %c0_29] : memref<27x512xf32, #tpu.memory_space<vmem>>, vector<1x512xf32>
    %38 = arith.mulf %36, %37 : vector<1x512xf32>
    %c8_30 = arith.constant 8 : index
    %c0_31 = arith.constant 0 : index
    %39 = vector.load %arg8[%c8_30, %c0_31] : memref<32x512xf32, #tpu.memory_space<vmem>>, vector<1x512xf32>
    tpu.vector_store %arg8[%c8_30, %c0_31], %38 {strides = array<i32>} : memref<32x512xf32, #tpu.memory_space<vmem>>, vector<1x512xf32>,
    %c9_i32 = arith.constant 9 : i32
    %40 = tpu.dynamic_rotate %3 by %c9_i32 dim 1 : vector<1x512xf32>, i32 -> vector<1x512xf32>
    %c9 = arith.constant 9 : index
    %c0_32 = arith.constant 0 : index
    %41 = vector.load %arg6[%c9, %c0_32] : memref<27x512xf32, #tpu.memory_space<vmem>>, vector<1x512xf32>
    %42 = arith.mulf %40, %41 : vector<1x512xf32>
    %c9_33 = arith.constant 9 : index
    %c0_34 = arith.constant 0 : index
    %43 = vector.load %arg8[%c9_33, %c0_34] : memref<32x512xf32, #tpu.memory_space<vmem>>, vector<1x512xf32>
    tpu.vector_store %arg8[%c9_33, %c0_34], %42 {strides = array<i32>} : memref<32x512xf32, #tpu.memory_space<vmem>>, vector<1x512xf32>,
    %c8_i32 = arith.constant 8 : i32
    %44 = tpu.dynamic_rotate %3 by %c8_i32 dim 1 : vector<1x512xf32>, i32 -> vector<1x512xf32>
    %c10 = arith.constant 10 : index
    %c0_35 = arith.constant 0 : index
    %45 = vector.load %arg6[%c10, %c0_35] : memref<27x512xf32, #tpu.memory_space<vmem>>, vector<1x512xf32>
    %46 = arith.mulf %44, %45 : vector<1x512xf32>
    %c10_36 = arith.constant 10 : index
    %c0_37 = arith.constant 0 : index
    %47 = vector.load %arg8[%c10_36, %c0_37] : memref<32x512xf32, #tpu.memory_space<vmem>>, vector<1x512xf32>
    tpu.vector_store %arg8[%c10_36, %c0_37], %46 {strides = array<i32>} : memref<32x512xf32, #tpu.memory_space<vmem>>, vector<1x512xf32>,
    %c7_i32 = arith.constant 7 : i32
    %48 = tpu.dynamic_rotate %3 by %c7_i32 dim 1 : vector<1x512xf32>, i32 -> vector<1x512xf32>
    %c11 = arith.constant 11 : index
    %c0_38 = arith.constant 0 : index
    %49 = vector.load %arg6[%c11, %c0_38] : memref<27x512xf32, #tpu.memory_space<vmem>>, vector<1x512xf32>
    %50 = arith.mulf %48, %49 : vector<1x512xf32>
    %c11_39 = arith.constant 11 : index
    %c0_40 = arith.constant 0 : index
    %51 = vector.load %arg8[%c11_39, %c0_40] : memref<32x512xf32, #tpu.memory_space<vmem>>, vector<1x512xf32>
    tpu.vector_store %arg8[%c11_39, %c0_40], %50 {strides = array<i32>} : memref<32x512xf32, #tpu.memory_space<vmem>>, vector<1x512xf32>,
    %c1_i32 = arith.constant 1 : i32
    %52 = tpu.dynamic_rotate %3 by %c1_i32 dim 1 : vector<1x512xf32>, i32 -> vector<1x512xf32>
    %c12 = arith.constant 12 : index
    %c0_41 = arith.constant 0 : index
    %53 = vector.load %arg6[%c12, %c0_41] : memref<27x512xf32, #tpu.memory_space<vmem>>, vector<1x512xf32>
    %54 = arith.mulf %52, %53 : vector<1x512xf32>
    %c12_42 = arith.constant 12 : index
    %c0_43 = arith.constant 0 : index
    %55 = vector.load %arg8[%c12_42, %c0_43] : memref<32x512xf32, #tpu.memory_space<vmem>>, vector<1x512xf32>
    tpu.vector_store %arg8[%c12_42, %c0_43], %54 {strides = array<i32>} : memref<32x512xf32, #tpu.memory_space<vmem>>, vector<1x512xf32>,
    %c13 = arith.constant 13 : index
    %c0_44 = arith.constant 0 : index
    %56 = vector.load %arg6[%c13, %c0_44] : memref<27x512xf32, #tpu.memory_space<vmem>>, vector<1x512xf32>
    %57 = arith.mulf %3, %56 : vector<1x512xf32>
    %c13_45 = arith.constant 13 : index
    %c0_46 = arith.constant 0 : index
    %58 = vector.load %arg8[%c13_45, %c0_46] : memref<32x512xf32, #tpu.memory_space<vmem>>, vector<1x512xf32>
    tpu.vector_store %arg8[%c13_45, %c0_46], %57 {strides = array<i32>} : memref<32x512xf32, #tpu.memory_space<vmem>>, vector<1x512xf32>,
    %c511_i32 = arith.constant 511 : i32
    %59 = tpu.dynamic_rotate %3 by %c511_i32 dim 1 : vector<1x512xf32>, i32 -> vector<1x512xf32>
    %c14 = arith.constant 14 : index
    %c0_47 = arith.constant 0 : index
    %60 = vector.load %arg6[%c14, %c0_47] : memref<27x512xf32, #tpu.memory_space<vmem>>, vector<1x512xf32>
    %61 = arith.mulf %59, %60 : vector<1x512xf32>
    %c14_48 = arith.constant 14 : index
    %c0_49 = arith.constant 0 : index
    %62 = vector.load %arg8[%c14_48, %c0_49] : memref<32x512xf32, #tpu.memory_space<vmem>>, vector<1x512xf32>
    tpu.vector_store %arg8[%c14_48, %c0_49], %61 {strides = array<i32>} : memref<32x512xf32, #tpu.memory_space<vmem>>, vector<1x512xf32>,
    %c505_i32 = arith.constant 505 : i32
    %63 = tpu.dynamic_rotate %3 by %c505_i32 dim 1 : vector<1x512xf32>, i32 -> vector<1x512xf32>
    %c15 = arith.constant 15 : index
    %c0_50 = arith.constant 0 : index
    %64 = vector.load %arg6[%c15, %c0_50] : memref<27x512xf32, #tpu.memory_space<vmem>>, vector<1x512xf32>
    %65 = arith.mulf %63, %64 : vector<1x512xf32>
    %c15_51 = arith.constant 15 : index
    %c0_52 = arith.constant 0 : index
    %66 = vector.load %arg8[%c15_51, %c0_52] : memref<32x512xf32, #tpu.memory_space<vmem>>, vector<1x512xf32>
    tpu.vector_store %arg8[%c15_51, %c0_52], %65 {strides = array<i32>} : memref<32x512xf32, #tpu.memory_space<vmem>>, vector<1x512xf32>,
    %c504_i32 = arith.constant 504 : i32
    %67 = tpu.dynamic_rotate %3 by %c504_i32 dim 1 : vector<1x512xf32>, i32 -> vector<1x512xf32>
    %c16 = arith.constant 16 : index
    %c0_53 = arith.constant 0 : index
    %68 = vector.load %arg6[%c16, %c0_53] : memref<27x512xf32, #tpu.memory_space<vmem>>, vector<1x512xf32>
    %69 = arith.mulf %67, %68 : vector<1x512xf32>
    %c16_54 = arith.constant 16 : index
    %c0_55 = arith.constant 0 : index
    %70 = vector.load %arg8[%c16_54, %c0_55] : memref<32x512xf32, #tpu.memory_space<vmem>>, vector<1x512xf32>
    tpu.vector_store %arg8[%c16_54, %c0_55], %69 {strides = array<i32>} : memref<32x512xf32, #tpu.memory_space<vmem>>, vector<1x512xf32>,
    %c503_i32 = arith.constant 503 : i32
    %71 = tpu.dynamic_rotate %3 by %c503_i32 dim 1 : vector<1x512xf32>, i32 -> vector<1x512xf32>
    %c17 = arith.constant 17 : index
    %c0_56 = arith.constant 0 : index
    %72 = vector.load %arg6[%c17, %c0_56] : memref<27x512xf32, #tpu.memory_space<vmem>>, vector<1x512xf32>
    %73 = arith.mulf %71, %72 : vector<1x512xf32>
    %c17_57 = arith.constant 17 : index
    %c0_58 = arith.constant 0 : index
    %74 = vector.load %arg8[%c17_57, %c0_58] : memref<32x512xf32, #tpu.memory_space<vmem>>, vector<1x512xf32>
    tpu.vector_store %arg8[%c17_57, %c0_58], %73 {strides = array<i32>} : memref<32x512xf32, #tpu.memory_space<vmem>>, vector<1x512xf32>,
    %c457_i32 = arith.constant 457 : i32
    %75 = tpu.dynamic_rotate %3 by %c457_i32 dim 1 : vector<1x512xf32>, i32 -> vector<1x512xf32>
    %c18 = arith.constant 18 : index
    %c0_59 = arith.constant 0 : index
    %76 = vector.load %arg6[%c18, %c0_59] : memref<27x512xf32, #tpu.memory_space<vmem>>, vector<1x512xf32>
    %77 = arith.mulf %75, %76 : vector<1x512xf32>
    %c18_60 = arith.constant 18 : index
    %c0_61 = arith.constant 0 : index
    %78 = vector.load %arg8[%c18_60, %c0_61] : memref<32x512xf32, #tpu.memory_space<vmem>>, vector<1x512xf32>
    tpu.vector_store %arg8[%c18_60, %c0_61], %77 {strides = array<i32>} : memref<32x512xf32, #tpu.memory_space<vmem>>, vector<1x512xf32>,
    %c456_i32 = arith.constant 456 : i32
    %79 = tpu.dynamic_rotate %3 by %c456_i32 dim 1 : vector<1x512xf32>, i32 -> vector<1x512xf32>
    %c19 = arith.constant 19 : index
    %c0_62 = arith.constant 0 : index
    %80 = vector.load %arg6[%c19, %c0_62] : memref<27x512xf32, #tpu.memory_space<vmem>>, vector<1x512xf32>
    %81 = arith.mulf %79, %80 : vector<1x512xf32>
    %c19_63 = arith.constant 19 : index
    %c0_64 = arith.constant 0 : index
    %82 = vector.load %arg8[%c19_63, %c0_64] : memref<32x512xf32, #tpu.memory_space<vmem>>, vector<1x512xf32>
    tpu.vector_store %arg8[%c19_63, %c0_64], %81 {strides = array<i32>} : memref<32x512xf32, #tpu.memory_space<vmem>>, vector<1x512xf32>,
    %c455_i32 = arith.constant 455 : i32
    %83 = tpu.dynamic_rotate %3 by %c455_i32 dim 1 : vector<1x512xf32>, i32 -> vector<1x512xf32>
    %c20 = arith.constant 20 : index
    %c0_65 = arith.constant 0 : index
    %84 = vector.load %arg6[%c20, %c0_65] : memref<27x512xf32, #tpu.memory_space<vmem>>, vector<1x512xf32>
    %85 = arith.mulf %83, %84 : vector<1x512xf32>
    %c20_66 = arith.constant 20 : index
    %c0_67 = arith.constant 0 : index
    %86 = vector.load %arg8[%c20_66, %c0_67] : memref<32x512xf32, #tpu.memory_space<vmem>>, vector<1x512xf32>
    tpu.vector_store %arg8[%c20_66, %c0_67], %85 {strides = array<i32>} : memref<32x512xf32, #tpu.memory_space<vmem>>, vector<1x512xf32>,
    %c449_i32 = arith.constant 449 : i32
    %87 = tpu.dynamic_rotate %3 by %c449_i32 dim 1 : vector<1x512xf32>, i32 -> vector<1x512xf32>
    %c21 = arith.constant 21 : index
    %c0_68 = arith.constant 0 : index
    %88 = vector.load %arg6[%c21, %c0_68] : memref<27x512xf32, #tpu.memory_space<vmem>>, vector<1x512xf32>
    %89 = arith.mulf %87, %88 : vector<1x512xf32>
    %c21_69 = arith.constant 21 : index
    %c0_70 = arith.constant 0 : index
    %90 = vector.load %arg8[%c21_69, %c0_70] : memref<32x512xf32, #tpu.memory_space<vmem>>, vector<1x512xf32>
    tpu.vector_store %arg8[%c21_69, %c0_70], %89 {strides = array<i32>} : memref<32x512xf32, #tpu.memory_space<vmem>>, vector<1x512xf32>,
    %c448_i32 = arith.constant 448 : i32
    %91 = tpu.dynamic_rotate %3 by %c448_i32 dim 1 : vector<1x512xf32>, i32 -> vector<1x512xf32>
    %c22 = arith.constant 22 : index
    %c0_71 = arith.constant 0 : index
    %92 = vector.load %arg6[%c22, %c0_71] : memref<27x512xf32, #tpu.memory_space<vmem>>, vector<1x512xf32>
    %93 = arith.mulf %91, %92 : vector<1x512xf32>
    %c22_72 = arith.constant 22 : index
    %c0_73 = arith.constant 0 : index
    %94 = vector.load %arg8[%c22_72, %c0_73] : memref<32x512xf32, #tpu.memory_space<vmem>>, vector<1x512xf32>
    tpu.vector_store %arg8[%c22_72, %c0_73], %93 {strides = array<i32>} : memref<32x512xf32, #tpu.memory_space<vmem>>, vector<1x512xf32>,
    %c447_i32 = arith.constant 447 : i32
    %95 = tpu.dynamic_rotate %3 by %c447_i32 dim 1 : vector<1x512xf32>, i32 -> vector<1x512xf32>
    %c23 = arith.constant 23 : index
    %c0_74 = arith.constant 0 : index
    %96 = vector.load %arg6[%c23, %c0_74] : memref<27x512xf32, #tpu.memory_space<vmem>>, vector<1x512xf32>
    %97 = arith.mulf %95, %96 : vector<1x512xf32>
    %c23_75 = arith.constant 23 : index
    %c0_76 = arith.constant 0 : index
    %98 = vector.load %arg8[%c23_75, %c0_76] : memref<32x512xf32, #tpu.memory_space<vmem>>, vector<1x512xf32>
    tpu.vector_store %arg8[%c23_75, %c0_76], %97 {strides = array<i32>} : memref<32x512xf32, #tpu.memory_space<vmem>>, vector<1x512xf32>,
    %c441_i32 = arith.constant 441 : i32
    %99 = tpu.dynamic_rotate %3 by %c441_i32 dim 1 : vector<1x512xf32>, i32 -> vector<1x512xf32>
    %c24 = arith.constant 24 : index
    %c0_77 = arith.constant 0 : index
    %100 = vector.load %arg6[%c24, %c0_77] : memref<27x512xf32, #tpu.memory_space<vmem>>, vector<1x512xf32>
    %101 = arith.mulf %99, %100 : vector<1x512xf32>
    %c24_78 = arith.constant 24 : index
    %c0_79 = arith.constant 0 : index
    %102 = vector.load %arg8[%c24_78, %c0_79] : memref<32x512xf32, #tpu.memory_space<vmem>>, vector<1x512xf32>
    tpu.vector_store %arg8[%c24_78, %c0_79], %101 {strides = array<i32>} : memref<32x512xf32, #tpu.memory_space<vmem>>, vector<1x512xf32>,
    %c440_i32 = arith.constant 440 : i32
    %103 = tpu.dynamic_rotate %3 by %c440_i32 dim 1 : vector<1x512xf32>, i32 -> vector<1x512xf32>
    %c25 = arith.constant 25 : index
    %c0_80 = arith.constant 0 : index
    %104 = vector.load %arg6[%c25, %c0_80] : memref<27x512xf32, #tpu.memory_space<vmem>>, vector<1x512xf32>
    %105 = arith.mulf %103, %104 : vector<1x512xf32>
    %c25_81 = arith.constant 25 : index
    %c0_82 = arith.constant 0 : index
    %106 = vector.load %arg8[%c25_81, %c0_82] : memref<32x512xf32, #tpu.memory_space<vmem>>, vector<1x512xf32>
    tpu.vector_store %arg8[%c25_81, %c0_82], %105 {strides = array<i32>} : memref<32x512xf32, #tpu.memory_space<vmem>>, vector<1x512xf32>,
    %c439_i32 = arith.constant 439 : i32
    %107 = tpu.dynamic_rotate %3 by %c439_i32 dim 1 : vector<1x512xf32>, i32 -> vector<1x512xf32>
    %c26 = arith.constant 26 : index
    %c0_83 = arith.constant 0 : index
    %108 = vector.load %arg6[%c26, %c0_83] : memref<27x512xf32, #tpu.memory_space<vmem>>, vector<1x512xf32>
    %109 = arith.mulf %107, %108 : vector<1x512xf32>
    %c26_84 = arith.constant 26 : index
    %c0_85 = arith.constant 0 : index
    %110 = vector.load %arg8[%c26_84, %c0_85] : memref<32x512xf32, #tpu.memory_space<vmem>>, vector<1x512xf32>
    tpu.vector_store %arg8[%c26_84, %c0_85], %109 {strides = array<i32>} : memref<32x512xf32, #tpu.memory_space<vmem>>, vector<1x512xf32>,
    %c0_86 = arith.constant 0 : index
    %c0_87 = arith.constant 0 : index
    %111 = vector.load %arg2[%c0_86, %c0_87] : memref<16x32xf32, #tpu.memory_space<vmem>>, vector<16x32xf32>
    %c0_88 = arith.constant 0 : index
    %c0_89 = arith.constant 0 : index
    %112 = vector.load %arg8[%c0_88, %c0_89] : memref<32x512xf32, #tpu.memory_space<vmem>>, vector<32x512xf32>
    %cst_90 = arith.constant dense<0.000000e+00> : vector<16x512xf32>
    %113 = tpu.matmul %111, %112, %cst_90 {dimension_numbers = #tpu.dot_dimension_numbers<[1], [0], [0], [1], [0, 0, 1, 1], [], []>} : vector<16x32xf32>, vector<32x512xf32>, vector<16x512xf32> -> vector<16x512xf32>
    %c0_91 = arith.constant 0 : index
    %c0_92 = arith.constant 0 : index
    %114 = vector.load %arg3[%c0_91, %c0_92] : memref<16x1xf32, #tpu.memory_space<vmem>>, vector<16x1xf32>
    %115 = vector.broadcast %114 : vector<16x1xf32> to vector<16x512xf32>
    %116 = arith.addf %113, %115 : vector<16x512xf32>
    %117 = math.tanh %116 : vector<16x512xf32>
    %cst_93 = arith.constant 0.000000e+00 : f32
    %118 = vector.broadcast %cst_93 : f32 to vector<16x512xf32>
    %c73_i32_94 = arith.constant 73 : i32
    %119 = tpu.dynamic_rotate %117 by %c73_i32_94 dim 1 : vector<16x512xf32>, i32 -> vector<16x512xf32>
    %c0_95 = arith.constant 0 : index
    %c0_96 = arith.constant 0 : index
    %c0_97 = arith.constant 0 : index
    %120 = vector.load %arg4[%c0_95, %c0_96, %c0_97] : memref<27x16x512xf32, #tpu.memory_space<vmem>>, vector<1x16x512xf32>
    %121 = vector.shape_cast %120 : vector<1x16x512xf32> to vector<16x512xf32>
    %122 = arith.mulf %119, %121 : vector<16x512xf32>
    %123 = arith.addf %118, %122 : vector<16x512xf32>
    %c72_i32_98 = arith.constant 72 : i32
    %124 = tpu.dynamic_rotate %117 by %c72_i32_98 dim 1 : vector<16x512xf32>, i32 -> vector<16x512xf32>
    %c1_99 = arith.constant 1 : index
    %c0_100 = arith.constant 0 : index
    %c0_101 = arith.constant 0 : index
    %125 = vector.load %arg4[%c1_99, %c0_100, %c0_101] : memref<27x16x512xf32, #tpu.memory_space<vmem>>, vector<1x16x512xf32>
    %126 = vector.shape_cast %125 : vector<1x16x512xf32> to vector<16x512xf32>
    %127 = arith.mulf %124, %126 : vector<16x512xf32>
    %128 = arith.addf %123, %127 : vector<16x512xf32>
    %c71_i32_102 = arith.constant 71 : i32
    %129 = tpu.dynamic_rotate %117 by %c71_i32_102 dim 1 : vector<16x512xf32>, i32 -> vector<16x512xf32>
    %c2_103 = arith.constant 2 : index
    %c0_104 = arith.constant 0 : index
    %c0_105 = arith.constant 0 : index
    %130 = vector.load %arg4[%c2_103, %c0_104, %c0_105] : memref<27x16x512xf32, #tpu.memory_space<vmem>>, vector<1x16x512xf32>
    %131 = vector.shape_cast %130 : vector<1x16x512xf32> to vector<16x512xf32>
    %132 = arith.mulf %129, %131 : vector<16x512xf32>
    %133 = arith.addf %128, %132 : vector<16x512xf32>
    %c65_i32_106 = arith.constant 65 : i32
    %134 = tpu.dynamic_rotate %117 by %c65_i32_106 dim 1 : vector<16x512xf32>, i32 -> vector<16x512xf32>
    %c3_107 = arith.constant 3 : index
    %c0_108 = arith.constant 0 : index
    %c0_109 = arith.constant 0 : index
    %135 = vector.load %arg4[%c3_107, %c0_108, %c0_109] : memref<27x16x512xf32, #tpu.memory_space<vmem>>, vector<1x16x512xf32>
    %136 = vector.shape_cast %135 : vector<1x16x512xf32> to vector<16x512xf32>
    %137 = arith.mulf %134, %136 : vector<16x512xf32>
    %138 = arith.addf %133, %137 : vector<16x512xf32>
    %c64_i32_110 = arith.constant 64 : i32
    %139 = tpu.dynamic_rotate %117 by %c64_i32_110 dim 1 : vector<16x512xf32>, i32 -> vector<16x512xf32>
    %c4_111 = arith.constant 4 : index
    %c0_112 = arith.constant 0 : index
    %c0_113 = arith.constant 0 : index
    %140 = vector.load %arg4[%c4_111, %c0_112, %c0_113] : memref<27x16x512xf32, #tpu.memory_space<vmem>>, vector<1x16x512xf32>
    %141 = vector.shape_cast %140 : vector<1x16x512xf32> to vector<16x512xf32>
    %142 = arith.mulf %139, %141 : vector<16x512xf32>
    %143 = arith.addf %138, %142 : vector<16x512xf32>
    %c63_i32_114 = arith.constant 63 : i32
    %144 = tpu.dynamic_rotate %117 by %c63_i32_114 dim 1 : vector<16x512xf32>, i32 -> vector<16x512xf32>
    %c5_115 = arith.constant 5 : index
    %c0_116 = arith.constant 0 : index
    %c0_117 = arith.constant 0 : index
    %145 = vector.load %arg4[%c5_115, %c0_116, %c0_117] : memref<27x16x512xf32, #tpu.memory_space<vmem>>, vector<1x16x512xf32>
    %146 = vector.shape_cast %145 : vector<1x16x512xf32> to vector<16x512xf32>
    %147 = arith.mulf %144, %146 : vector<16x512xf32>
    %148 = arith.addf %143, %147 : vector<16x512xf32>
    %c57_i32_118 = arith.constant 57 : i32
    %149 = tpu.dynamic_rotate %117 by %c57_i32_118 dim 1 : vector<16x512xf32>, i32 -> vector<16x512xf32>
    %c6_119 = arith.constant 6 : index
    %c0_120 = arith.constant 0 : index
    %c0_121 = arith.constant 0 : index
    %150 = vector.load %arg4[%c6_119, %c0_120, %c0_121] : memref<27x16x512xf32, #tpu.memory_space<vmem>>, vector<1x16x512xf32>
    %151 = vector.shape_cast %150 : vector<1x16x512xf32> to vector<16x512xf32>
    %152 = arith.mulf %149, %151 : vector<16x512xf32>
    %153 = arith.addf %148, %152 : vector<16x512xf32>
    %c56_i32_122 = arith.constant 56 : i32
    %154 = tpu.dynamic_rotate %117 by %c56_i32_122 dim 1 : vector<16x512xf32>, i32 -> vector<16x512xf32>
    %c7_123 = arith.constant 7 : index
    %c0_124 = arith.constant 0 : index
    %c0_125 = arith.constant 0 : index
    %155 = vector.load %arg4[%c7_123, %c0_124, %c0_125] : memref<27x16x512xf32, #tpu.memory_space<vmem>>, vector<1x16x512xf32>
    %156 = vector.shape_cast %155 : vector<1x16x512xf32> to vector<16x512xf32>
    %157 = arith.mulf %154, %156 : vector<16x512xf32>
    %158 = arith.addf %153, %157 : vector<16x512xf32>
    %c55_i32_126 = arith.constant 55 : i32
    %159 = tpu.dynamic_rotate %117 by %c55_i32_126 dim 1 : vector<16x512xf32>, i32 -> vector<16x512xf32>
    %c8_127 = arith.constant 8 : index
    %c0_128 = arith.constant 0 : index
    %c0_129 = arith.constant 0 : index
    %160 = vector.load %arg4[%c8_127, %c0_128, %c0_129] : memref<27x16x512xf32, #tpu.memory_space<vmem>>, vector<1x16x512xf32>
    %161 = vector.shape_cast %160 : vector<1x16x512xf32> to vector<16x512xf32>
    %162 = arith.mulf %159, %161 : vector<16x512xf32>
    %163 = arith.addf %158, %162 : vector<16x512xf32>
    %c9_i32_130 = arith.constant 9 : i32
    %164 = tpu.dynamic_rotate %117 by %c9_i32_130 dim 1 : vector<16x512xf32>, i32 -> vector<16x512xf32>
    %c9_131 = arith.constant 9 : index
    %c0_132 = arith.constant 0 : index
    %c0_133 = arith.constant 0 : index
    %165 = vector.load %arg4[%c9_131, %c0_132, %c0_133] : memref<27x16x512xf32, #tpu.memory_space<vmem>>, vector<1x16x512xf32>
    %166 = vector.shape_cast %165 : vector<1x16x512xf32> to vector<16x512xf32>
    %167 = arith.mulf %164, %166 : vector<16x512xf32>
    %168 = arith.addf %163, %167 : vector<16x512xf32>
    %c8_i32_134 = arith.constant 8 : i32
    %169 = tpu.dynamic_rotate %117 by %c8_i32_134 dim 1 : vector<16x512xf32>, i32 -> vector<16x512xf32>
    %c10_135 = arith.constant 10 : index
    %c0_136 = arith.constant 0 : index
    %c0_137 = arith.constant 0 : index
    %170 = vector.load %arg4[%c10_135, %c0_136, %c0_137] : memref<27x16x512xf32, #tpu.memory_space<vmem>>, vector<1x16x512xf32>
    %171 = vector.shape_cast %170 : vector<1x16x512xf32> to vector<16x512xf32>
    %172 = arith.mulf %169, %171 : vector<16x512xf32>
    %173 = arith.addf %168, %172 : vector<16x512xf32>
    %c7_i32_138 = arith.constant 7 : i32
    %174 = tpu.dynamic_rotate %117 by %c7_i32_138 dim 1 : vector<16x512xf32>, i32 -> vector<16x512xf32>
    %c11_139 = arith.constant 11 : index
    %c0_140 = arith.constant 0 : index
    %c0_141 = arith.constant 0 : index
    %175 = vector.load %arg4[%c11_139, %c0_140, %c0_141] : memref<27x16x512xf32, #tpu.memory_space<vmem>>, vector<1x16x512xf32>
    %176 = vector.shape_cast %175 : vector<1x16x512xf32> to vector<16x512xf32>
    %177 = arith.mulf %174, %176 : vector<16x512xf32>
    %178 = arith.addf %173, %177 : vector<16x512xf32>
    %c1_i32_142 = arith.constant 1 : i32
    %179 = tpu.dynamic_rotate %117 by %c1_i32_142 dim 1 : vector<16x512xf32>, i32 -> vector<16x512xf32>
    %c12_143 = arith.constant 12 : index
    %c0_144 = arith.constant 0 : index
    %c0_145 = arith.constant 0 : index
    %180 = vector.load %arg4[%c12_143, %c0_144, %c0_145] : memref<27x16x512xf32, #tpu.memory_space<vmem>>, vector<1x16x512xf32>
    %181 = vector.shape_cast %180 : vector<1x16x512xf32> to vector<16x512xf32>
    %182 = arith.mulf %179, %181 : vector<16x512xf32>
    %183 = arith.addf %178, %182 : vector<16x512xf32>
    %c13_146 = arith.constant 13 : index
    %c0_147 = arith.constant 0 : index
    %c0_148 = arith.constant 0 : index
    %184 = vector.load %arg4[%c13_146, %c0_147, %c0_148] : memref<27x16x512xf32, #tpu.memory_space<vmem>>, vector<1x16x512xf32>
    %185 = vector.shape_cast %184 : vector<1x16x512xf32> to vector<16x512xf32>
    %186 = arith.mulf %117, %185 : vector<16x512xf32>
    %187 = arith.addf %183, %186 : vector<16x512xf32>
    %c511_i32_149 = arith.constant 511 : i32
    %188 = tpu.dynamic_rotate %117 by %c511_i32_149 dim 1 : vector<16x512xf32>, i32 -> vector<16x512xf32>
    %c14_150 = arith.constant 14 : index
    %c0_151 = arith.constant 0 : index
    %c0_152 = arith.constant 0 : index
    %189 = vector.load %arg4[%c14_150, %c0_151, %c0_152] : memref<27x16x512xf32, #tpu.memory_space<vmem>>, vector<1x16x512xf32>
    %190 = vector.shape_cast %189 : vector<1x16x512xf32> to vector<16x512xf32>
    %191 = arith.mulf %188, %190 : vector<16x512xf32>
    %192 = arith.addf %187, %191 : vector<16x512xf32>
    %c505_i32_153 = arith.constant 505 : i32
    %193 = tpu.dynamic_rotate %117 by %c505_i32_153 dim 1 : vector<16x512xf32>, i32 -> vector<16x512xf32>
    %c15_154 = arith.constant 15 : index
    %c0_155 = arith.constant 0 : index
    %c0_156 = arith.constant 0 : index
    %194 = vector.load %arg4[%c15_154, %c0_155, %c0_156] : memref<27x16x512xf32, #tpu.memory_space<vmem>>, vector<1x16x512xf32>
    %195 = vector.shape_cast %194 : vector<1x16x512xf32> to vector<16x512xf32>
    %196 = arith.mulf %193, %195 : vector<16x512xf32>
    %197 = arith.addf %192, %196 : vector<16x512xf32>
    %c504_i32_157 = arith.constant 504 : i32
    %198 = tpu.dynamic_rotate %117 by %c504_i32_157 dim 1 : vector<16x512xf32>, i32 -> vector<16x512xf32>
    %c16_158 = arith.constant 16 : index
    %c0_159 = arith.constant 0 : index
    %c0_160 = arith.constant 0 : index
    %199 = vector.load %arg4[%c16_158, %c0_159, %c0_160] : memref<27x16x512xf32, #tpu.memory_space<vmem>>, vector<1x16x512xf32>
    %200 = vector.shape_cast %199 : vector<1x16x512xf32> to vector<16x512xf32>
    %201 = arith.mulf %198, %200 : vector<16x512xf32>
    %202 = arith.addf %197, %201 : vector<16x512xf32>
    %c503_i32_161 = arith.constant 503 : i32
    %203 = tpu.dynamic_rotate %117 by %c503_i32_161 dim 1 : vector<16x512xf32>, i32 -> vector<16x512xf32>
    %c17_162 = arith.constant 17 : index
    %c0_163 = arith.constant 0 : index
    %c0_164 = arith.constant 0 : index
    %204 = vector.load %arg4[%c17_162, %c0_163, %c0_164] : memref<27x16x512xf32, #tpu.memory_space<vmem>>, vector<1x16x512xf32>
    %205 = vector.shape_cast %204 : vector<1x16x512xf32> to vector<16x512xf32>
    %206 = arith.mulf %203, %205 : vector<16x512xf32>
    %207 = arith.addf %202, %206 : vector<16x512xf32>
    %c457_i32_165 = arith.constant 457 : i32
    %208 = tpu.dynamic_rotate %117 by %c457_i32_165 dim 1 : vector<16x512xf32>, i32 -> vector<16x512xf32>
    %c18_166 = arith.constant 18 : index
    %c0_167 = arith.constant 0 : index
    %c0_168 = arith.constant 0 : index
    %209 = vector.load %arg4[%c18_166, %c0_167, %c0_168] : memref<27x16x512xf32, #tpu.memory_space<vmem>>, vector<1x16x512xf32>
    %210 = vector.shape_cast %209 : vector<1x16x512xf32> to vector<16x512xf32>
    %211 = arith.mulf %208, %210 : vector<16x512xf32>
    %212 = arith.addf %207, %211 : vector<16x512xf32>
    %c456_i32_169 = arith.constant 456 : i32
    %213 = tpu.dynamic_rotate %117 by %c456_i32_169 dim 1 : vector<16x512xf32>, i32 -> vector<16x512xf32>
    %c19_170 = arith.constant 19 : index
    %c0_171 = arith.constant 0 : index
    %c0_172 = arith.constant 0 : index
    %214 = vector.load %arg4[%c19_170, %c0_171, %c0_172] : memref<27x16x512xf32, #tpu.memory_space<vmem>>, vector<1x16x512xf32>
    %215 = vector.shape_cast %214 : vector<1x16x512xf32> to vector<16x512xf32>
    %216 = arith.mulf %213, %215 : vector<16x512xf32>
    %217 = arith.addf %212, %216 : vector<16x512xf32>
    %c455_i32_173 = arith.constant 455 : i32
    %218 = tpu.dynamic_rotate %117 by %c455_i32_173 dim 1 : vector<16x512xf32>, i32 -> vector<16x512xf32>
    %c20_174 = arith.constant 20 : index
    %c0_175 = arith.constant 0 : index
    %c0_176 = arith.constant 0 : index
    %219 = vector.load %arg4[%c20_174, %c0_175, %c0_176] : memref<27x16x512xf32, #tpu.memory_space<vmem>>, vector<1x16x512xf32>
    %220 = vector.shape_cast %219 : vector<1x16x512xf32> to vector<16x512xf32>
    %221 = arith.mulf %218, %220 : vector<16x512xf32>
    %222 = arith.addf %217, %221 : vector<16x512xf32>
    %c449_i32_177 = arith.constant 449 : i32
    %223 = tpu.dynamic_rotate %117 by %c449_i32_177 dim 1 : vector<16x512xf32>, i32 -> vector<16x512xf32>
    %c21_178 = arith.constant 21 : index
    %c0_179 = arith.constant 0 : index
    %c0_180 = arith.constant 0 : index
    %224 = vector.load %arg4[%c21_178, %c0_179, %c0_180] : memref<27x16x512xf32, #tpu.memory_space<vmem>>, vector<1x16x512xf32>
    %225 = vector.shape_cast %224 : vector<1x16x512xf32> to vector<16x512xf32>
    %226 = arith.mulf %223, %225 : vector<16x512xf32>
    %227 = arith.addf %222, %226 : vector<16x512xf32>
    %c448_i32_181 = arith.constant 448 : i32
    %228 = tpu.dynamic_rotate %117 by %c448_i32_181 dim 1 : vector<16x512xf32>, i32 -> vector<16x512xf32>
    %c22_182 = arith.constant 22 : index
    %c0_183 = arith.constant 0 : index
    %c0_184 = arith.constant 0 : index
    %229 = vector.load %arg4[%c22_182, %c0_183, %c0_184] : memref<27x16x512xf32, #tpu.memory_space<vmem>>, vector<1x16x512xf32>
    %230 = vector.shape_cast %229 : vector<1x16x512xf32> to vector<16x512xf32>
    %231 = arith.mulf %228, %230 : vector<16x512xf32>
    %232 = arith.addf %227, %231 : vector<16x512xf32>
    %c447_i32_185 = arith.constant 447 : i32
    %233 = tpu.dynamic_rotate %117 by %c447_i32_185 dim 1 : vector<16x512xf32>, i32 -> vector<16x512xf32>
    %c23_186 = arith.constant 23 : index
    %c0_187 = arith.constant 0 : index
    %c0_188 = arith.constant 0 : index
    %234 = vector.load %arg4[%c23_186, %c0_187, %c0_188] : memref<27x16x512xf32, #tpu.memory_space<vmem>>, vector<1x16x512xf32>
    %235 = vector.shape_cast %234 : vector<1x16x512xf32> to vector<16x512xf32>
    %236 = arith.mulf %233, %235 : vector<16x512xf32>
    %237 = arith.addf %232, %236 : vector<16x512xf32>
    %c441_i32_189 = arith.constant 441 : i32
    %238 = tpu.dynamic_rotate %117 by %c441_i32_189 dim 1 : vector<16x512xf32>, i32 -> vector<16x512xf32>
    %c24_190 = arith.constant 24 : index
    %c0_191 = arith.constant 0 : index
    %c0_192 = arith.constant 0 : index
    %239 = vector.load %arg4[%c24_190, %c0_191, %c0_192] : memref<27x16x512xf32, #tpu.memory_space<vmem>>, vector<1x16x512xf32>
    %240 = vector.shape_cast %239 : vector<1x16x512xf32> to vector<16x512xf32>
    %241 = arith.mulf %238, %240 : vector<16x512xf32>
    %242 = arith.addf %237, %241 : vector<16x512xf32>
    %c440_i32_193 = arith.constant 440 : i32
    %243 = tpu.dynamic_rotate %117 by %c440_i32_193 dim 1 : vector<16x512xf32>, i32 -> vector<16x512xf32>
    %c25_194 = arith.constant 25 : index
    %c0_195 = arith.constant 0 : index
    %c0_196 = arith.constant 0 : index
    %244 = vector.load %arg4[%c25_194, %c0_195, %c0_196] : memref<27x16x512xf32, #tpu.memory_space<vmem>>, vector<1x16x512xf32>
    %245 = vector.shape_cast %244 : vector<1x16x512xf32> to vector<16x512xf32>
    %246 = arith.mulf %243, %245 : vector<16x512xf32>
    %247 = arith.addf %242, %246 : vector<16x512xf32>
    %c439_i32_197 = arith.constant 439 : i32
    %248 = tpu.dynamic_rotate %117 by %c439_i32_197 dim 1 : vector<16x512xf32>, i32 -> vector<16x512xf32>
    %c26_198 = arith.constant 26 : index
    %c0_199 = arith.constant 0 : index
    %c0_200 = arith.constant 0 : index
    %249 = vector.load %arg4[%c26_198, %c0_199, %c0_200] : memref<27x16x512xf32, #tpu.memory_space<vmem>>, vector<1x16x512xf32>
    %250 = vector.shape_cast %249 : vector<1x16x512xf32> to vector<16x512xf32>
    %251 = arith.mulf %248, %250 : vector<16x512xf32>
    %252 = arith.addf %247, %251 : vector<16x512xf32>
    %cst_201 = arith.constant dense<0.000000e+00> : vector<512xf32>
    %253 = vector.multi_reduction <add>, %252, %cst_201 [0] : vector<16x512xf32> to vector<512xf32>
    %254 = vector.shape_cast %253 : vector<512xf32> to vector<1x512xf32>
    %c0_202 = arith.constant 0 : index
    %c0_203 = arith.constant 0 : index
    %255 = vector.load %arg5[%c0_202, %c0_203] : memref<1x1xf32, #tpu.memory_space<vmem>>, vector<1x1xf32>
    %256 = vector.broadcast %255 : vector<1x1xf32> to vector<1x512xf32>
    %257 = arith.addf %254, %256 : vector<1x512xf32>
    %c0_204 = arith.constant 0 : index
    %c0_205 = arith.constant 0 : index
    %c0_206 = arith.constant 0 : index
    %258 = vector.load %arg7[%c0_204, %c0_205, %c0_206] : memref<1x1x512xf32, #tpu.memory_space<vmem>>, vector<1x1x512xf32>
    %259 = vector.shape_cast %258 : vector<1x1x512xf32> to vector<1x512xf32>
    %260 = vector.shape_cast %257 : vector<1x512xf32> to vector<1x1x512xf32>
    tpu.vector_store %arg7[%c0_204, %c0_205, %c0_206], %260 {strides = array<i32>} : memref<1x1x512xf32, #tpu.memory_space<vmem>>, vector<1x1x512xf32>,
    return
  }
  func.func @transform_0(%arg0: i32) -> (i32, i32, i32) {
    %c0_i32 = arith.constant 0 : i32
    %c0_i32_0 = arith.constant 0 : i32
    %c0_i32_1 = arith.constant 0 : i32
    return %arg0, %c0_i32, %c0_i32_0 : i32, i32, i32
  }
  func.func @transform_1(%arg0: i32) -> (i32, i32) {
    %c0_i32 = arith.constant 0 : i32
    %c0_i32_0 = arith.constant 0 : i32
    %c0_i32_1 = arith.constant 0 : i32
    return %c0_i32, %c0_i32_0 : i32, i32
  }
  func.func @transform_2(%arg0: i32) -> (i32, i32) {
    %c0_i32 = arith.constant 0 : i32
    %c0_i32_0 = arith.constant 0 : i32
    %c0_i32_1 = arith.constant 0 : i32
    return %c0_i32, %c0_i32_0 : i32, i32
  }
  func.func @transform_3(%arg0: i32) -> (i32, i32, i32) {
    %c0_i32 = arith.constant 0 : i32
    %c0_i32_0 = arith.constant 0 : i32
    %c0_i32_1 = arith.constant 0 : i32
    %c0_i32_2 = arith.constant 0 : i32
    return %c0_i32, %c0_i32_0, %c0_i32_1 : i32, i32, i32
  }
  func.func @transform_4(%arg0: i32) -> (i32, i32) {
    %c0_i32 = arith.constant 0 : i32
    %c0_i32_0 = arith.constant 0 : i32
    %c0_i32_1 = arith.constant 0 : i32
    return %c0_i32, %c0_i32_0 : i32, i32
  }
  func.func @transform_5(%arg0: i32) -> (i32, i32) {
    %c0_i32 = arith.constant 0 : i32
    %c0_i32_0 = arith.constant 0 : i32
    %c0_i32_1 = arith.constant 0 : i32
    return %c0_i32, %c0_i32_0 : i32, i32
  }
  func.func @transform_6(%arg0: i32) -> (i32, i32, i32) {
    %c0_i32 = arith.constant 0 : i32
    %c0_i32_0 = arith.constant 0 : i32
    %c0_i32_1 = arith.constant 0 : i32
    return %arg0, %c0_i32, %c0_i32_0 : i32, i32, i32
  }
}

</mosaic_0001>

<bundles_post_ra>
// kernel: convnet_pallas.1
= control target key start
LH: loop header
LB: loop body
LE: loop exit
PB: predicated region body
PF: predicated region fallthrough
CT: control target
= control target key end

     0   :  { %s2948_s23 = smov 0   ;;  %s5585_s0 = inlined_call_operand.vmem [shape: f32[2,1,512], index: 0, kind: input, shape index: {}]   ;;  %s5586_s1 = inlined_call_operand.vmem [shape: f32[16,32], index: 1, kind: input, shape index: {}]   ;;  %s5587_s2 = inlined_call_operand.vmem [shape: f32[16,1], index: 2, kind: input, shape index: {}]   ;;  %s5588_s3 = inlined_call_operand.vmem [shape: f32[27,16,512], index: 3, kind: input, shape index: {}]   ;;  %s5589_s4 = inlined_call_operand.<no memory space> [shape: f32[1,1], index: 4, kind: input, shape index: {}]   ;;  %s5590_s5 = inlined_call_operand.vmem [shape: f32[27,512], index: 5, kind: input, shape index: {}]   ;;  %s5591_s6 = inlined_call_operand.vmem [shape: f32[2,1,512], index: 6, kind: output, shape index: {}]  }
   0x1   :  { %v11_v0 = vstv %s5589_s4 }
   0x2   :  { %12 = vst [vmem:[#allocation3] sm:$0x1] %v11_v0 }
   0x3 LB: > { %s2586_s24 = sadd.s32 4294967295, %s2889_s23   ;;  %p2590_p0 = scmp.ge.s32.totalorder %s2889_s23, 1  ;;  %s2889_s23 = sphi %s2948_s23, %s18_s23  }
   0x4   : > { %p213_p1 = scmp.lt.s32.totalorder %s2889_s23, 3 }
   0x6   : > { %p214_p2 = pnand %p2590_p0, %p213_p1 }
   0x8   : > { %217 = sbr.rel (%p214_p2) target bundleno = 987 (0x3db), region = 44 }
   0xd   : > { %p241_p3 = scmp.lt.s32.totalorder %s2586_s24, 1  ;;  %s2891_s28 = smov 73   ;;  %v2901_v7 = vmov 0.0   ;;  %v283_v10 = vlaneseq  ;;  %v290_v14 = vld [vmem:[%s5590_s5] ss:$8 sm:$0xf] }
   0xe   : > { %s2892_s29 = smov 72   ;;  %s2893_s30 = smov 71   ;;  %249 = vst [vmem:[#allocation2] sm:$0xff] %v2901_v7  ;;  %v2610_v16 = vld [vmem:[%s5590_s5 + $0x42] ss:$8 sm:$0xf] }
   0xf   : > { %s5868_s24 = smov (!%p241_p3, %s2586_s24), 1  ;;  %s2894_s7 = smov 65   ;;  %250 = vst [vmem:[#allocation2 + $0x8] sm:$0xff] %v2901_v7  ;;  %v3071_v13 = vand.u32 127, %v283_v10  ;;  %v292_v19 = vperm.slane %v290_v14, 0  ;;  %v295_v20 = vperm.slane %v290_v14, 3 }
  0x10   : > { %s5592_s4 = sshll.u32 %s5868_s24, 2  ;;  %s2895_s8 = smov 64   ;;  %251 = vst [vmem:[#allocation2 + $0x10] sm:$0xff] %v2901_v7  ;;  %v3084_v17 = vld [vmem:[%s5590_s5 + $0x1] ss:$8 sm:$0xf] }
  0x11   : > { %s2964_s27 = scalar_lea.vmem %s5585_s0, %s5592_s4  ;;  %s2896_s9 = smov 63   ;;  %252 = vst [vmem:[#allocation2 + $0x18] sm:$0xff] %v2901_v7  ;;  %v3089_v18 = vld [vmem:[%s5590_s5 + $0x43] ss:$8 sm:$0xf]  ;;  %vm313_vm0 = vcmask 1042434  }
  0x12   : > { %v265_v1 = vld [vmem:[%s2964_s27] sm:$0xf]  ;;  %s2897_s10 = smov 57   ;;  %s2898_s11 = smov 56   ;;  %257 = vst [vmem:[#allocation2 + $0x40] sm:$0xff] %v2901_v7  ;;  %vm285_vm1 = vcmp.lt.s32.totalorder %v3071_v13, 73 }
  0x13   : > { %v2967_v2 = vperm.slane %v265_v1, 2  ;;  %v2969_v3 = vperm.slane %v265_v1, 0  ;;  %v2977_v4 = vperm.slane %v265_v1, 3  ;;  %v2979_v5 = vperm.slane %v265_v1, 1  ;;  %s2899_s12 = smov 55   ;;  %s2900_s13 = smov 9  }
  0x14   : > { %258 = vst [vmem:[#allocation2 + $0x48] sm:$0xff] %v2901_v7  ;;  %s2902_s14 = smov 8   ;;  %s2903_s15 = smov 7   ;;  %v1007_v21 = vperm.slane %v2610_v16, 2  ;;  %v1008_v22 = vperm.slane %v2610_v16, 3  ;;  %vm332_vm2 = vcmp.lt.s32.totalorder %v3071_v13, 72 }
  0x15   : > { %279 = vrot.lane.b32.xlu1 %v2967_v2, %s2891_s28  ;;  %275 = vrot.lane.b32.xlu0 %v2969_v3, %s2891_s28  ;;  %259 = vst [vmem:[#allocation2 + $0x50] sm:$0xff] %v2901_v7  ;;  %v341_v23 = vperm.slane %v3084_v17, 1  ;;  %v1034_v24 = vperm.slane %v3089_v18, 0  ;;  %v293_v25 = vperm.slane %v290_v14, 1  ;;  %v294_v26 = vperm.slane %v290_v14, 2  ;;  %s2904_s17 = smov 1  }
  0x16   : > { %324 = vrot.lane.b32.xlu2 %v2969_v3, %s2892_s29  ;;  %260 = vst [vmem:[#allocation2 + $0x58] sm:$0xff] %v2901_v7  ;;  %vm311_vm3 = vcmask 1040384   ;;  %vm5600_vm4 = vcmask 1041408   ;;  %v1005_v27 = vperm.slane %v2610_v16, 0  ;;  %v1006_v28 = vperm.slane %v2610_v16, 1  ;;  %s2905_s20 = smov 127  }
  0x17   : > { %253 = vst [vmem:[#allocation2 + $0x20] sm:$0xff] %v2901_v7  ;;  %vm3105_vm5 = vcmp.lt.s32.totalorder %v283_v10, 512  ;;  %v5654_v31 = vmov 0  ;;  %v340_v33 = vperm.slane %v3084_v17, 0  ;;  %v1037_v34 = vperm.slane %v3089_v18, 3  ;;  %s2906_s21 = smov 121  }
  0x18   : > { %254 = vst [vmem:[#allocation2 + $0x28] sm:$0xff] %v2901_v7  ;;  %v5655_v31 = vsel %vm3105_vm5, 4294967295, %v5654_v31  ;;  %v342_v43 = vperm.slane %v3084_v17, 2  ;;  %v3125_v56 = vld [vmem:[%s5590_s5 + $0x44] ss:$8 sm:$0xf] }
  0x19   : > { %255 = vst [vmem:[#allocation2 + $0x30] sm:$0xff] %v2901_v7  ;;  %v343_v58 = vperm.slane %v3084_v17, 3  ;;  %v1035_v59 = vperm.slane %v3089_v18, 1  ;;  %vm374_vm6 = vcmp.lt.s32.totalorder %v3071_v13, 71  ;;  %v1036_v63 = vperm.slane %v3089_v18, 2  ;;  %s2907_s22 = smov 120  }
  0x1a   : > { %256 = vst [vmem:[#allocation2 + $0x38] sm:$0xff] %v2901_v7  ;;  %v1066_v14 = vperm.slane %v3125_v56, 3  ;;  %vm416_vm7 = vcmp.lt.s32.totalorder %v3071_v13, 65  ;;  %vm458_vm8 = vcmp.lt.s32.totalorder %v3071_v13, 64  ;;  %vm500_vm9 = vcmp.lt.s32.totalorder %v3071_v13, 63  ;;  %s5593_s25 = smov 119  }
  0x1b   : > { %261 = vst [vmem:[#allocation2 + $0x60] sm:$0xff] %v2901_v7  ;;  %vm542_vm10 = vcmp.lt.s32.totalorder %v3071_v13, 57  ;;  %vm584_vm11 = vcmp.lt.s32.totalorder %v3071_v13, 56  ;;  %vm626_vm12 = vcmp.lt.s32.totalorder %v3071_v13, 55  ;;  %vm668_vm13 = vcmp.lt.s32.totalorder %v3071_v13, 9 }
  0x1c   : > { %262 = vst [vmem:[#allocation2 + $0x68] sm:$0xff] %v2901_v7  ;;  %vm5596_vm14 = vcmp.lt.s32.totalorder %v3071_v13, 8  ;;  %vm5595_vm15 = vcmp.lt.s32.totalorder %v3071_v13, 7 }
  0x1d   : > { %281 = vrot.lane.b32.xlu1 %v2977_v4, %s2891_s28  ;;  %277 = vrot.lane.b32.xlu0 %v2979_v5, %s2891_s28  ;;  %263 = vst [vmem:[#allocation2 + $0x70] sm:$0xff] %v2901_v7 }
  0x1e   : > { %326 = vrot.lane.b32.xlu2 %v2979_v5, %s2892_s29  ;;  %264 = vst [vmem:[#allocation2 + $0x78] sm:$0xff] %v2901_v7 }
  0x1f   : > { %5656 = vst [vmem:[#allocation4_spill] sm:$0xff] %v5655_v31 }
  0x25   : > { %330 = vrot.lane.b32.xlu1 %v2977_v4, %s2892_s29  ;;  %328 = vrot.lane.b32.xlu0 %v2967_v2, %s2892_s29 }
  0x26   : > { %366 = vrot.lane.b32.xlu2 %v2969_v3, %s2893_s30 }
  0x2d   : > { %370 = vrot.lane.b32.xlu1 %v2967_v2, %s2893_s30  ;;  %368 = vrot.lane.b32.xlu0 %v2979_v5, %s2893_s30 }
  0x2e   : > { %372 = vrot.lane.b32.xlu2 %v2977_v4, %s2893_s30 }
  0x35   : > { %410 = vrot.lane.b32.xlu1 %v2979_v5, %s2894_s7  ;;  %408 = vrot.lane.b32.xlu0 %v2969_v3, %s2894_s7 }
  0x36   : > { %412 = vrot.lane.b32.xlu2 %v2967_v2, %s2894_s7 }
  0x3d   : > { %450 = vrot.lane.b32.xlu1 %v2969_v3, %s2895_s8  ;;  %414 = vrot.lane.b32.xlu0 %v2977_v4, %s2894_s7 }
  0x3e   : > { %452 = vrot.lane.b32.xlu2 %v2979_v5, %s2895_s8 }
  0x45   : > { %456 = vrot.lane.b32.xlu1 %v2977_v4, %s2895_s8  ;;  %454 = vrot.lane.b32.xlu0 %v2967_v2, %s2895_s8 }
  0x46   : > { %492 = vrot.lane.b32.xlu2 %v2969_v3, %s2896_s9 }
  0x4d   : > { %496 = vrot.lane.b32.xlu1 %v2967_v2, %s2896_s9  ;;  %494 = vrot.lane.b32.xlu0 %v2979_v5, %s2896_s9 }
  0x4e   : > { %498 = vrot.lane.b32.xlu2 %v2977_v4, %s2896_s9 }
  0x55   : > { %536 = vrot.lane.b32.xlu1 %v2979_v5, %s2897_s10  ;;  %534 = vrot.lane.b32.xlu0 %v2969_v3, %s2897_s10 }
  0x56   : > { %538 = vrot.lane.b32.xlu2 %v2967_v2, %s2897_s10 }
  0x5d   : > { %576 = vrot.lane.b32.xlu1 %v2969_v3, %s2898_s11  ;;  %540 = vrot.lane.b32.xlu0 %v2977_v4, %s2897_s10 }
  0x5e   : > { %578 = vrot.lane.b32.xlu2 %v2979_v5, %s2898_s11 }
  0x65   : > { %582 = vrot.lane.b32.xlu1 %v2977_v4, %s2898_s11  ;;  %580 = vrot.lane.b32.xlu0 %v2967_v2, %s2898_s11 }
  0x66   : > { %618 = vrot.lane.b32.xlu2 %v2969_v3, %s2899_s12 }
  0x6d   : > { %622 = vrot.lane.b32.xlu1 %v2967_v2, %s2899_s12  ;;  %620 = vrot.lane.b32.xlu0 %v2979_v5, %s2899_s12 }
  0x6e   : > { %624 = vrot.lane.b32.xlu2 %v2977_v4, %s2899_s12 }
  0x70   : > { %v3047_v6 = vpop.permute.xlu2 %324 }
  0x75   : > { %662 = vrot.lane.b32.xlu1 %v2979_v5, %s2900_s13  ;;  %660 = vrot.lane.b32.xlu0 %v2969_v3, %s2900_s13 }
  0x76   : > { %664 = vrot.lane.b32.xlu2 %v2967_v2, %s2900_s13 }
  0x78   : > { %v3055_v8 = vpop.permute.xlu2 %326 }
  0x79   : > { %v335_v30 = vsel %vm332_vm2, %v3047_v6, %v3055_v8 }
  0x7a   : > { %v349_v44 = vmul.f32 %v341_v23, %v335_v30  ;;  %v1042_v0 = vmul.f32 %v1034_v24, %v335_v30 }
  0x7c   : > { %v356_v24 = vrot.slane %v349_v44, 7  ;;  %v1064_v44 = vperm.slane %v3125_v56, 1 }
  0x7d   : > { %702 = vrot.lane.b32.xlu1 %v2969_v3, %s2902_s14  ;;  %666 = vrot.lane.b32.xlu0 %v2977_v4, %s2900_s13 }
  0x7e   : > { %704 = vrot.lane.b32.xlu2 %v2979_v5, %s2902_s14 }
  0x80   : > { %v3063_v9 = vpop.permute.xlu2 %366 }
  0x85   : > { %708 = vrot.lane.b32.xlu1 %v2977_v4, %s2902_s14  ;;  %706 = vrot.lane.b32.xlu0 %v2967_v2, %s2902_s14 }
  0x86   : > { %744 = vrot.lane.b32.xlu2 %v2969_v3, %s2903_s15 }
  0x87   : > { %v280_v11 = vpop.permute.xlu1 %279  ;;  %v276_v12 = vpop.permute.xlu0 %275 }
  0x88   : > { %v3076_v15 = vpop.permute.xlu2 %372 }
  0x8d   : > { %748 = vrot.lane.b32.xlu1 %v2967_v2, %s2903_s15  ;;  %746 = vrot.lane.b32.xlu0 %v2979_v5, %s2903_s15 }
  0x8e   : > { %750 = vrot.lane.b32.xlu2 %v2977_v4, %s2903_s15 }
  0x8f   : > { %v282_v29 = vpop.permute.xlu1 %281  ;;  %v278_v32 = vpop.permute.xlu0 %277 }
  0x90   : > { %v286_v35 = vsel %vm285_vm1, %v280_v11, %v282_v29  ;;  %v289_v36 = vsel %vm285_vm1, %v282_v29, %v276_v12  ;;  %v287_v37 = vsel %vm285_vm1, %v278_v32, %v280_v11  ;;  %v288_v38 = vsel %vm285_vm1, %v276_v12, %v278_v32  ;;  %v3119_v39 = vpop.permute.xlu2 %412  ;;  %v2594_v12 = vld [vmem:[%s5590_s5 + $0x2] ss:$8 sm:$0xf] }
  0x91   : > { %v303_v40 = vmul.f32 %v295_v20, %v286_v35  ;;  %v1015_v41 = vmul.f32 %v1007_v21, %v286_v35  ;;  %v1016_v42 = vmul.f32 %v1008_v22, %v289_v36  ;;  %v301_v45 = vmul.f32 %v293_v25, %v288_v38 }
  0x92   : > { %v302_v46 = vmul.f32 %v294_v26, %v287_v37  ;;  %v1014_v47 = vmul.f32 %v1006_v28, %v287_v37  ;;  %v300_v48 = vmul.f32 %v292_v19, %v289_v36  ;;  %v1013_v54 = vmul.f32 %v1005_v27, %v288_v38 }
  0x93   : > { %v310_v49 = vrot.slane %v303_v40, 5  ;;  %v1022_v50 = vrot.slane %v1015_v41, 6  ;;  %v1023_v51 = vrot.slane %v1016_v42, 5  ;;  %v308_v52 = vrot.slane %v301_v45, 7 }
  0x94   : > { %v309_v53 = vrot.slane %v302_v46, 6  ;;  %v1021_v55 = vrot.slane %v1014_v47, 7  ;;  %v378_v19 = vsel %vm374_vm6, %v3076_v15, %v3063_v9  ;;  %v382_v27 = vperm.slane %v2594_v12, 0 }
  0x95   : > { %v1025_v57 = vsel %vm313_vm0, %v1022_v50, %v1023_v51  ;;  %788 = vrot.lane.b32.xlu1 %v2979_v5, %s2904_s17  ;;  %786 = vrot.lane.b32.xlu0 %v2969_v3, %s2904_s17  ;;  %v312_v60 = vsel %vm311_vm3, %v300_v48, %v308_v52  ;;  %v385_v30 = vperm.slane %v2594_v12, 3  ;;  %v1065_v36 = vperm.slane %v3125_v56, 2 }
  0x96   : > { %v314_v61 = vsel %vm313_vm0, %v309_v53, %v310_v49  ;;  %v1024_v62 = vsel %vm311_vm3, %v1013_v54, %v1021_v55  ;;  %790 = vrot.lane.b32.xlu2 %v2967_v2, %s2904_s17  ;;  %v1074_v37 = vmul.f32 %v1066_v14, %v378_v19  ;;  %v384_v40 = vperm.slane %v2594_v12, 2 }
  0x97   : > { %v316_v1 = vsel %vm5600_vm4, %v312_v60, %v314_v61  ;;  %v1026_v7 = vsel %vm5600_vm4, %v1024_v62, %v1025_v57  ;;  %v331_v10 = vpop.permute.xlu1 %330  ;;  %v329_v11 = vpop.permute.xlu0 %328  ;;  %v1063_v47 = vperm.slane %v3125_v56, 0 }
  0x98   : > { %322 = vst.msk [vmem:[#allocation2] ss:$8 sm:$0xf] %vm3105_vm5, %v316_v1  ;;  %v336_v16 = vsel %vm332_vm2, %v331_v10, %v3047_v6  ;;  %v333_v17 = vsel %vm332_vm2, %v329_v11, %v331_v10  ;;  %v334_v18 = vsel %vm332_vm2, %v3055_v8, %v329_v11  ;;  %v3161_v20 = vpop.permute.xlu2 %452  ;;  %v1081_v50 = vrot.slane %v1074_v37, 5 }
  0x99   : > { %1029 = vst.msk [vmem:[#allocation2 + $0x42] ss:$8 sm:$0xf] %vm3105_vm5, %v1026_v7  ;;  %v348_v21 = vmul.f32 %v340_v33, %v336_v16  ;;  %v1045_v22 = vmul.f32 %v1037_v34, %v336_v16  ;;  %v350_v6 = vmul.f32 %v342_v43, %v334_v18  ;;  %v351_v23 = vmul.f32 %v343_v58, %v333_v17  ;;  %v2613_v16 = vld [vmem:[%s5590_s5 + $0x45] ss:$8 sm:$0xf] }
  0x9a   : > { %v1043_v25 = vmul.f32 %v1035_v59, %v334_v18  ;;  %v1044_v26 = vmul.f32 %v1036_v63, %v333_v17  ;;  %v383_v34 = vperm.slane %v2594_v12, 1  ;;  %v390_v58 = vmul.f32 %v382_v27, %v378_v19  ;;  %v2595_v18 = vld [vmem:[%s5590_s5 + $0x3] ss:$8 sm:$0xf] }
  0x9b   : > { %v1052_v28 = vrot.slane %v1045_v22, 5  ;;  %v357_v8 = vrot.slane %v350_v6, 6  ;;  %v358_v29 = vrot.slane %v351_v23, 5  ;;  %v359_v38 = vsel %vm311_vm3, %v348_v21, %v356_v24 }
  0x9c   : > { %v1050_v32 = vrot.slane %v1043_v25, 7  ;;  %v1051_v35 = vrot.slane %v1044_v26, 6  ;;  %v1093_v21 = vperm.slane %v2613_v16, 1  ;;  %v426_v22 = vperm.slane %v2595_v18, 2 }
  0x9d   : > { %v360_v33 = vsel %vm313_vm0, %v357_v8, %v358_v29  ;;  %834 = vrot.lane.b32.xlu1 %v2969_v3, %s2905_s20  ;;  %792 = vrot.lane.b32.xlu0 %v2977_v4, %s2904_s17  ;;  %v425_v23 = vperm.slane %v2595_v18, 1  ;;  %v3227_v25 = vld [vmem:[%s5590_s5 + $0x4] ss:$8 sm:$0xf]  ;;  %v424_v27 = vperm.slane %v2595_v18, 0  ;;  %v1092_v29 = vperm.slane %v2613_v16, 0 }
  0x9e   : > { %v361_v41 = vsel %vm5600_vm4, %v359_v38, %v360_v33  ;;  %v1053_v42 = vsel %vm311_vm3, %v1042_v0, %v1050_v32  ;;  %v1054_v43 = vsel %vm313_vm0, %v1051_v35, %v1052_v28  ;;  %836 = vrot.lane.b32.xlu2 %v2979_v5, %s2905_s20  ;;  %v3236_v26 = vld [vmem:[%s5590_s5 + $0x46] ss:$8 sm:$0xf]  ;;  %v427_v28 = vperm.slane %v2595_v18, 3 }
  0x9f   : > { %364 = vst.msk [vmem:[#allocation2 + $0x1] ss:$8 sm:$0xf] %vm3105_vm5, %v361_v41  ;;  %v1055_v45 = vsel %vm5600_vm4, %v1053_v42, %v1054_v43  ;;  %v371_v46 = vpop.permute.xlu1 %370  ;;  %v369_v48 = vpop.permute.xlu0 %368  ;;  %v1095_v32 = vperm.slane %v2613_v16, 3  ;;  %v467_v38 = vperm.slane %v3227_v25, 1  ;;  %v466_v42 = vperm.slane %v3227_v25, 0 }
  0xa0   : > { %1058 = vst.msk [vmem:[#allocation2 + $0x43] ss:$8 sm:$0xf] %vm3105_vm5, %v1055_v45  ;;  %v375_v49 = vsel %vm374_vm6, %v371_v46, %v3076_v15  ;;  %v376_v51 = vsel %vm374_vm6, %v369_v48, %v371_v46  ;;  %v377_v52 = vsel %vm374_vm6, %v3063_v9, %v369_v48  ;;  %v3192_v53 = vpop.permute.xlu2 %492  ;;  %v1124_v46 = vperm.slane %v3236_v26, 3 }
  0xa1   : > { %v393_v54 = vmul.f32 %v385_v30, %v375_v49  ;;  %v1073_v55 = vmul.f32 %v1065_v36, %v375_v49  ;;  %v391_v56 = vmul.f32 %v383_v34, %v377_v52  ;;  %v392_v57 = vmul.f32 %v384_v40, %v376_v51 }
  0xa2   : > { %v1072_v59 = vmul.f32 %v1064_v44, %v376_v51  ;;  %v1071_v63 = vmul.f32 %v1063_v47, %v377_v52  ;;  %v1094_v30 = vperm.slane %v2613_v16, 2  ;;  %v1121_v34 = vperm.slane %v3236_v26, 0 }
  0xa3   : > { %v400_v60 = vrot.slane %v393_v54, 5  ;;  %v1080_v61 = vrot.slane %v1073_v55, 6  ;;  %v398_v62 = vrot.slane %v391_v56, 7  ;;  %v399_v15 = vrot.slane %v392_v57, 6 }
  0xa4   : > { %v1079_v0 = vrot.slane %v1072_v59, 7  ;;  %v468_v47 = vperm.slane %v3227_v25, 2  ;;  %v469_v51 = vperm.slane %v3227_v25, 3  ;;  %v3257_v55 = vld [vmem:[%s5590_s5 + $0x5] ss:$8 sm:$0xf] }
  0xa5   : > { %v1083_v1 = vsel %vm313_vm0, %v1080_v61, %v1081_v50  ;;  %v401_v7 = vsel %vm311_vm3, %v390_v58, %v398_v62  ;;  %v402_v9 = vsel %vm313_vm0, %v399_v15, %v400_v60  ;;  %840 = vrot.lane.b32.xlu1 %v2977_v4, %s2905_s20  ;;  %838 = vrot.lane.b32.xlu0 %v2967_v2, %s2905_s20  ;;  %v3265_v60 = vld [vmem:[%s5590_s5 + $0x47] ss:$8 sm:$0xf]  ;;  %v1122_v15 = vperm.slane %v3236_v26, 1 }
  0xa6   : > { %v403_v10 = vsel %vm5600_vm4, %v401_v7, %v402_v9  ;;  %v1082_v11 = vsel %vm311_vm3, %v1071_v63, %v1079_v0  ;;  %876 = vrot.lane.b32.xlu2 %v2969_v3, %s2906_s21  ;;  %v1123_v7 = vperm.slane %v3236_v26, 2  ;;  %v1153_v16 = vperm.slane %v3265_v60, 3 }
  0xa7   : > { %406 = vst.msk [vmem:[#allocation2 + $0x2] ss:$8 sm:$0xf] %vm3105_vm5, %v403_v10  ;;  %v1084_v12 = vsel %vm5600_vm4, %v1082_v11, %v1083_v1  ;;  %v411_v14 = vpop.permute.xlu1 %410  ;;  %v409_v17 = vpop.permute.xlu0 %408 }
  0xa8   : > { %1087 = vst.msk [vmem:[#allocation2 + $0x44] ss:$8 sm:$0xf] %vm3105_vm5, %v1084_v12  ;;  %v3217_v19 = vpop.permute.xlu2 %498  ;;  %v418_v6 = vsel %vm416_vm7, %v411_v14, %v3119_v39  ;;  %v419_v24 = vsel %vm416_vm7, %v409_v17, %v411_v14  ;;  %v508_v14 = vperm.slane %v3257_v55, 0 }
  0xa9   : > { %v1101_v8 = vmul.f32 %v1093_v21, %v418_v6  ;;  %v434_v35 = vmul.f32 %v426_v22, %v418_v6  ;;  %v433_v36 = vmul.f32 %v425_v23, %v419_v24  ;;  %v1100_v56 = vmul.f32 %v1092_v29, %v419_v24 }
  0xaa   : > { %v504_v22 = vsel %vm500_vm9, %v3217_v19, %v3192_v53  ;;  %v1152_v29 = vperm.slane %v3265_v60, 2 }
  0xab   : > { %v1108_v48 = vrot.slane %v1101_v8, 7  ;;  %v441_v52 = vrot.slane %v434_v35, 6  ;;  %v511_v8 = vperm.slane %v3257_v55, 3 }
  0xad   : > { %880 = vrot.lane.b32.xlu1 %v2967_v2, %s2906_s21  ;;  %878 = vrot.lane.b32.xlu0 %v2979_v5, %s2906_s21  ;;  %v1111_v63 = vsel %vm311_vm3, %v1100_v56, %v1108_v48 }
  0xae   : > { %882 = vrot.lane.b32.xlu2 %v2977_v4, %s2906_s21 }
  0xaf   : > { %v451_v37 = vpop.permute.xlu1 %450  ;;  %v415_v33 = vpop.permute.xlu0 %414 }
  0xb0   : > { %v417_v40 = vsel %vm416_vm7, %v3119_v39, %v415_v33  ;;  %v420_v41 = vsel %vm416_vm7, %v415_v33, %v409_v17  ;;  %v3249_v43 = vpop.permute.xlu2 %538  ;;  %v440_v39 = vrot.slane %v433_v36, 7  ;;  %v461_v57 = vsel %vm458_vm8, %v451_v37, %v3161_v20 }
  0xb1   : > { %v432_v44 = vmul.f32 %v424_v27, %v420_v41  ;;  %v435_v45 = vmul.f32 %v427_v28, %v417_v40  ;;  %v1102_v49 = vmul.f32 %v1094_v30, %v417_v40  ;;  %v1103_v50 = vmul.f32 %v1095_v32, %v420_v41 }
  0xb2   : > { %v475_v9 = vmul.f32 %v467_v38, %v461_v57  ;;  %v1129_v36 = vmul.f32 %v1121_v34, %v461_v57  ;;  %v1161_v33 = vmul.f32 %v1153_v16, %v504_v22 }
  0xb3   : > { %v442_v54 = vrot.slane %v435_v45, 5  ;;  %v1109_v58 = vrot.slane %v1102_v49, 6  ;;  %v1110_v59 = vrot.slane %v1103_v50, 5  ;;  %v443_v61 = vsel %vm311_vm3, %v432_v44, %v440_v39 }
  0xb4   : > { %v482_v30 = vrot.slane %v475_v9, 7  ;;  %v510_v44 = vperm.slane %v3257_v55, 2  ;;  %v1150_v49 = vperm.slane %v3265_v60, 0 }
  0xb5   : > { %v444_v62 = vsel %vm313_vm0, %v441_v52, %v442_v54  ;;  %920 = vrot.lane.b32.xlu1 %v2979_v5, %s2907_s22  ;;  %918 = vrot.lane.b32.xlu0 %v2969_v3, %s2907_s22  ;;  %v1112_v1 = vsel %vm313_vm0, %v1109_v58, %v1110_v59  ;;  %v1168_v52 = vrot.slane %v1161_v33, 5  ;;  %v516_v59 = vmul.f32 %v508_v14, %v504_v22  ;;  %v2616_v14 = vld [vmem:[%s5590_s5 + $0x60] ss:$8 sm:$0xf] }
  0xb6   : > { %v445_v0 = vsel %vm5600_vm4, %v443_v61, %v444_v62  ;;  %922 = vrot.lane.b32.xlu2 %v2967_v2, %s2907_s22  ;;  %v1113_v10 = vsel %vm5600_vm4, %v1111_v63, %v1112_v1 }
  0xb7   : > { %448 = vst.msk [vmem:[#allocation2 + $0x3] ss:$8 sm:$0xf] %vm3105_vm5, %v445_v0  ;;  %v457_v11 = vpop.permute.xlu1 %456  ;;  %v455_v12 = vpop.permute.xlu0 %454 }
  0xb8   : > { %1116 = vst.msk [vmem:[#allocation2 + $0x45] ss:$8 sm:$0xf] %vm3105_vm5, %v1113_v10  ;;  %v462_v17 = vsel %vm458_vm8, %v457_v11, %v451_v37  ;;  %v459_v18 = vsel %vm458_vm8, %v455_v12, %v457_v11  ;;  %v460_v21 = vsel %vm458_vm8, %v3161_v20, %v455_v12  ;;  %v3299_v6 = vpop.permute.xlu2 %578 }
  0xb9   : > { %v474_v23 = vmul.f32 %v466_v42, %v462_v17  ;;  %v1132_v24 = vmul.f32 %v1124_v46, %v462_v17  ;;  %v476_v25 = vmul.f32 %v468_v47, %v460_v21  ;;  %v477_v26 = vmul.f32 %v469_v51, %v459_v18 }
  0xba   : > { %v1130_v27 = vmul.f32 %v1122_v15, %v460_v21  ;;  %v1131_v28 = vmul.f32 %v1123_v7, %v459_v18  ;;  %v509_v42 = vperm.slane %v3257_v55, 1  ;;  %v1151_v47 = vperm.slane %v3265_v60, 1 }
  0xbb   : > { %v1139_v32 = vrot.slane %v1132_v24, 5  ;;  %v483_v20 = vrot.slane %v476_v25, 6  ;;  %v484_v35 = vrot.slane %v477_v26, 5  ;;  %v485_v40 = vsel %vm311_vm3, %v474_v23, %v482_v30  ;;  %v2599_v24 = vld [vmem:[%s5590_s5 + $0x7] ss:$8 sm:$0xf] }
  0xbc   : > { %v1137_v37 = vrot.slane %v1130_v27, 7  ;;  %v1138_v38 = vrot.slane %v1131_v28, 6  ;;  %v1180_v17 = vperm.slane %v2616_v14, 1  ;;  %v3367_v25 = vld [vmem:[%s5590_s5 + $0x61] ss:$8 sm:$0xf] }
  0xbd   : > { %v486_v41 = vsel %vm313_vm0, %v483_v20, %v484_v35  ;;  %960 = vrot.lane.b32.xlu1 %v2969_v3, %s5593_s25  ;;  %924 = vrot.lane.b32.xlu0 %v2977_v4, %s2907_s22  ;;  %v1182_v30 = vperm.slane %v2616_v14, 3 }
  0xbe   : > { %v487_v34 = vsel %vm5600_vm4, %v485_v40, %v486_v41  ;;  %v1140_v45 = vsel %vm311_vm3, %v1129_v36, %v1137_v37  ;;  %v1141_v46 = vsel %vm313_vm0, %v1138_v38, %v1139_v32  ;;  %962 = vrot.lane.b32.xlu2 %v2979_v5, %s5593_s25  ;;  %v593_v36 = vperm.slane %v2599_v24, 1 }
  0xbf   : > { %490 = vst.msk [vmem:[#allocation2 + $0x4] ss:$8 sm:$0xf] %vm3105_vm5, %v487_v34  ;;  %v1142_v3 = vsel %vm5600_vm4, %v1140_v45, %v1141_v46  ;;  %v497_v48 = vpop.permute.xlu1 %496  ;;  %v495_v50 = vpop.permute.xlu0 %494  ;;  %v1208_v38 = vperm.slane %v3367_v25, 0  ;;  %v592_v41 = vperm.slane %v2599_v24, 0  ;;  %v1211_v45 = vperm.slane %v3367_v25, 3 }
  0xc0   : > { %1145 = vst.msk [vmem:[#allocation2 + $0x46] ss:$8 sm:$0xf] %vm3105_vm5, %v1142_v3  ;;  %v501_v51 = vsel %vm500_vm9, %v497_v48, %v3217_v19  ;;  %v502_v5 = vsel %vm500_vm9, %v495_v50, %v497_v48  ;;  %v503_v39 = vsel %vm500_vm9, %v3192_v53, %v495_v50  ;;  %v3331_v54 = vpop.permute.xlu2 %618  ;;  %v594_v46 = vperm.slane %v2599_v24, 2 }
  0xc1   : > { %v519_v55 = vmul.f32 %v511_v8, %v501_v51  ;;  %v1160_v56 = vmul.f32 %v1152_v29, %v501_v51  ;;  %v517_v57 = vmul.f32 %v509_v42, %v503_v39  ;;  %v518_v58 = vmul.f32 %v510_v44, %v502_v5 }
  0xc2   : > { %v1159_v60 = vmul.f32 %v1151_v47, %v502_v5  ;;  %v1158_v63 = vmul.f32 %v1150_v49, %v503_v39  ;;  %v1179_v8 = vperm.slane %v2616_v14, 0  ;;  %v1181_v29 = vperm.slane %v2616_v14, 2 }
  0xc3   : > { %v526_v61 = vrot.slane %v519_v55, 5  ;;  %v1167_v62 = vrot.slane %v1160_v56, 6  ;;  %v524_v15 = vrot.slane %v517_v57, 7  ;;  %v525_v19 = vrot.slane %v518_v58, 6 }
  0xc4   : > { %v1166_v0 = vrot.slane %v1159_v60, 7  ;;  %v595_v49 = vperm.slane %v2599_v24, 3  ;;  %v3390_v57 = vld [vmem:[%s5590_s5 + $0x62] ss:$8 sm:$0xf]  ;;  %v1209_v60 = vperm.slane %v3367_v25, 1 }
  0xc5   : > { %v1170_v1 = vsel %vm313_vm0, %v1167_v62, %v1168_v52  ;;  %v527_v7 = vsel %vm311_vm3, %v516_v59, %v524_v15  ;;  %v528_v53 = vsel %vm313_vm0, %v525_v19, %v526_v61  ;;  %966 = vrot.lane.b32.xlu1 %v2977_v4, %s5593_s25  ;;  %964 = vrot.lane.b32.xlu0 %v2967_v2, %s5593_s25  ;;  %v2598_v2 = vld [vmem:[%s5590_s5 + $0x6] ss:$8 sm:$0xf]  ;;  %v1210_v19 = vperm.slane %v3367_v25, 2 }
  0xc6   : > { %v529_v9 = vsel %vm5600_vm4, %v527_v7, %v528_v53  ;;  %v1169_v10 = vsel %vm311_vm3, %v1158_v63, %v1166_v0  ;;  %v552_v18 = vperm.slane %v2598_v2, 2  ;;  %v551_v22 = vperm.slane %v2598_v2, 1 }
  0xc7   : > { %532 = vst.msk [vmem:[#allocation2 + $0x5] ss:$8 sm:$0xf] %vm3105_vm5, %v529_v9  ;;  %v1171_v11 = vsel %vm5600_vm4, %v1169_v10, %v1170_v1  ;;  %v537_v12 = vpop.permute.xlu1 %536  ;;  %v535_v4 = vpop.permute.xlu0 %534  ;;  %v550_v26 = vperm.slane %v2598_v2, 0  ;;  %v553_v27 = vperm.slane %v2598_v2, 3  ;;  %v1240_v9 = vperm.slane %v3390_v57, 3 }
  0xc8   : > { %1174 = vst.msk [vmem:[#allocation2 + $0x47] ss:$8 sm:$0xf] %vm3105_vm5, %v1171_v11  ;;  %v3354_v16 = vpop.permute.xlu2 %624  ;;  %v544_v21 = vsel %vm542_vm10, %v537_v12, %v3249_v43  ;;  %v545_v23 = vsel %vm542_vm10, %v535_v4, %v537_v12  ;;  %v1239_v24 = vperm.slane %v3390_v57, 2 }
  0xc9   : > { %v1188_v28 = vmul.f32 %v1180_v17, %v544_v21  ;;  %v560_v32 = vmul.f32 %v552_v18, %v544_v21  ;;  %v559_v20 = vmul.f32 %v551_v22, %v545_v23  ;;  %v1187_v5 = vmul.f32 %v1179_v8, %v545_v23 }
  0xca   : > { %v630_v14 = vsel %vm626_vm12, %v3354_v16, %v3331_v54 }
  0xcb   : > { %v1195_v47 = vrot.slane %v1188_v28, 7  ;;  %v567_v50 = vrot.slane %v560_v32, 6  ;;  %v566_v51 = vrot.slane %v559_v20, 7  ;;  %v1248_v32 = vmul.f32 %v1240_v9, %v630_v14 }
  0xcd   : > { %v1198_v61 = vsel %vm311_vm3, %v1187_v5, %v1195_v47 }
  0xcf   : > { %v577_v35 = vpop.permute.xlu1 %576  ;;  %v541_v37 = vpop.permute.xlu0 %540 }
  0xd0   : > { %v543_v33 = vsel %vm542_vm10, %v3249_v43, %v541_v37  ;;  %v546_v40 = vsel %vm542_vm10, %v541_v37, %v535_v4  ;;  %v3376_v42 = vpop.permute.xlu2 %664  ;;  %v3382_v43 = vld [vmem:[%s5590_s5 + $0x20] ss:$8 sm:$0xf]  ;;  %v587_v39 = vsel %vm584_vm11, %v577_v35, %v3299_v6 }
  0xd1   : > { %v558_v44 = vmul.f32 %v550_v26, %v546_v40  ;;  %v561_v34 = vmul.f32 %v553_v27, %v543_v33  ;;  %v1189_v3 = vmul.f32 %v1181_v29, %v543_v33  ;;  %v1190_v48 = vmul.f32 %v1182_v30, %v546_v40 }
  0xd2   : > { %v601_v63 = vmul.f32 %v593_v36, %v587_v39  ;;  %v634_v53 = vperm.slane %v3382_v43, 0  ;;  %v637_v23 = vperm.slane %v3382_v43, 3  ;;  %v1216_v8 = vmul.f32 %v1208_v38, %v587_v39 }
  0xd3   : > { %v568_v52 = vrot.slane %v561_v34, 5  ;;  %v1196_v55 = vrot.slane %v1189_v3, 6  ;;  %v1197_v56 = vrot.slane %v1190_v48, 5  ;;  %v569_v58 = vsel %vm311_vm3, %v558_v44, %v566_v51 }
  0xd4   : > { %v608_v26 = vrot.slane %v601_v63, 7  ;;  %v635_v36 = vperm.slane %v3382_v43, 1  ;;  %v636_v37 = vperm.slane %v3382_v43, 2  ;;  %v1238_v44 = vperm.slane %v3390_v57, 1 }
  0xd5   : > { %v570_v59 = vsel %vm313_vm0, %v567_v50, %v568_v52  ;;  %v1199_v15 = vsel %vm313_vm0, %v1196_v55, %v1197_v56  ;;  %v1255_v3 = vrot.slane %v1248_v32, 5  ;;  %v642_v5 = vmul.f32 %v634_v53, %v630_v14 }
  0xd6   : > { %v571_v62 = vsel %vm5600_vm4, %v569_v58, %v570_v59  ;;  %v1200_v0 = vsel %vm5600_vm4, %v1198_v61, %v1199_v15 }
  0xd7   : > { %574 = vst.msk [vmem:[#allocation2 + $0x6] ss:$8 sm:$0xf] %vm3105_vm5, %v571_v62  ;;  %v583_v1 = vpop.permute.xlu1 %582  ;;  %v581_v7 = vpop.permute.xlu0 %580 }
  0xd8   : > { %1203 = vst.msk [vmem:[#allocation2 + $0x60] ss:$8 sm:$0xf] %vm3105_vm5, %v1200_v0  ;;  %v588_v10 = vsel %vm584_vm11, %v583_v1, %v577_v35  ;;  %v585_v11 = vsel %vm584_vm11, %v581_v7, %v583_v1  ;;  %v586_v12 = vsel %vm584_vm11, %v3299_v6, %v581_v7  ;;  %v3420_v25 = vpop.permute.xlu2 %704  ;;  %v2601_v7 = vld [vmem:[%s5590_s5 + $0x21] ss:$8 sm:$0xf] }
  0xd9   : > { %v600_v4 = vmul.f32 %v592_v41, %v588_v10  ;;  %v1219_v2 = vmul.f32 %v1211_v45, %v588_v10  ;;  %v602_v17 = vmul.f32 %v594_v46, %v586_v12  ;;  %v603_v18 = vmul.f32 %v595_v49, %v585_v11 }
  0xda   : > { %v1217_v21 = vmul.f32 %v1209_v60, %v586_v12  ;;  %v1218_v22 = vmul.f32 %v1210_v19, %v585_v11  ;;  %v1237_v45 = vperm.slane %v3390_v57, 0  ;;  %v678_v53 = vperm.slane %v2601_v7, 2 }
  0xdb   : > { %v1226_v27 = vrot.slane %v1219_v2, 5  ;;  %v609_v6 = vrot.slane %v602_v17, 6  ;;  %v610_v28 = vrot.slane %v603_v18, 5  ;;  %v611_v20 = vsel %vm311_vm3, %v600_v4, %v608_v26  ;;  %v2602_v26 = vld [vmem:[%s5590_s5 + $0x22] ss:$8 sm:$0xf] }
  0xdc   : > { %v1224_v29 = vrot.slane %v1217_v21, 7  ;;  %v1225_v30 = vrot.slane %v1218_v22, 6  ;;  %v677_v9 = vperm.slane %v2601_v7, 1  ;;  %v676_v12 = vperm.slane %v2601_v7, 0 }
  0xdd   : > { %v612_v35 = vsel %vm313_vm0, %v609_v6, %v610_v28  ;;  %v679_v14 = vperm.slane %v2601_v7, 3 }
  0xde   : > { %v613_v33 = vsel %vm5600_vm4, %v611_v20, %v612_v35  ;;  %v1227_v40 = vsel %vm311_vm3, %v1216_v8, %v1224_v29  ;;  %v1228_v41 = vsel %vm313_vm0, %v1225_v30, %v1226_v27  ;;  %v719_v20 = vperm.slane %v2602_v26, 1 }
  0xdf   : > { %616 = vst.msk [vmem:[#allocation2 + $0x7] ss:$8 sm:$0xf] %vm3105_vm5, %v613_v33  ;;  %v1229_v38 = vsel %vm5600_vm4, %v1227_v40, %v1228_v41  ;;  %v623_v34 = vpop.permute.xlu1 %622  ;;  %v621_v46 = vpop.permute.xlu0 %620  ;;  %v720_v40 = vperm.slane %v2602_v26, 2  ;;  %v721_v41 = vperm.slane %v2602_v26, 3 }
  0xe0   : > { %1232 = vst.msk [vmem:[#allocation2 + $0x61] ss:$8 sm:$0xf] %vm3105_vm5, %v1229_v38  ;;  %v627_v47 = vsel %vm626_vm12, %v623_v34, %v3354_v16  ;;  %v628_v48 = vsel %vm626_vm12, %v621_v46, %v623_v34  ;;  %v629_v49 = vsel %vm626_vm12, %v3331_v54, %v621_v46  ;;  %v3444_v60 = vpop.permute.xlu2 %744 }
  0xe1   : > { %v645_v50 = vmul.f32 %v637_v23, %v627_v47  ;;  %v1247_v51 = vmul.f32 %v1239_v24, %v627_v47  ;;  %v643_v52 = vmul.f32 %v635_v36, %v629_v49  ;;  %v644_v43 = vmul.f32 %v636_v37, %v628_v48 }
  0xe2   : > { %v1246_v39 = vmul.f32 %v1238_v44, %v628_v48  ;;  %v1245_v59 = vmul.f32 %v1237_v45, %v629_v49  ;;  %v718_v37 = vperm.slane %v2602_v26, 0 }
  0xe3   : > { %v652_v55 = vrot.slane %v645_v50, 5  ;;  %v1254_v56 = vrot.slane %v1247_v51, 6  ;;  %v650_v57 = vrot.slane %v643_v52, 7  ;;  %v651_v58 = vrot.slane %v644_v43, 6 }
  0xe4   : > { %v1253_v16 = vrot.slane %v1246_v39, 7  ;;  %v2603_v52 = vld [vmem:[%s5590_s5 + $0x23] ss:$8 sm:$0xf] }
  0xe5   : > { %v1257_v61 = vsel %vm313_vm0, %v1254_v56, %v1255_v3  ;;  %v653_v62 = vsel %vm311_vm3, %v642_v5, %v650_v57  ;;  %v654_v54 = vsel %vm313_vm0, %v651_v58, %v652_v55  ;;  %v763_v55 = vperm.slane %v2603_v52, 3 }
  0xe6   : > { %v655_v15 = vsel %vm5600_vm4, %v653_v62, %v654_v54  ;;  %v1256_v19 = vsel %vm311_vm3, %v1245_v59, %v1253_v16  ;;  %v761_v58 = vperm.slane %v2603_v52, 1 }
  0xe7   : > { %658 = vst.msk [vmem:[#allocation2 + $0x20] ss:$8 sm:$0xf] %vm3105_vm5, %v655_v15  ;;  %v1258_v63 = vsel %vm5600_vm4, %v1256_v19, %v1257_v61  ;;  %v663_v0 = vpop.permute.xlu1 %662  ;;  %v661_v1 = vpop.permute.xlu0 %660  ;;  %v760_v61 = vperm.slane %v2603_v52, 0 }
  0xe8   : > { %1261 = vst.msk [vmem:[#allocation2 + $0x62] ss:$8 sm:$0xf] %vm3105_vm5, %v1258_v63  ;;  %v670_v10 = vsel %vm668_vm13, %v663_v0, %v3376_v42  ;;  %v671_v11 = vsel %vm668_vm13, %v661_v1, %v663_v0  ;;  %v751_v4 = vpop.permute.xlu2 %750 }
  0xe9   : > { %v686_v2 = vmul.f32 %v678_v53, %v670_v10  ;;  %v685_v17 = vmul.f32 %v677_v9, %v671_v11  ;;  %v756_v15 = vsel %vm5595_vm15, %v751_v4, %v3444_v60 }
  0xea   : > { %v768_v9 = vmul.f32 %v760_v61, %v756_v15 }
  0xeb   : > { %v693_v30 = vrot.slane %v686_v2, 6  ;;  %v692_v32 = vrot.slane %v685_v17, 7  ;;  %v2605_v17 = vld [vmem:[%s5590_s5 + $0x25] ss:$8 sm:$0xf] }
  0xef   : > { %v703_v18 = vpop.permute.xlu1 %702  ;;  %v1277_v21 = vld [vmem:[#allocation2 + $0x60] sm:$0xff]  ;;  %v1278_v22 = vld [vmem:[#allocation2 + $0x68] sm:$0xff]  ;;  %v1279_v23 = vld [vmem:[#allocation2 + $0x70] sm:$0xff]  ;;  %v667_v24 = vpop.permute.xlu0 %666 }
  0xf0   : > { %1312 = vmatpush.msra.mxu0 %v1277_v21  ;;  %1335 = vmatpush.msra.mxu1 %v1278_v22  ;;  %v1280_v27 = vld [vmem:[#allocation2 + $0x78] sm:$0xff]  ;;  %v669_v6 = vsel %vm668_vm13, %v3376_v42, %v667_v24  ;;  %v672_v28 = vsel %vm668_vm13, %v667_v24, %v661_v1  ;;  %v713_v36 = vsel %vm5596_vm14, %v703_v18, %v3420_v25  ;;  %v791_v48 = vpop.permute.xlu2 %790  ;;  %v2882_v21 = vld [vmem:[%s2964_s27] sm:$0xf] }
  0xf1   : > { %1358 = vmatpush.msra.mxu2 %v1279_v23  ;;  %1381 = vmatpush.msra.mxu3 %v1280_v27  ;;  %v684_v8 = vmul.f32 %v676_v12, %v672_v28  ;;  %v687_v29 = vmul.f32 %v679_v14, %v669_v6  ;;  %v727_v38 = vmul.f32 %v719_v20, %v713_v36  ;;  %v2604_v23 = vld [vmem:[%s5590_s5 + $0x24] ss:$8 sm:$0xf] }
  0xf2   : > { %v830_v22 = vmul.f32 %v2882_v21, %v2605_v17  ;;  %v804_v24 = vperm.slane %v2604_v23, 2  ;;  %v803_v26 = vperm.slane %v2604_v23, 1 }
  0xf3   : > { %v694_v35 = vrot.slane %v687_v29, 5  ;;  %v695_v42 = vsel %vm311_vm3, %v684_v8, %v692_v32  ;;  %v734_v43 = vrot.slane %v727_v38, 7  ;;  %v802_v8 = vperm.slane %v2604_v23, 0 }
  0xf4   : > { %832 = vst.msk [vmem:[#allocation2 + $0x25] ss:$8 sm:$0xf] %vm3105_vm5, %v830_v22  ;;  %v805_v29 = vperm.slane %v2604_v23, 3 }
  0xf5   : > { %v696_v33 = vsel %vm313_vm0, %v693_v30, %v694_v35 }
  0xf6   : > { %v697_v44 = vsel %vm5600_vm4, %v695_v42, %v696_v33 }
  0xf7   : > { %700 = vst.msk [vmem:[#allocation2 + $0x21] ss:$8 sm:$0xf] %vm3105_vm5, %v697_v44  ;;  %v709_v34 = vpop.permute.xlu1 %708  ;;  %v707_v45 = vpop.permute.xlu0 %706  ;;  %v2606_v44 = vld [vmem:[%s5590_s5 + $0x26] ss:$8 sm:$0xf] }
  0xf8   : > { %v714_v46 = vsel %vm5596_vm14, %v709_v34, %v703_v18  ;;  %v711_v47 = vsel %vm5596_vm14, %v707_v45, %v709_v34  ;;  %v712_v3 = vsel %vm5596_vm14, %v3420_v25, %v707_v45  ;;  %v762_v25 = vperm.slane %v2603_v52, 2  ;;  %v837_v53 = vpop.permute.xlu2 %836 }
  0xf9   : > { %v726_v49 = vmul.f32 %v718_v37, %v714_v46  ;;  %v728_v50 = vmul.f32 %v720_v40, %v712_v3  ;;  %v729_v51 = vmul.f32 %v721_v41, %v711_v47  ;;  %vm5599_vm14 = vcmp.lt.s32.totalorder %v3071_v13, 127 }
  0xfa   : > { %v853_v34 = vperm.slane %v2606_v44, 3  ;;  %v851_v47 = vperm.slane %v2606_v44, 1  ;;  %v852_v3 = vperm.slane %v2606_v44, 2 }
  0xfb   : > { %v735_v5 = vrot.slane %v728_v50, 6  ;;  %v736_v39 = vrot.slane %v729_v51, 5  ;;  %v737_v56 = vsel %vm311_vm3, %v726_v49, %v734_v43  ;;  %v2607_v49 = vld [vmem:[%s5590_s5 + $0x27] ss:$8 sm:$0xf]  ;;  %v850_v51 = vperm.slane %v2606_v44, 0 }
  0xfd   : > { %v738_v57 = vsel %vm313_vm0, %v735_v5, %v736_v39 }
  0xfe   : > { %v739_v59 = vsel %vm5600_vm4, %v737_v56, %v738_v57 }
  0xff   : > { %742 = vst.msk [vmem:[#allocation2 + $0x22] ss:$8 sm:$0xf] %vm3105_vm5, %v739_v59  ;;  %v749_v16 = vpop.permute.xlu1 %748  ;;  %v747_v62 = vpop.permute.xlu0 %746  ;;  %v895_v59 = vperm.slane %v2607_v49, 3 }
 0x100   : > { %v753_v54 = vsel %vm5595_vm15, %v749_v16, %v751_v4  ;;  %v754_v19 = vsel %vm5595_vm15, %v747_v62, %v749_v16  ;;  %v755_v63 = vsel %vm5595_vm15, %v3444_v60, %v747_v62  ;;  %vm5597_vm15 = vcmp.lt.s32.totalorder %v3071_v13, 1  ;;  %v877_v28 = vpop.permute.xlu2 %876 }
 0x101   : > { %v771_v0 = vmul.f32 %v763_v55, %v753_v54  ;;  %v769_v1 = vmul.f32 %v761_v58, %v755_v63  ;;  %v770_v7 = vmul.f32 %v762_v25, %v754_v19  ;;  %v894_v19 = vperm.slane %v2607_v49, 2 }
 0x103   : > { %v778_v10 = vrot.slane %v771_v0, 5  ;;  %v776_v11 = vrot.slane %v769_v1, 7  ;;  %v777_v12 = vrot.slane %v770_v7, 6  ;;  %v893_v7 = vperm.slane %v2607_v49, 1 }
 0x105   : > { %v779_v14 = vsel %vm311_vm3, %v768_v9, %v776_v11  ;;  %v780_v4 = vsel %vm313_vm0, %v777_v12, %v778_v10  ;;  %v892_v10 = vperm.slane %v2607_v49, 0 }
 0x106   : > { %v781_v2 = vsel %vm5600_vm4, %v779_v14, %v780_v4 }
 0x107   : > { %784 = vst.msk [vmem:[#allocation2 + $0x23] ss:$8 sm:$0xf] %vm3105_vm5, %v781_v2  ;;  %v789_v60 = vpop.permute.xlu1 %788  ;;  %v787_v18 = vpop.permute.xlu0 %786 }
 0x108   : > { %v796_v27 = vsel %vm5597_vm15, %v789_v60, %v791_v48  ;;  %v797_v6 = vsel %vm5597_vm15, %v787_v18, %v789_v60  ;;  %v883_v50 = vpop.permute.xlu2 %882 }
 0x109   : > { %v812_v30 = vmul.f32 %v804_v24, %v796_v27  ;;  %v811_v32 = vmul.f32 %v803_v26, %v797_v6  ;;  %v2608_v27 = vld [vmem:[%s5590_s5 + $0x40] ss:$8 sm:$0xf] }
 0x10b   : > { %v819_v40 = vrot.slane %v812_v30, 6  ;;  %v818_v41 = vrot.slane %v811_v32, 7 }
 0x10f   : > { %v835_v20 = vpop.permute.xlu1 %834  ;;  %v793_v35 = vpop.permute.xlu0 %792 }
 0x110   : > { %v795_v36 = vsel %vm5597_vm15, %v791_v48, %v793_v35  ;;  %v798_v37 = vsel %vm5597_vm15, %v793_v35, %v787_v18  ;;  %vm5598_vm15 = vcmp.lt.s32.totalorder %v3071_v13, 121  ;;  %v845_v5 = vsel %vm5599_vm14, %v835_v20, %v837_v53  ;;  %v923_v6 = vpop.permute.xlu2 %922 }
 0x111   : > { %v810_v42 = vmul.f32 %v802_v8, %v798_v37  ;;  %v813_v33 = vmul.f32 %v805_v29, %v795_v36  ;;  %v888_v16 = vsel %vm5598_vm15, %v883_v50, %v877_v28  ;;  %v858_v61 = vmul.f32 %v850_v51, %v845_v5 }
 0x112   : > { %v903_v1 = vmul.f32 %v895_v59, %v888_v16  ;;  %v935_v29 = vperm.slane %v2608_v27, 1  ;;  %v937_v35 = vperm.slane %v2608_v27, 3  ;;  %v934_v36 = vperm.slane %v2608_v27, 0 }
 0x113   : > { %v820_v38 = vrot.slane %v813_v33, 5  ;;  %v821_v45 = vsel %vm311_vm3, %v810_v42, %v818_v41  ;;  %v2909_v33 = vmov 0  }
 0x114   : > { %v910_v17 = vrot.slane %v903_v1, 5  ;;  %2864 = vset.pattern.permute.xlu2 %v2909_v33  ;;  %2865 = vset.pattern.permute.xlu0 %v2909_v33 }
 0x115   : > { %v822_v46 = vsel %vm313_vm0, %v819_v40, %v820_v38  ;;  %v1281_v40 = vld [vmem:[%s5587_s2] sm:$0xff] }
 0x116   : > { %v823_v48 = vsel %vm5600_vm4, %v821_v45, %v822_v46  ;;  %1285 = vperm.xlu2 %2864, %v1281_v40  }
 0x117   : > { %826 = vst.msk [vmem:[#allocation2 + $0x24] ss:$8 sm:$0xf] %vm3105_vm5, %v823_v48  ;;  %v841_v52 = vpop.permute.xlu1 %840  ;;  %v839_v43 = vpop.permute.xlu0 %838 }
 0x118   : > { %v846_v39 = vsel %vm5599_vm14, %v841_v52, %v835_v20  ;;  %v843_v55 = vsel %vm5599_vm14, %v839_v43, %v841_v52  ;;  %v844_v56 = vsel %vm5599_vm14, %v837_v53, %v839_v43  ;;  %v936_v20 = vperm.slane %v2608_v27, 2  ;;  %v963_v52 = vpop.permute.xlu2 %962  ;;  %v1264_v27 = vld [vmem:[%s5586_s1 + $0x8] sm:$0xff] }
 0x119   : > { %v861_v57 = vmul.f32 %v853_v34, %v846_v39  ;;  %v859_v58 = vmul.f32 %v851_v47, %v844_v56  ;;  %v860_v25 = vmul.f32 %v852_v3, %v843_v55  ;;  %v2609_v3 = vld [vmem:[%s5590_s5 + $0x41] ss:$8 sm:$0xf]  ;;  %vm968_vm14 = vcmp.lt.s32.totalorder %v3071_v13, 119 }
 0x11a   : > { %v977_v5 = vperm.slane %v2609_v3, 1  ;;  %v978_v39 = vperm.slane %v2609_v3, 2  ;;  %v1282_v56 = vld [vmem:[%s5587_s2 + $0x8] sm:$0xff] }
 0x11b   : > { %v868_v62 = vrot.slane %v861_v57, 5  ;;  %v866_v54 = vrot.slane %v859_v58, 7  ;;  %v867_v15 = vrot.slane %v860_v25, 6  ;;  %v976_v57 = vperm.slane %v2609_v3, 0  ;;  %1290 = vperm.xlu0 %2865, %v1282_v56  }
 0x11d   : > { %v869_v63 = vsel %vm311_vm3, %v858_v61, %v866_v54  ;;  %v870_v0 = vsel %vm313_vm0, %v867_v15, %v868_v62 }
 0x11e   : > { %v871_v53 = vsel %vm5600_vm4, %v869_v63, %v870_v0 }
 0x11f   : > { %874 = vst.msk [vmem:[#allocation2 + $0x26] ss:$8 sm:$0xf] %vm3105_vm5, %v871_v53  ;;  %v881_v9 = vpop.permute.xlu1 %880  ;;  %v879_v11 = vpop.permute.xlu0 %878 }
 0x120   : > { %v885_v12 = vsel %vm5598_vm15, %v881_v9, %v883_v50  ;;  %v886_v14 = vsel %vm5598_vm15, %v879_v11, %v881_v9  ;;  %v887_v4 = vsel %vm5598_vm15, %v877_v28, %v879_v11  ;;  %vm926_vm15 = vcmp.lt.s32.totalorder %v3071_v13, 120 }
 0x121   : > { %v902_v2 = vmul.f32 %v894_v19, %v885_v12  ;;  %v901_v60 = vmul.f32 %v893_v7, %v886_v14  ;;  %v900_v21 = vmul.f32 %v892_v10, %v887_v4  ;;  %v979_v50 = vperm.slane %v2609_v3, 3 }
 0x123   : > { %v909_v18 = vrot.slane %v902_v2, 6  ;;  %v908_v22 = vrot.slane %v901_v60, 7 }
 0x125   : > { %v912_v23 = vsel %vm313_vm0, %v909_v18, %v910_v17  ;;  %v911_v24 = vsel %vm311_vm3, %v900_v21, %v908_v22  ;;  %v1265_v21 = vld [vmem:[#allocation2] sm:$0xff]  ;;  %v1266_v22 = vld [vmem:[#allocation2 + $0x8] sm:$0xff] }
 0x126   : > { %v913_v26 = vsel %vm5600_vm4, %v911_v24, %v912_v23  ;;  %v1263_v23 = vld [vmem:[%s5586_s1] sm:$0xff]  ;;  %v1267_v24 = vld [vmem:[#allocation2 + $0x10] sm:$0xff] }
 0x127   : > { %916 = vst.msk [vmem:[#allocation2 + $0x27] ss:$8 sm:$0xf] %vm3105_vm5, %v913_v26  ;;  %v921_v28 = vpop.permute.xlu1 %920  ;;  %v919_v8 = vpop.permute.xlu0 %918  ;;  %v1268_v26 = vld [vmem:[#allocation2 + $0x18] sm:$0xff] }
 0x128   : > { %v928_v30 = vsel %vm926_vm15, %v921_v28, %v923_v6  ;;  %v929_v41 = vsel %vm926_vm15, %v919_v8, %v921_v28 }
 0x129   : > { %v943_v32 = vmul.f32 %v935_v29, %v928_v30  ;;  %v942_v47 = vmul.f32 %v934_v36, %v929_v41 }
 0x12b   : > { %v950_v34 = vrot.slane %v943_v32, 7 }
 0x12d   : > { %v953_v51 = vsel %vm311_vm3, %v942_v47, %v950_v34 }
 0x12e   : > { %v1269_v2 = vld [vmem:[#allocation2 + $0x20] sm:$0xff]  ;;  %v1270_v17 = vld [vmem:[#allocation2 + $0x28] sm:$0xff]  ;;  %v1271_v60 = vld [vmem:[#allocation2 + $0x30] sm:$0xff] }
 0x12f   : > { %v961_v37 = vpop.permute.xlu1 %960  ;;  %v925_v42 = vpop.permute.xlu0 %924  ;;  %v1272_v18 = vld [vmem:[#allocation2 + $0x38] sm:$0xff] }
 0x130   : > { %v927_v44 = vsel %vm926_vm15, %v923_v6, %v925_v42  ;;  %v930_v38 = vsel %vm926_vm15, %v925_v42, %v919_v8  ;;  %v971_v59 = vsel %vm968_vm14, %v961_v37, %v963_v52 }
 0x131   : > { %v944_v45 = vmul.f32 %v936_v20, %v927_v44  ;;  %v945_v46 = vmul.f32 %v937_v35, %v930_v38  ;;  %v984_v63 = vmul.f32 %v976_v57, %v971_v59 }
 0x133   : > { %v951_v48 = vrot.slane %v944_v45, 6  ;;  %v952_v49 = vrot.slane %v945_v46, 5 }
 0x135   : > { %v954_v43 = vsel %vm313_vm0, %v951_v48, %v952_v49 }
 0x136   : > { %v955_v55 = vsel %vm5600_vm4, %v953_v51, %v954_v43 }
 0x137   : > { %958 = vst.msk [vmem:[#allocation2 + $0x40] ss:$8 sm:$0xf] %vm3105_vm5, %v955_v55  ;;  %v967_v58 = vpop.permute.xlu1 %966  ;;  %v965_v25 = vpop.permute.xlu0 %964 }
 0x138   : > { %v972_v16 = vsel %vm968_vm14, %v967_v58, %v961_v37  ;;  %v969_v61 = vsel %vm968_vm14, %v965_v25, %v967_v58  ;;  %v970_v62 = vsel %vm968_vm14, %v963_v52, %v965_v25 }
 0x139   : > { %v987_v54 = vmul.f32 %v979_v50, %v972_v16  ;;  %v985_v15 = vmul.f32 %v977_v5, %v970_v62  ;;  %v986_v19 = vmul.f32 %v978_v39, %v969_v61 }
 0x13b   : > { %v994_v0 = vrot.slane %v987_v54, 5  ;;  %v992_v1 = vrot.slane %v985_v15, 7  ;;  %v993_v7 = vrot.slane %v986_v19, 6  ;;  %v1425_v19 = vld [vmem:[%s5588_s3 + $0x8] sm:$0xff] }
 0x13d   : > { %v995_v53 = vsel %vm311_vm3, %v984_v63, %v992_v1  ;;  %v996_v9 = vsel %vm313_vm0, %v993_v7, %v994_v0  ;;  %v2628_v63 = vld [vmem:[%s5588_s3 + $0x48] sm:$0xff] }
 0x13e   : > { %v997_v10 = vsel %vm5600_vm4, %v995_v53, %v996_v9  ;;  %vm1293_vm4 = vcmask 261120   ;;  %v2636_v1 = vld [vmem:[%s5588_s3 + $0x88] sm:$0xff] }
 0x13f   : > { %1000 = vst.msk [vmem:[#allocation2 + $0x41] ss:$8 sm:$0xf] %vm3105_vm5, %v997_v10 }
 0x146   : > { %v1273_v11 = vld [vmem:[#allocation2 + $0x40] sm:$0xff]  ;;  %v1274_v12 = vld [vmem:[#allocation2 + $0x48] sm:$0xff]  ;;  %v1275_v14 = vld [vmem:[#allocation2 + $0x50] sm:$0xff] }
 0x147   : > { %1313 = vmatpush.msra.mxu0 %v1273_v11  ;;  %1336 = vmatpush.msra.mxu1 %v1274_v12  ;;  %v1276_v4 = vld [vmem:[#allocation2 + $0x58] sm:$0xff] }
 0x148   : > { %1359 = vmatpush.msra.mxu2 %v1275_v14  ;;  %1382 = vmatpush.msra.mxu3 %v1276_v4 }
 0x149   : > { %1314 = vmatpush.msra.mxu0 %v1269_v2  ;;  %1337 = vmatpush.msra.mxu1 %v1270_v17  ;;  %v2644_v17 = vld [vmem:[%s5588_s3 + $0xc8] sm:$0xff] }
 0x14a   : > { %1360 = vmatpush.msra.mxu2 %v1271_v60  ;;  %1383 = vmatpush.msra.mxu3 %v1272_v18  ;;  %v2629_v60 = vld [vmem:[%s5588_s3 + $0x50] sm:$0xff] }
 0x14b   : > { %1315 = vmatpush.msra.mxu0 %v1265_v21  ;;  %1338 = vmatpush.msra.mxu1 %v1266_v22  ;;  %v1426_v21 = vld [vmem:[%s5588_s3 + $0x10] sm:$0xff] }
 0x14c   : > { %1361 = vmatpush.msra.mxu2 %v1267_v24  ;;  %1384 = vmatpush.msra.mxu3 %v1268_v26 }
 0x14d   : > { %2619 = vmatmul.msk.f32.vlgmr.msra.gmra.mxu0 %vm1293_vm4, %v1263_v23  ;;  %2621 = vmatmul.msk.f32.vlgmr.msra.gmra.mxu1 %vm1293_vm4, %v1263_v23 }
 0x14e   : > { %2623 = vmatmul.msk.f32.vlgmr.msra.gmra.mxu2 %vm1293_vm4, %v1263_v23  ;;  %2625 = vmatmul.msk.f32.vlgmr.msra.gmra.mxu3 %vm1293_vm4, %v1263_v23 }
 0x155   : > { %2620 = vmatmul.msk.f32.gmra.mxu0 %vm1293_vm4, %v1264_v27  ;;  %2622 = vmatmul.msk.f32.gmra.mxu1 %vm1293_vm4, %v1264_v27 }
 0x156   : > { %2624 = vmatmul.msk.f32.gmra.mxu2 %vm1293_vm4, %v1264_v27  ;;  %2626 = vmatmul.msk.f32.gmra.mxu3 %vm1293_vm4, %v1264_v27 }
 0x170   : > { %v1286_v6 = vpop.permute.xlu2 %1285 }
 0x18d   : > { %v1291_v44 = vpop.permute.xlu0 %1290 }
 0x1ca   : > { %v1317_v28 = vpop.f32.mrf.mxu0  ;;  %v1340_v8 = vpop.f32.mrf.mxu1 }
 0x1cb   : > { %v1318_v29 = vadd.f32 %v1317_v28, %v1286_v6  ;;  %v1341_v30 = vadd.f32 %v1340_v8, %v1286_v6 }
 0x1cd   : > { %2866 = vtanh.f32 %v1318_v29 }
 0x1ce   : > { %2868 = vtanh.f32 %v1341_v30 }
 0x1d1   : > { %v1386_v35 = vpop.f32.mrf.mxu3  ;;  %v1363_v37 = vpop.f32.mrf.mxu2 }
 0x1d2   : > { %v1387_v36 = vadd.f32 %v1386_v35, %v1286_v6  ;;  %v1364_v42 = vadd.f32 %v1363_v37, %v1286_v6  ;;  %v1320_v41 = vpop.f32.mrf.mxu0  ;;  %v1343_v38 = vpop.f32.mrf.mxu1  ;;  %v2652_v35 = vld [vmem:[%s5588_s3 + $0x108] sm:$0xff] }
 0x1d3   : > { %v3616_v32 = vpop.eup %2866  ;;  %v1321_v34 = vadd.f32 %v1320_v41, %v1291_v44  ;;  %v1344_v45 = vadd.f32 %v1343_v38, %v1291_v44 }
 0x1d4   : > { %v3618_v20 = vpop.eup %2868  ;;  %1400 = vrot.lane.b32.xlu1 %v3616_v32, %s2891_s28  ;;  %2870 = vtanh.f32 %v1387_v36 }
 0x1d5   : > { %1501 = vrot.lane.b32.xlu2 %v3618_v20, %s2893_s30  ;;  %1452 = vrot.lane.b32.xlu0 %v3618_v20, %s2892_s29  ;;  %2872 = vtanh.f32 %v1364_v42 }
 0x1d6   : > { %2874 = vtanh.f32 %v1321_v34 }
 0x1d7   : > { %2876 = vtanh.f32 %v1344_v45 }
 0x1d9   : > { %v1389_v3 = vpop.f32.mrf.mxu3  ;;  %v1366_v49 = vpop.f32.mrf.mxu2 }
 0x1da   : > { %v3632_v33 = vpop.eup %2870  ;;  %v1390_v48 = vadd.f32 %v1389_v3, %v1291_v44  ;;  %v1367_v51 = vadd.f32 %v1366_v49, %v1291_v44  ;;  %v1424_v3 = vld [vmem:[%s5588_s3] sm:$0xff] }
 0x1db   : > { %v3640_v40 = vpop.eup %2872  ;;  %v2627_v49 = vld [vmem:[%s5588_s3 + $0x40] sm:$0xff] }
 0x1dc   : > { %1404 = vrot.lane.b32.xlu1 %v3618_v20, %s2891_s28  ;;  %v3660_v46 = vpop.eup %2874  ;;  %2878 = vtanh.f32 %v1390_v48  ;;  %v1427_v48 = vld [vmem:[%s5588_s3 + $0x18] sm:$0xff] }
 0x1dd   : > { %1546 = vrot.lane.b32.xlu2 %v3616_v32, %s2894_s7  ;;  %1497 = vrot.lane.b32.xlu0 %v3616_v32, %s2893_s30  ;;  %v3662_v47 = vpop.eup %2876  ;;  %2880 = vtanh.f32 %v1367_v51  ;;  %v2630_v51 = vld [vmem:[%s5588_s3 + $0x58] sm:$0xff] }
 0x1e2   : > { %v3676_v50 = vpop.eup %2878 }
 0x1e3   : > { %v3684_v52 = vpop.eup %2880 }
 0x1e4   : > { %1448 = vrot.lane.b32.xlu1 %v3616_v32, %s2892_s29 }
 0x1e5   : > { %1412 = vrot.lane.b32.xlu2 %v3632_v33, %s2891_s28  ;;  %1599 = vrot.lane.b32.xlu0 %v3618_v20, %s2895_s8 }
 0x1ec   : > { %1550 = vrot.lane.b32.xlu1 %v3618_v20, %s2894_s7 }
 0x1ed   : > { %1456 = vrot.lane.b32.xlu2 %v3640_v40, %s2892_s29  ;;  %1408 = vrot.lane.b32.xlu0 %v3640_v40, %s2891_s28 }
 0x1f4   : > { %1595 = vrot.lane.b32.xlu1 %v3616_v32, %s2895_s8 }
 0x1f5   : > { %1558 = vrot.lane.b32.xlu2 %v3632_v33, %s2894_s7  ;;  %1509 = vrot.lane.b32.xlu0 %v3632_v33, %s2893_s30 }
 0x1fc   : > { %1460 = vrot.lane.b32.xlu1 %v3632_v33, %s2892_s29 }
 0x1fd   : > { %1603 = vrot.lane.b32.xlu2 %v3640_v40, %s2895_s8  ;;  %1554 = vrot.lane.b32.xlu0 %v3640_v40, %s2894_s7 }
 0x204   : > { %1505 = vrot.lane.b32.xlu1 %v3640_v40, %s2893_s30 }
 0x205   : > { %1503 = vrot.lane.b32.xlu0 %v3662_v47, %s2893_s30  ;;  %1402 = vrot.lane.b32.xlu2 %v3660_v46, %s2891_s28 }
 0x20c   : > { %1607 = vrot.lane.b32.xlu1 %v3632_v33, %s2895_s8 }
 0x20d   : > { %1548 = vrot.lane.b32.xlu0 %v3660_v46, %s2894_s7  ;;  %1406 = vrot.lane.b32.xlu2 %v3662_v47, %s2891_s28 }
 0x214   : > { %1454 = vrot.lane.b32.xlu1 %v3662_v47, %s2892_s29 }
 0x215   : > { %1414 = vrot.lane.b32.xlu0 %v3676_v50, %s2891_s28  ;;  %1450 = vrot.lane.b32.xlu2 %v3660_v46, %s2892_s29 }
 0x21c   : > { %1499 = vrot.lane.b32.xlu1 %v3660_v46, %s2893_s30 }
 0x21d   : > { %1458 = vrot.lane.b32.xlu0 %v3684_v52, %s2892_s29  ;;  %1552 = vrot.lane.b32.xlu2 %v3662_v47, %s2894_s7 }
 0x224   : > { %1601 = vrot.lane.b32.xlu1 %v3662_v47, %s2895_s8 }
 0x225   : > { %1560 = vrot.lane.b32.xlu0 %v3676_v50, %s2894_s7  ;;  %1597 = vrot.lane.b32.xlu2 %v3660_v46, %s2895_s8 }
 0x22c   : > { %1410 = vrot.lane.b32.xlu1 %v3684_v52, %s2891_s28 }
 0x22d   : > { %1605 = vrot.lane.b32.xlu0 %v3684_v52, %s2895_s8  ;;  %1462 = vrot.lane.b32.xlu2 %v3676_v50, %s2892_s29 }
 0x22f   : > { %v3704_v43 = vpop.permute.xlu2 %1501 }
 0x234   : > { %1511 = vrot.lane.b32.xlu1 %v3676_v50, %s2893_s30 }
 0x235   : > { %1644 = vrot.lane.b32.xlu0 %v3616_v32, %s2896_s9  ;;  %1507 = vrot.lane.b32.xlu2 %v3684_v52, %s2893_s30 }
 0x237   : > { %v1547_v5 = vpop.permute.xlu2 %1546 }
 0x23c   : > { %1556 = vrot.lane.b32.xlu1 %v3684_v52, %s2894_s7  ;;  %s5864_s7 = sshll.u32 %s5868_s24, 2 }
 0x23d   : > { %1650 = vrot.lane.b32.xlu0 %v3662_v47, %s2896_s9  ;;  %1609 = vrot.lane.b32.xlu2 %v3676_v50, %s2895_s8 }
 0x23f   : > { %v1413_v39 = vpop.permute.xlu2 %1412 }
 0x244   : > { %1646 = vrot.lane.b32.xlu1 %v3660_v46, %s2896_s9 }
 0x245   : > { %1656 = vrot.lane.b32.xlu0 %v3632_v33, %s2896_s9  ;;  %1648 = vrot.lane.b32.xlu2 %v3618_v20, %s2896_s9 }
 0x246   : > { %v1401_v55 = vpop.permute.xlu1 %1400 }
 0x247   : > { %v3724_v56 = vpop.permute.xlu2 %1456  ;;  %v3728_v57 = vsel %vm285_vm1, %v1413_v39, %v1401_v55  ;;  %v1453_v58 = vpop.permute.xlu0 %1452 }
 0x248   : > { %v3733_v25 = vsel %vm332_vm2, %v1453_v58, %v3724_v56 }
 0x249   : > { %v1483_v28 = vmul.f32 %v2629_v60, %v3733_v25  ;;  %v2638_v60 = vld [vmem:[%s5588_s3 + $0x98] sm:$0xff] }
 0x24c   : > { %1652 = vrot.lane.b32.xlu1 %v3640_v40, %s2896_s9 }
 0x24d   : > { %1695 = vrot.lane.b32.xlu0 %v3660_v46, %s2897_s10  ;;  %1654 = vrot.lane.b32.xlu2 %v3684_v52, %s2896_s9 }
 0x24e   : > { %v1405_v59 = vpop.permute.xlu1 %1404 }
 0x24f   : > { %v3741_v16 = vpop.permute.xlu2 %1558  ;;  %v3745_v61 = vsel %vm285_vm1, %v1401_v55, %v1405_v59  ;;  %v1498_v62 = vpop.permute.xlu0 %1497 }
 0x250   : > { %v3750_v54 = vsel %vm416_vm7, %v3741_v16, %v1547_v5  ;;  %v3755_v15 = vsel %vm374_vm6, %v1498_v62, %v3704_v43  ;;  %v1433_v10 = vmul.f32 %v1425_v19, %v3745_v61  ;;  %v1432_v19 = vmul.f32 %v1424_v3, %v3728_v57 }
 0x251   : > { %5657 = vst [vmem:[#allocation5_spill] sm:$0xff] %v3750_v54  ;;  %v1531_v14 = vmul.f32 %v2636_v1, %v3755_v15 }
 0x254   : > { %1658 = vrot.lane.b32.xlu1 %v3676_v50, %s2896_s9  ;;  %s248_s9 = scalar_lea.vmem %s5591_s6, %s5864_s7 }
 0x255   : > { %1701 = vrot.lane.b32.xlu0 %v3640_v40, %s2897_s10  ;;  %1693 = vrot.lane.b32.xlu2 %v3616_v32, %s2897_s10 }
 0x256   : > { %v1449_v0 = vpop.permute.xlu1 %1448 }
 0x257   : > { %v3772_v7 = vpop.permute.xlu2 %1603  ;;  %v3776_v53 = vsel %vm332_vm2, %v1449_v0, %v1453_v58  ;;  %v1600_v9 = vpop.permute.xlu0 %1599 }
 0x258   : > { %v1482_v11 = vmul.f32 %v2628_v63, %v3776_v53  ;;  %v3783_v12 = vsel %vm458_vm8, %v1600_v9, %v3772_v7 }
 0x25a   : > { %v1490_v4 = vadd.f32 %v1482_v11, %v1433_v10 }
 0x25c   : > { %1697 = vrot.lane.b32.xlu1 %v3618_v20, %s2897_s10  ;;  %v1539_v2 = vadd.f32 %v1531_v14, %v1490_v4 }
 0x25d   : > { %1707 = vrot.lane.b32.xlu0 %v3676_v50, %s2897_s10  ;;  %1699 = vrot.lane.b32.xlu2 %v3662_v47, %s2897_s10 }
 0x25e   : > { %v1551_v18 = vpop.permute.xlu1 %1550 }
 0x25f   : > { %v3803_v22 = vsel %vm416_vm7, %v1547_v5, %v1551_v18  ;;  %v3805_v23 = vpop.permute.xlu2 %1402  ;;  %v1409_v24 = vpop.permute.xlu0 %1408 }
 0x260   : > { %v1580_v26 = vmul.f32 %v2644_v17, %v3803_v22  ;;  %v3810_v27 = vsel %vm285_vm1, %v1409_v24, %v1413_v39  ;;  %v3814_v6 = vsel %vm285_vm1, %v1405_v59, %v1409_v24  ;;  %v2635_v39 = vld [vmem:[%s5588_s3 + $0x80] sm:$0xff]  ;;  %v2645_v24 = vld [vmem:[%s5588_s3 + $0xd0] sm:$0xff] }
 0x261   : > { %v1434_v8 = vmul.f32 %v1426_v21, %v3814_v6  ;;  %v1435_v63 = vmul.f32 %v1427_v48, %v3810_v27  ;;  %v2653_v48 = vld [vmem:[%s5588_s3 + $0x110] sm:$0xff] }
 0x262   : > { %v1588_v29 = vadd.f32 %v1580_v26, %v1539_v2  ;;  %v2646_v26 = vld [vmem:[%s5588_s3 + $0xd8] sm:$0xff] }
 0x263   : > { %v1491_v30 = vadd.f32 %v1483_v28, %v1434_v8 }
 0x264   : > { %1703 = vrot.lane.b32.xlu1 %v3684_v52, %s2897_s10 }
 0x265   : > { %1746 = vrot.lane.b32.xlu0 %v3618_v20, %s2898_s11  ;;  %1705 = vrot.lane.b32.xlu2 %v3632_v33, %s2897_s10 }
 0x266   : > { %v3827_v36 = vpop.permute.xlu1 %1595 }
 0x267   : > { %v3832_v37 = vsel %vm458_vm8, %v3827_v36, %v1600_v9  ;;  %v3834_v42 = vpop.permute.xlu2 %1406  ;;  %v1510_v41 = vpop.permute.xlu0 %1509 }
 0x268   : > { %v1629_v44 = vmul.f32 %v2652_v35, %v3832_v37  ;;  %v3841_v38 = vsel %vm285_vm1, %v3805_v23, %v3834_v42  ;;  %v3845_v34 = vsel %vm374_vm6, %v1510_v41, %v1498_v62 }
 0x269   : > { %v1530_v11 = vmul.f32 %v2635_v39, %v3845_v34 }
 0x26a   : > { %v3847_v45 = vadd.f32 %v1629_v44, %v1588_v29 }
 0x26c   : > { %1742 = vrot.lane.b32.xlu1 %v3616_v32, %s2898_s11 }
 0x26d   : > { %1752 = vrot.lane.b32.xlu0 %v3684_v52, %s2898_s11  ;;  %1744 = vrot.lane.b32.xlu2 %v3660_v46, %s2898_s11 }
 0x26e   : > { %v1461_v5 = vpop.permute.xlu1 %1460 }
 0x26f   : > { %v3873_v55 = vsel %vm332_vm2, %v3724_v56, %v1461_v5  ;;  %v3877_v58 = vsel %vm332_vm2, %v1461_v5, %v1449_v0  ;;  %v3879_v59 = vpop.permute.xlu2 %1450  ;;  %v1555_v62 = vpop.permute.xlu0 %1554  ;;  %v2643_v56 = vld [vmem:[%s5588_s3 + $0xc0] sm:$0xff] }
 0x270   : > { %v1481_v1 = vmul.f32 %v2627_v49, %v3877_v58  ;;  %v1484_v9 = vmul.f32 %v2630_v51, %v3873_v55  ;;  %v3891_v0 = vsel %vm416_vm7, %v1555_v62, %v3741_v16  ;;  %v3895_v10 = vsel %vm416_vm7, %v1551_v18, %v1555_v62  ;;  %v2637_v16 = vld [vmem:[%s5588_s3 + $0x90] sm:$0xff] }
 0x271   : > { %5658 = vst [vmem:[#allocation6_spill] sm:$0xff] %v3891_v0  ;;  %v1579_v2 = vmul.f32 %v2643_v56, %v3750_v54  ;;  %v1581_v49 = vmul.f32 %v2645_v24, %v3895_v10  ;;  %v1428_v24 = vld [vmem:[%s5588_s3 + $0x20] sm:$0xff] }
 0x272   : > { %v1489_v14 = vadd.f32 %v1481_v1, %v1432_v19  ;;  %v1492_v4 = vadd.f32 %v1484_v9, %v1435_v63  ;;  %v2651_v19 = vld [vmem:[%s5588_s3 + $0x100] sm:$0xff] }
 0x274   : > { %v1538_v17 = vadd.f32 %v1530_v11, %v1489_v14  ;;  %1748 = vrot.lane.b32.xlu1 %v3662_v47, %s2898_s11 }
 0x275   : > { %1791 = vrot.lane.b32.xlu0 %v3616_v32, %s2899_s12  ;;  %1750 = vrot.lane.b32.xlu2 %v3640_v40, %s2898_s11 }
 0x276   : > { %v1506_v18 = vpop.permute.xlu1 %1505  ;;  %v1587_v21 = vadd.f32 %v1579_v2, %v1538_v17 }
 0x277   : > { %v3919_v28 = vsel %vm374_vm6, %v1506_v18, %v1510_v41  ;;  %v3924_v8 = vsel %vm374_vm6, %v3704_v43, %v1506_v18  ;;  %v3926_v29 = vpop.permute.xlu2 %1552  ;;  %v1504_v35 = vpop.permute.xlu0 %1503  ;;  %v1582_v41 = vmul.f32 %v2646_v26, %v3891_v0  ;;  %v1630_v43 = vmul.f32 %v2653_v48, %v3783_v12 }
 0x278   : > { %5659 = vst [vmem:[#allocation7_spill] sm:$0xff] %v3919_v28  ;;  %v1532_v44 = vmul.f32 %v2637_v16, %v3924_v8  ;;  %v1533_v3 = vmul.f32 %v2638_v60, %v3919_v28  ;;  %v2632_v60 = vld [vmem:[%s5588_s3 + $0x68] sm:$0xff] }
 0x27a   : > { %v1540_v51 = vadd.f32 %v1532_v44, %v1491_v30  ;;  %v1541_v5 = vadd.f32 %v1533_v3, %v1492_v4  ;;  %v2654_v30 = vld [vmem:[%s5588_s3 + $0x118] sm:$0xff] }
 0x27c   : > { %v1589_v39 = vadd.f32 %v1581_v49, %v1540_v51  ;;  %1754 = vrot.lane.b32.xlu1 %v3632_v33, %s2898_s11  ;;  %v1590_v62 = vadd.f32 %v1582_v41, %v1541_v5 }
 0x27d   : > { %1797 = vrot.lane.b32.xlu0 %v3662_v47, %s2899_s12  ;;  %1756 = vrot.lane.b32.xlu2 %v3676_v50, %s2898_s11 }
 0x27e   : > { %v1608_v63 = vpop.permute.xlu1 %1607  ;;  %v3948_v1 = vadd.f32 %v1630_v43, %v1589_v39 }
 0x27f   : > { %v3953_v9 = vsel %vm458_vm8, %v3772_v7, %v1608_v63  ;;  %v3958_v56 = vsel %vm458_vm8, %v1608_v63, %v3827_v36  ;;  %v1598_v11 = vpop.permute.xlu2 %1597  ;;  %v1549_v14 = vpop.permute.xlu0 %1548  ;;  %v1429_v36 = vld [vmem:[%s5588_s3 + $0x28] sm:$0xff] }
 0x280   : > { %5660 = vst [vmem:[#allocation8_spill] sm:$0xff] %v3953_v9  ;;  %v1628_v4 = vmul.f32 %v2651_v19, %v3958_v56  ;;  %v1631_v2 = vmul.f32 %v2654_v30, %v3953_v9  ;;  %v3965_v17 = vsel %vm416_vm7, %v1549_v14, %v3926_v29  ;;  %v1437_v48 = vmul.f32 %v1429_v36, %v3841_v38  ;;  %v2648_v19 = vld [vmem:[%s5588_s3 + $0xe8] sm:$0xff] }
 0x281   : > { %5661 = vst [vmem:[#allocation9_spill] sm:$0xff] %v3958_v56 }
 0x282   : > { %v3967_v16 = vadd.f32 %v1628_v4, %v1587_v21  ;;  %v3969_v7 = vadd.f32 %v1631_v2, %v1590_v62  ;;  %v2631_v21 = vld [vmem:[%s5588_s3 + $0x60] sm:$0xff] }
 0x284   : > { %1793 = vrot.lane.b32.xlu1 %v3660_v46, %s2899_s12 }
 0x285   : > { %1803 = vrot.lane.b32.xlu0 %v3632_v33, %s2899_s12  ;;  %1795 = vrot.lane.b32.xlu2 %v3618_v20, %s2899_s12 }
 0x286   : > { %v1455_v18 = vpop.permute.xlu1 %1454 }
 0x287   : > { %v3992_v26 = vsel %vm332_vm2, %v3879_v59, %v1455_v18  ;;  %v1463_v44 = vpop.permute.xlu2 %1462  ;;  %v1415_v3 = vpop.permute.xlu0 %1414 }
 0x288   : > { %v1486_v49 = vmul.f32 %v2632_v60, %v3992_v26  ;;  %v3999_v41 = vsel %vm332_vm2, %v1463_v44, %v3879_v59  ;;  %v4004_v51 = vsel %vm285_vm1, %v1415_v3, %v3805_v23  ;;  %v2640_v23 = vld [vmem:[%s5588_s3 + $0xa8] sm:$0xff] }
 0x289   : > { %v1485_v5 = vmul.f32 %v2631_v21, %v3999_v41  ;;  %v1436_v43 = vmul.f32 %v1428_v24, %v4004_v51  ;;  %v1584_v24 = vmul.f32 %v2648_v19, %v3965_v17 }
 0x28a   : > { %v1494_v39 = vadd.f32 %v1486_v49, %v1437_v48 }
 0x28b   : > { %v4008_v62 = vadd.f32 %v1485_v5, %v1436_v43 }
 0x28c   : > { %1799 = vrot.lane.b32.xlu1 %v3640_v40, %s2899_s12 }
 0x28d   : > { %1842 = vrot.lane.b32.xlu0 %v3660_v46, %s2900_s13  ;;  %1801 = vrot.lane.b32.xlu2 %v3684_v52, %s2899_s12 }
 0x28e   : > { %v1500_v59 = vpop.permute.xlu1 %1499 }
 0x28f   : > { %v4024_v30 = vsel %vm374_vm6, %v1500_v59, %v1504_v35  ;;  %v1508_v63 = vpop.permute.xlu2 %1507  ;;  %v1459_v4 = vpop.permute.xlu0 %1458 }
 0x290   : > { %5662 = vst [vmem:[#allocation10_spill] sm:$0xff] %v4024_v30  ;;  %v1535_v2 = vmul.f32 %v2640_v23, %v4024_v30  ;;  %v4029_v36 = vsel %vm374_vm6, %v1504_v35, %v1508_v63  ;;  %v4033_v60 = vsel %vm332_vm2, %v1459_v4, %v1463_v44  ;;  %v4037_v21 = vsel %vm332_vm2, %v1455_v18, %v1459_v4  ;;  %v2656_v35 = vld [vmem:[%s5588_s3 + $0x128] sm:$0xff] }
 0x292   : > { %v1543_v48 = vadd.f32 %v1535_v2, %v1494_v39  ;;  %v2633_v2 = vld [vmem:[%s5588_s3 + $0x70] sm:$0xff] }
 0x293   : > { %v1487_v9 = vmul.f32 %v2633_v2, %v4037_v21 }
 0x294   : > { %1805 = vrot.lane.b32.xlu1 %v3676_v50, %s2899_s12  ;;  %v1592_v49 = vadd.f32 %v1584_v24, %v1543_v48  ;;  %v2634_v24 = vld [vmem:[%s5588_s3 + $0x78] sm:$0xff] }
 0x295   : > { %1848 = vrot.lane.b32.xlu0 %v3640_v40, %s2900_s13  ;;  %1840 = vrot.lane.b32.xlu2 %v3616_v32, %s2900_s13  ;;  %v1488_v0 = vmul.f32 %v2634_v24, %v4033_v60  ;;  %v2660_v24 = vld [vmem:[%s5588_s3 + $0x148] sm:$0xff] }
 0x296   : > { %v1602_v44 = vpop.permute.xlu1 %1601 }
 0x297   : > { %v4051_v18 = vsel %vm458_vm8, %v1598_v11, %v1602_v44  ;;  %v1610_v5 = vpop.permute.xlu2 %1609  ;;  %v1561_v43 = vpop.permute.xlu0 %1560 }
 0x298   : > { %5663 = vst [vmem:[#allocation11_spill] sm:$0xff] %v4051_v18  ;;  %v1633_v39 = vmul.f32 %v2656_v35, %v4051_v18  ;;  %v4056_v23 = vsel %vm458_vm8, %v1610_v5, %v1598_v11  ;;  %v4060_v19 = vsel %vm416_vm7, %v1561_v43, %v1549_v14  ;;  %v1430_v11 = vld [vmem:[%s5588_s3 + $0x30] sm:$0xff]  ;;  %v1431_v14 = vld [vmem:[%s5588_s3 + $0x38] sm:$0xff] }
 0x299   : > { %5664 = vst [vmem:[#allocation12_spill] sm:$0xff] %v4060_v19 }
 0x29a   : > { %v4062_v4 = vadd.f32 %v1633_v39, %v1592_v49  ;;  %v2641_v49 = vld [vmem:[%s5588_s3 + $0xb0] sm:$0xff] }
 0x29c   : > { %1844 = vrot.lane.b32.xlu1 %v3618_v20, %s2900_s13 }
 0x29d   : > { %1854 = vrot.lane.b32.xlu0 %v3676_v50, %s2900_s13  ;;  %1846 = vrot.lane.b32.xlu2 %v3662_v47, %s2900_s13 }
 0x29e   : > { %v1411_v48 = vpop.permute.xlu1 %1410 }
 0x29f   : > { %v4087_v35 = vsel %vm285_vm1, %v1411_v48, %v1415_v3  ;;  %v4092_v39 = vsel %vm285_vm1, %v3834_v42, %v1411_v48  ;;  %v4094_v31 = vpop.permute.xlu2 %1648  ;;  %v1606_v56 = vpop.permute.xlu0 %1605  ;;  %v1536_v42 = vmul.f32 %v2641_v49, %v4029_v36  ;;  %vm5705_vm1 = vcmp.lt.s32.totalorder %v3071_v13, 8 }
 0x2a0   : > { %5665 = vst [vmem:[#allocation13_spill] sm:$0xff] %v4087_v35  ;;  %v1438_v54 = vmul.f32 %v1430_v11, %v4092_v39  ;;  %v1439_v28 = vmul.f32 %v1431_v14, %v4087_v35  ;;  %v4102_v3 = vsel %vm458_vm8, %v1606_v56, %v1610_v5  ;;  %v4106_v18 = vsel %vm458_vm8, %v1602_v44, %v1606_v56  ;;  %v2639_v5 = vld [vmem:[%s5588_s3 + $0xa0] sm:$0xff]  ;;  %v2642_v56 = vld [vmem:[%s5588_s3 + $0xb8] sm:$0xff]  ;;  %vm5706_vm2 = vmmov %vm5705_vm1 }
 0x2a1   : > { %5666 = vst [vmem:[#allocation14_spill] sm:$0xff] %v4092_v39  ;;  %vm5707_vm4 = vmmov %vm5705_vm1 }
 0x2a2   : > { %5667 = vst [vmem:[#allocation15_spill] sm:$0xff] %v4102_v3  ;;  %v1495_v48 = vadd.f32 %v1487_v9, %v1438_v54  ;;  %v1496_v30 = vadd.f32 %v1488_v0, %v1439_v28  ;;  %v2647_v0 = vld [vmem:[%s5588_s3 + $0xe0] sm:$0xff]  ;;  %vm5711_vm8 = vmmov %vm5705_vm1 }
 0x2a3   : > { %5668 = vst [vmem:[#allocation16_spill] sm:$0xff] %v4106_v18 }
 0x2a4   : > { %1850 = vrot.lane.b32.xlu1 %v3684_v52, %s2900_s13  ;;  %v1544_v2 = vadd.f32 %v1536_v42, %v1495_v48  ;;  %v1583_v42 = vmul.f32 %v2647_v0, %v4060_v19 }
 0x2a5   : > { %1893 = vrot.lane.b32.xlu0 %v3618_v20, %s2902_s14  ;;  %1852 = vrot.lane.b32.xlu2 %v3632_v33, %s2900_s13  ;;  %s5709_s13 = smov 119  }
 0x2a6   : > { %v1512_v54 = vpop.permute.xlu1 %1511 }
 0x2a7   : > { %v4126_v28 = vsel %vm374_vm6, %v1508_v63, %v1512_v54  ;;  %v4130_v9 = vsel %vm374_vm6, %v1512_v54, %v1500_v59  ;;  %v4132_v44 = vpop.permute.xlu2 %1654  ;;  %v1645_v11 = vpop.permute.xlu0 %1644  ;;  %v2655_v63 = vld [vmem:[%s5588_s3 + $0x120] sm:$0xff]  ;;  %vm5708_vm6 = vmmov %vm5705_vm1 }
 0x2a8   : > { %5669 = vst [vmem:[#allocation17_spill] sm:$0xff] %v4126_v28  ;;  %v1534_v14 = vmul.f32 %v2639_v5, %v4130_v9  ;;  %v1537_v49 = vmul.f32 %v2642_v56, %v4126_v28  ;;  %v4145_v59 = vsel %vm500_vm9, %v1645_v11, %v4094_v31  ;;  %v1632_v5 = vmul.f32 %v2655_v63, %v4056_v23 }
 0x2a9   : > { %5670 = vst [vmem:[#allocation18_spill] sm:$0xff] %v4130_v9  ;;  %v1678_v35 = vmul.f32 %v2660_v24, %v4145_v59  ;;  %v2658_v24 = vld [vmem:[%s5588_s3 + $0x138] sm:$0xff] }
 0x2aa   : > { %5671 = vst [vmem:[#allocation19_spill] sm:$0xff] %v4145_v59  ;;  %v1542_v48 = vadd.f32 %v1534_v14, %v4008_v62  ;;  %v1545_v54 = vadd.f32 %v1537_v49, %v1496_v30  ;;  %v2649_v62 = vld [vmem:[%s5588_s3 + $0xf0] sm:$0xff]  ;;  %v2650_v30 = vld [vmem:[%s5588_s3 + $0xf8] sm:$0xff] }
 0x2ab   : > { %v4152_v56 = vadd.f32 %v1678_v35, %v3847_v45  ;;  %v2657_v35 = vld [vmem:[%s5588_s3 + $0x130] sm:$0xff] }
 0x2ac   : > { %v1591_v9 = vadd.f32 %v1583_v42, %v1542_v48  ;;  %1889 = vrot.lane.b32.xlu1 %v3616_v32, %s2902_s14  ;;  %v1634_v59 = vmul.f32 %v2657_v35, %v4106_v18  ;;  %v2664_v35 = vld [vmem:[%s5588_s3 + $0x168] sm:$0xff] }
 0x2ad   : > { %1899 = vrot.lane.b32.xlu0 %v3684_v52, %s2902_s14  ;;  %1891 = vrot.lane.b32.xlu2 %v3660_v46, %s2902_s14 }
 0x2ae   : > { %v1557_v0 = vpop.permute.xlu1 %1556  ;;  %v4166_v45 = vadd.f32 %v1632_v5, %v1591_v9  ;;  %v2665_v5 = vld [vmem:[%s5588_s3 + $0x170] sm:$0xff] }
 0x2af   : > { %v4176_v14 = vsel %vm416_vm7, %v1557_v0, %v1561_v43  ;;  %v4181_v49 = vsel %vm416_vm7, %v3926_v29, %v1557_v0  ;;  %v4183_v63 = vpop.permute.xlu2 %1693  ;;  %v1651_v9 = vpop.permute.xlu0 %1650  ;;  %v1635_v29 = vmul.f32 %v2658_v24, %v4102_v3  ;;  %vm5710_vm7 = vmmov %vm5705_vm1 }
 0x2b0   : > { %5672 = vst [vmem:[#allocation20_spill] sm:$0xff] %v4176_v14  ;;  %v1585_v42 = vmul.f32 %v2649_v62, %v4181_v49  ;;  %v1586_v48 = vmul.f32 %v2650_v30, %v4176_v14  ;;  %v4193_v43 = vsel %vm500_vm9, %v1651_v9, %v4132_v44 }
 0x2b1   : > { %5673 = vst [vmem:[#allocation21_spill] sm:$0xff] %v4181_v49  ;;  %v1683_v62 = vmul.f32 %v2665_v5, %v4193_v43 }
 0x2b2   : > { %5674 = vst [vmem:[#allocation22_spill] sm:$0xff] %v4193_v43  ;;  %v1593_v0 = vadd.f32 %v1585_v42, %v1544_v2  ;;  %v1594_v28 = vadd.f32 %v1586_v48, %v1545_v54 }
 0x2b4   : > { %v1642_v39 = vadd.f32 %v1634_v59, %v1593_v0  ;;  %1895 = vrot.lane.b32.xlu1 %v3662_v47, %s2902_s14  ;;  %v1643_v30 = vadd.f32 %v1635_v29, %v1594_v28  ;;  %v2659_v59 = vld [vmem:[%s5588_s3 + $0x140] sm:$0xff] }
 0x2b5   : > { %1938 = vrot.lane.b32.xlu0 %v3616_v32, %s2903_s15  ;;  %1897 = vrot.lane.b32.xlu2 %v3640_v40, %s2902_s14 }
 0x2b6   : > { %v4207_v24 = vadd.f32 %v1683_v62, %v1642_v39  ;;  %v1647_v2 = vpop.permute.xlu1 %1646 }
 0x2b7   : > { %v4214_v28 = vsel %vm500_vm9, %v1647_v2, %v1651_v9  ;;  %v4216_v54 = vpop.permute.xlu2 %1699  ;;  %v1657_v42 = vpop.permute.xlu0 %1656  ;;  %v2662_v9 = vld [vmem:[%s5588_s3 + $0x158] sm:$0xff] }
 0x2b8   : > { %5675 = vst [vmem:[#allocation23_spill] sm:$0xff] %v4214_v28  ;;  %v1682_v48 = vmul.f32 %v2664_v35, %v4214_v28  ;;  %v4221_v5 = vsel %vm500_vm9, %v1657_v42, %v1645_v11  ;;  %v2661_v11 = vld [vmem:[%s5588_s3 + $0x150] sm:$0xff]  ;;  %v2667_v35 = vld [vmem:[%s5588_s3 + $0x180] sm:$0xff] }
 0x2b9   : > { %5676 = vst [vmem:[#allocation24_spill] sm:$0xff] %v4221_v5  ;;  %v1677_v39 = vmul.f32 %v2659_v59, %v4221_v5 }
 0x2ba   : > { %v1690_v29 = vadd.f32 %v1682_v48, %v4062_v4 }
 0x2bb   : > { %v1685_v0 = vadd.f32 %v1677_v39, %v3967_v16 }
 0x2bc   : > { %1901 = vrot.lane.b32.xlu1 %v3632_v33, %s2902_s14 }
 0x2bd   : > { %1944 = vrot.lane.b32.xlu0 %v3662_v47, %s2903_s15  ;;  %1903 = vrot.lane.b32.xlu2 %v3676_v50, %s2902_s14 }
 0x2be   : > { %v1653_v4 = vpop.permute.xlu1 %1652 }
 0x2bf   : > { %v4240_v16 = vsel %vm500_vm9, %v1653_v4, %v1657_v42  ;;  %v4245_v62 = vsel %vm500_vm9, %v4094_v31, %v1653_v4  ;;  %v1706_v59 = vpop.permute.xlu2 %1705  ;;  %v1696_v48 = vpop.permute.xlu0 %1695  ;;  %v2672_v42 = vld [vmem:[%s5588_s3 + $0x1a8] sm:$0xff] }
 0x2c0   : > { %5677 = vst [vmem:[#allocation25_spill] sm:$0xff] %v4240_v16  ;;  %v1679_v39 = vmul.f32 %v2661_v11, %v4245_v62  ;;  %v1680_v5 = vmul.f32 %v2662_v9, %v4240_v16  ;;  %v4258_v28 = vsel %vm542_vm10, %v1706_v59, %v4183_v63  ;;  %v4263_v31 = vsel %vm542_vm10, %v1696_v48, %v4216_v54 }
 0x2c1   : > { %5678 = vst [vmem:[#allocation26_spill] sm:$0xff] %v4245_v62  ;;  %v1726_v9 = vmul.f32 %v2667_v35, %v4258_v28  ;;  %v1731_v16 = vmul.f32 %v2672_v42, %v4263_v31  ;;  %v2670_v35 = vld [vmem:[%s5588_s3 + $0x198] sm:$0xff] }
 0x2c2   : > { %5679 = vst [vmem:[#allocation27_spill] sm:$0xff] %v4258_v28  ;;  %v1687_v4 = vadd.f32 %v1679_v39, %v3948_v1  ;;  %v1688_v11 = vadd.f32 %v1680_v5, %v3969_v7  ;;  %v2663_v1 = vld [vmem:[%s5588_s3 + $0x160] sm:$0xff]  ;;  %v2666_v7 = vld [vmem:[%s5588_s3 + $0x178] sm:$0xff] }
 0x2c3   : > { %5680 = vst [vmem:[#allocation28_spill] sm:$0xff] %v4263_v31  ;;  %v4269_v43 = vadd.f32 %v1726_v9, %v1685_v0  ;;  %v4273_v62 = vadd.f32 %v1731_v16, %v1690_v29 }
 0x2c4   : > { %1940 = vrot.lane.b32.xlu1 %v3660_v46, %s2903_s15 }
 0x2c5   : > { %1950 = vrot.lane.b32.xlu0 %v3632_v33, %s2903_s15  ;;  %1942 = vrot.lane.b32.xlu2 %v3618_v20, %s2903_s15 }
 0x2c6   : > { %v1659_v5 = vpop.permute.xlu1 %1658 }
 0x2c7   : > { %v4288_v29 = vsel %vm500_vm9, %v4132_v44, %v1659_v5  ;;  %v4292_v0 = vsel %vm500_vm9, %v1659_v5, %v1647_v2  ;;  %v4294_v16 = vpop.permute.xlu2 %1744  ;;  %v1702_v39 = vpop.permute.xlu0 %1701  ;;  %vm5712_vm9 = vcmp.lt.s32.totalorder %v3071_v13, 7 }
 0x2c8   : > { %5681 = vst [vmem:[#allocation29_spill] sm:$0xff] %v4288_v29  ;;  %v1681_v42 = vmul.f32 %v2663_v1, %v4292_v0  ;;  %v1684_v9 = vmul.f32 %v2666_v7, %v4288_v29  ;;  %v4303_v28 = vsel %vm542_vm10, %v1702_v39, %v1706_v59  ;;  %v2668_v59 = vld [vmem:[%s5588_s3 + $0x188] sm:$0xff] }
 0x2c9   : > { %5682 = vst [vmem:[#allocation30_spill] sm:$0xff] %v4292_v0  ;;  %v1729_v2 = vmul.f32 %v2670_v35, %v4303_v28  ;;  %v2671_v35 = vld [vmem:[%s5588_s3 + $0x1a0] sm:$0xff] }
 0x2ca   : > { %5683 = vst [vmem:[#allocation31_spill] sm:$0xff] %v4303_v28  ;;  %v1689_v44 = vadd.f32 %v1681_v42, %v4166_v45  ;;  %v1692_v31 = vadd.f32 %v1684_v9, %v1643_v30  ;;  %v2669_v45 = vld [vmem:[%s5588_s3 + $0x190] sm:$0xff] }
 0x2cb   : > { %v4307_v5 = vadd.f32 %v1729_v2, %v1688_v11 }
 0x2cc   : > { %1946 = vrot.lane.b32.xlu1 %v3640_v40, %s2903_s15 }
 0x2cd   : > { %1989 = vrot.lane.b32.xlu0 %v3660_v46, %s2904_s17  ;;  %1948 = vrot.lane.b32.xlu2 %v3684_v52, %s2903_s15 }
 0x2ce   : > { %v1698_v30 = vpop.permute.xlu1 %1697 }
 0x2cf   : > { %v4323_v11 = vsel %vm542_vm10, %v1698_v30, %v1702_v39  ;;  %v4328_v1 = vsel %vm542_vm10, %v4183_v63, %v1698_v30  ;;  %v4330_v7 = vpop.permute.xlu2 %1750  ;;  %v1708_v42 = vpop.permute.xlu0 %1707 }
 0x2d0   : > { %5684 = vst [vmem:[#allocation32_spill] sm:$0xff] %v4323_v11  ;;  %v1727_v9 = vmul.f32 %v2668_v59, %v4328_v1  ;;  %v1728_v2 = vmul.f32 %v2669_v45, %v4323_v11  ;;  %v4339_v39 = vsel %vm542_vm10, %v1708_v42, %v1696_v48  ;;  %v2673_v48 = vld [vmem:[%s5588_s3 + $0x1b0] sm:$0xff]  ;;  %v2679_v45 = vld [vmem:[%s5588_s3 + $0x1e0] sm:$0xff] }
 0x2d1   : > { %5685 = vst [vmem:[#allocation33_spill] sm:$0xff] %v4328_v1  ;;  %v1730_v63 = vmul.f32 %v2671_v35, %v4339_v39 }
 0x2d2   : > { %5686 = vst [vmem:[#allocation34_spill] sm:$0xff] %v4339_v39  ;;  %v1735_v28 = vadd.f32 %v1727_v9, %v4152_v56  ;;  %v1736_v0 = vadd.f32 %v1728_v2, %v1687_v4  ;;  %v2674_v56 = vld [vmem:[%s5588_s3 + $0x1b8] sm:$0xff] }
 0x2d3   : > { %v1738_v30 = vadd.f32 %v1730_v63, %v1689_v44 }
 0x2d4   : > { %1952 = vrot.lane.b32.xlu1 %v3676_v50, %s2903_s15 }
 0x2d5   : > { %1995 = vrot.lane.b32.xlu0 %v3640_v40, %s2904_s17  ;;  %1987 = vrot.lane.b32.xlu2 %v3616_v32, %s2904_s17 }
 0x2d6   : > { %v1704_v4 = vpop.permute.xlu1 %1703 }
 0x2d7   : > { %v4357_v44 = vsel %vm542_vm10, %v1704_v4, %v1708_v42  ;;  %v4362_v59 = vsel %vm542_vm10, %v4216_v54, %v1704_v4  ;;  %v1757_v35 = vpop.permute.xlu2 %1756  ;;  %v1747_v9 = vpop.permute.xlu0 %1746  ;;  %v2677_v42 = vld [vmem:[%s5588_s3 + $0x1d0] sm:$0xff]  ;;  %vm5713_vm10 = vmmov %vm5705_vm1 }
 0x2d8   : > { %5687 = vst [vmem:[#allocation35_spill] sm:$0xff] %v4357_v44  ;;  %v1732_v2 = vmul.f32 %v2673_v48, %v4362_v59  ;;  %v1733_v63 = vmul.f32 %v2674_v56, %v4357_v44  ;;  %v4375_v39 = vsel %vm584_vm11, %v1757_v35, %v4294_v16  ;;  %v4380_v54 = vsel %vm584_vm11, %v1747_v9, %v4330_v7 }
 0x2d9   : > { %5688 = vst [vmem:[#allocation36_spill] sm:$0xff] %v4362_v59  ;;  %v1779_v48 = vmul.f32 %v2679_v45, %v4375_v39  ;;  %v1777_v56 = vmul.f32 %v2677_v42, %v4380_v54 }
 0x2da   : > { %5689 = vst [vmem:[#allocation37_spill] sm:$0xff] %v4375_v39  ;;  %v1740_v4 = vadd.f32 %v1732_v2, %v4207_v24  ;;  %v1741_v11 = vadd.f32 %v1733_v63, %v1692_v31  ;;  %v2676_v24 = vld [vmem:[%s5588_s3 + $0x1c8] sm:$0xff] }
 0x2db   : > { %5690 = vst [vmem:[#allocation38_spill] sm:$0xff] %v4380_v54  ;;  %v4385_v59 = vadd.f32 %v1779_v48, %v1738_v30  ;;  %v4389_v44 = vadd.f32 %v1777_v56, %v1736_v0  ;;  %v2682_v30 = vld [vmem:[%s5588_s3 + $0x1f8] sm:$0xff] }
 0x2dc   : > { %1991 = vrot.lane.b32.xlu1 %v3618_v20, %s2904_s17 }
 0x2dd   : > { %2001 = vrot.lane.b32.xlu0 %v3676_v50, %s2904_s17  ;;  %1993 = vrot.lane.b32.xlu2 %v3662_v47, %s2904_s17 }
 0x2de   : > { %v1743_v31 = vpop.permute.xlu1 %1742 }
 0x2df   : > { %v4403_v45 = vsel %vm584_vm11, %v1743_v31, %v1747_v9  ;;  %v4405_v0 = vpop.permute.xlu2 %1795  ;;  %v1753_v2 = vpop.permute.xlu0 %1752  ;;  %v2680_v9 = vld [vmem:[%s5588_s3 + $0x1e8] sm:$0xff] }
 0x2e0   : > { %5691 = vst [vmem:[#allocation39_spill] sm:$0xff] %v4403_v45  ;;  %v1776_v63 = vmul.f32 %v2676_v24, %v4403_v45  ;;  %v4410_v42 = vsel %vm584_vm11, %v1753_v2, %v1757_v35  ;;  %v2681_v35 = vld [vmem:[%s5588_s3 + $0x1f0] sm:$0xff] }
 0x2e1   : > { %5692 = vst [vmem:[#allocation40_spill] sm:$0xff] %v4410_v42  ;;  %v1782_v48 = vmul.f32 %v2682_v30, %v4410_v42 }
 0x2e2   : > { %v1784_v56 = vadd.f32 %v1776_v63, %v1735_v28  ;;  %v2684_v63 = vld [vmem:[%s5588_s3 + $0x208] sm:$0xff] }
 0x2e3   : > { %v4413_v54 = vadd.f32 %v1782_v48, %v1741_v11 }
 0x2e4   : > { %1997 = vrot.lane.b32.xlu1 %v3684_v52, %s2904_s17 }
 0x2e5   : > { %2065 = vrot.lane.b32.xlu0 %v3618_v20, %s2905_s20  ;;  %1999 = vrot.lane.b32.xlu2 %v3632_v33, %s2904_s17 }
 0x2e6   : > { %v1749_v28 = vpop.permute.xlu1 %1748 }
 0x2e7   : > { %v4429_v11 = vsel %vm584_vm11, %v1749_v28, %v1753_v2  ;;  %v4434_v24 = vsel %vm584_vm11, %v4294_v16, %v1749_v28  ;;  %v4436_v30 = vpop.permute.xlu2 %1801  ;;  %v1792_v48 = vpop.permute.xlu0 %1791 }
 0x2e8   : > { %5693 = vst [vmem:[#allocation41_spill] sm:$0xff] %v4429_v11  ;;  %v1780_v42 = vmul.f32 %v2680_v9, %v4434_v24  ;;  %v1781_v45 = vmul.f32 %v2681_v35, %v4429_v11  ;;  %v4446_v2 = vsel %vm626_vm12, %v1792_v48, %v4405_v0  ;;  %v2675_v9 = vld [vmem:[%s5588_s3 + $0x1c0] sm:$0xff]  ;;  %v2689_v35 = vld [vmem:[%s5588_s3 + $0x230] sm:$0xff] }
 0x2e9   : > { %5694 = vst [vmem:[#allocation42_spill] sm:$0xff] %v4434_v24  ;;  %v1825_v28 = vmul.f32 %v2684_v63, %v4446_v2 }
 0x2ea   : > { %5695 = vst [vmem:[#allocation43_spill] sm:$0xff] %v4446_v2  ;;  %v1788_v39 = vadd.f32 %v1780_v42, %v4273_v62  ;;  %v1789_v16 = vadd.f32 %v1781_v45, %v1740_v4  ;;  %v2678_v62 = vld [vmem:[%s5588_s3 + $0x1d8] sm:$0xff] }
 0x2eb   : > { %v4450_v1 = vadd.f32 %v1825_v28, %v1784_v56 }
 0x2ec   : > { %2061 = vrot.lane.b32.xlu1 %v3616_v32, %s2905_s20 }
 0x2ed   : > { %2071 = vrot.lane.b32.xlu0 %v3684_v52, %s2905_s20  ;;  %2063 = vrot.lane.b32.xlu2 %v3660_v46, %s2905_s20 }
 0x2ee   : > { %v1755_v4 = vpop.permute.xlu1 %1754 }
 0x2ef   : > { %v4467_v45 = vsel %vm584_vm11, %v4330_v7, %v1755_v4  ;;  %v4471_v42 = vsel %vm584_vm11, %v1755_v4, %v1743_v31  ;;  %v4473_v56 = vpop.permute.xlu2 %1840  ;;  %v1798_v63 = vpop.permute.xlu0 %1797  ;;  %vm5714_vm11 = vmmov %vm5705_vm1 }
 0x2f0   : > { %5696 = vst [vmem:[#allocation44_spill] sm:$0xff] %v4467_v45  ;;  %v1775_v28 = vmul.f32 %v2675_v9, %v4471_v42  ;;  %v1778_v24 = vmul.f32 %v2678_v62, %v4467_v45  ;;  %v4483_v7 = vsel %vm626_vm12, %v1798_v63, %v4436_v30  ;;  %v2688_v9 = vld [vmem:[%s5588_s3 + $0x228] sm:$0xff] }
 0x2f1   : > { %5697 = vst [vmem:[#allocation45_spill] sm:$0xff] %v4471_v42  ;;  %v1830_v4 = vmul.f32 %v2689_v35, %v4483_v7 }
 0x2f2   : > { %5698 = vst [vmem:[#allocation46_spill] sm:$0xff] %v4483_v7  ;;  %v1783_v11 = vadd.f32 %v1775_v28, %v4269_v43  ;;  %v1786_v31 = vadd.f32 %v1778_v24, %v4307_v5  ;;  %v2683_v5 = vld [vmem:[%s5588_s3 + $0x200] sm:$0xff] }
 0x2f3   : > { %v4488_v2 = vadd.f32 %v1830_v4, %v1789_v16 }
 0x2f4   : > { %2067 = vrot.lane.b32.xlu1 %v3662_v47, %s2905_s20 }
 0x2f5   : > { %2110 = vrot.lane.b32.xlu0 %v3616_v32, %s2906_s21  ;;  %2069 = vrot.lane.b32.xlu2 %v3640_v40, %s2905_s20 }
 0x2f6   : > { %v1794_v43 = vpop.permute.xlu1 %1793 }
 0x2f7   : > { %v4504_v24 = vsel %vm626_vm12, %v1794_v43, %v1798_v63  ;;  %v4506_v16 = vpop.permute.xlu2 %1846  ;;  %v1804_v62 = vpop.permute.xlu0 %1803  ;;  %v2685_v63 = vld [vmem:[%s5588_s3 + $0x210] sm:$0xff] }
 0x2f8   : > { %5699 = vst [vmem:[#allocation47_spill] sm:$0xff] %v4504_v24  ;;  %v1829_v35 = vmul.f32 %v2688_v9, %v4504_v24  ;;  %v4511_v28 = vsel %vm626_vm12, %v1804_v62, %v1792_v48  ;;  %v2686_v48 = vld [vmem:[%s5588_s3 + $0x218] sm:$0xff] }
 0x2f9   : > { %5700 = vst [vmem:[#allocation48_spill] sm:$0xff] %v4511_v28  ;;  %v1824_v4 = vmul.f32 %v2683_v5, %v4511_v28  ;;  %v2691_v5 = vld [vmem:[%s5588_s3 + $0x240] sm:$0xff] }
 0x2fa   : > { %v1837_v42 = vadd.f32 %v1829_v35, %v1788_v39 }
 0x2fb   : > { %v1832_v45 = vadd.f32 %v1824_v4, %v1783_v11  ;;  %v2696_v4 = vld [vmem:[%s5588_s3 + $0x268] sm:$0xff] }
 0x2fc   : > { %2073 = vrot.lane.b32.xlu1 %v3632_v33, %s2905_s20 }
 0x2fd   : > { %2116 = vrot.lane.b32.xlu0 %v3662_v47, %s2906_s21  ;;  %2075 = vrot.lane.b32.xlu2 %v3676_v50, %s2905_s20 }
 0x2fe   : > { %v1800_v9 = vpop.permute.xlu1 %1799 }
 0x2ff   : > { %v4528_v39 = vsel %vm626_vm12, %v1800_v9, %v1804_v62  ;;  %v4533_v11 = vsel %vm626_vm12, %v4405_v0, %v1800_v9  ;;  %v1853_v35 = vpop.permute.xlu2 %1852  ;;  %v1843_v28 = vpop.permute.xlu0 %1842 }
 0x300   : > { %5701 = vst [vmem:[#allocation49_spill] sm:$0xff] %v4528_v39  ;;  %v1826_v24 = vmul.f32 %v2685_v63, %v4533_v11  ;;  %v1827_v62 = vmul.f32 %v2686_v48, %v4528_v39  ;;  %v1862_v7 = vsel %vm668_vm13, %v1853_v35, %v4473_v56  ;;  %v1861_v0 = vsel %vm668_vm13, %v1843_v28, %v4506_v16 }
 0x301   : > { %5702 = vst [vmem:[#allocation50_spill] sm:$0xff] %v4533_v11  ;;  %v1873_v14 = vmul.f32 %v2691_v5, %v1862_v7  ;;  %v1878_v49 = vmul.f32 %v2696_v4, %v1861_v0 }
 0x302   : > { %v1834_v9 = vadd.f32 %v1826_v24, %v4389_v44  ;;  %v1835_v29 = vadd.f32 %v1827_v62, %v1786_v31  ;;  %v2687_v44 = vld [vmem:[%s5588_s3 + $0x220] sm:$0xff]  ;;  %v2694_v31 = vld [vmem:[%s5588_s3 + $0x258] sm:$0xff] }
 0x303   : > { %v4550_v3 = vadd.f32 %v1873_v14, %v1832_v45  ;;  %v4552_v18 = vadd.f32 %v1878_v49, %v1837_v42  ;;  %v2690_v14 = vld [vmem:[%s5588_s3 + $0x238] sm:$0xff] }
 0x304   : > { %2112 = vrot.lane.b32.xlu1 %v3660_v46, %s2906_s21 }
 0x305   : > { %2122 = vrot.lane.b32.xlu0 %v3632_v33, %s2906_s21  ;;  %2114 = vrot.lane.b32.xlu2 %v3618_v20, %s2906_s21 }
 0x306   : > { %v1806_v45 = vpop.permute.xlu1 %1805 }
 0x307   : > { %v4569_v49 = vsel %vm626_vm12, %v4436_v30, %v1806_v45  ;;  %v4573_v42 = vsel %vm626_vm12, %v1806_v45, %v1794_v43  ;;  %v4575_v7 = vpop.permute.xlu2 %1891  ;;  %v1849_v24 = vpop.permute.xlu0 %1848  ;;  %vm5715_vm12 = vmmov %vm5712_vm9 }
 0x308   : > { %5703 = vst [vmem:[#allocation51_spill] sm:$0xff] %v4569_v49  ;;  %v1828_v63 = vmul.f32 %v2687_v44, %v4573_v42  ;;  %v1831_v48 = vmul.f32 %v2690_v14, %v4569_v49  ;;  %v1856_v5 = vsel %vm668_vm13, %v1849_v24, %v1853_v35  ;;  %v2692_v35 = vld [vmem:[%s5588_s3 + $0x248] sm:$0xff] }
 0x309   : > { %5704 = vst [vmem:[#allocation52_spill] sm:$0xff] %v4573_v42  ;;  %v1876_v43 = vmul.f32 %v2694_v31, %v1856_v5 }
 0x30a   : > { %v1836_v30 = vadd.f32 %v1828_v63, %v4385_v59  ;;  %v1839_v4 = vadd.f32 %v1831_v48, %v4413_v54  ;;  %v2693_v59 = vld [vmem:[%s5588_s3 + $0x250] sm:$0xff] }
 0x30b   : > { %v4586_v62 = vadd.f32 %v1876_v43, %v1835_v29  ;;  %v2695_v29 = vld [vmem:[%s5588_s3 + $0x260] sm:$0xff] }
 0x30c   : > { %2118 = vrot.lane.b32.xlu1 %v3640_v40, %s2906_s21 }
 0x30d   : > { %2161 = vrot.lane.b32.xlu0 %v3660_v46, %s2907_s22  ;;  %2120 = vrot.lane.b32.xlu2 %v3684_v52, %s2906_s21 }
 0x30e   : > { %v1845_v54 = vpop.permute.xlu1 %1844 }
 0x30f   : > { %v1858_v0 = vsel %vm668_vm13, %v1845_v54, %v1849_v24  ;;  %v1860_v44 = vsel %vm668_vm13, %v4473_v56, %v1845_v54  ;;  %v4608_v14 = vpop.permute.xlu2 %1897  ;;  %v1855_v45 = vpop.permute.xlu0 %1854  ;;  %v2697_v56 = vld [vmem:[%s5588_s3 + $0x270] sm:$0xff] }
 0x310   : > { %v1874_v31 = vmul.f32 %v2692_v35, %v1860_v44  ;;  %v1875_v63 = vmul.f32 %v2693_v59, %v1858_v0  ;;  %v1863_v48 = vsel %vm668_vm13, %v1855_v45, %v1843_v28  ;;  %v2698_v28 = vld [vmem:[%s5588_s3 + $0x278] sm:$0xff]  ;;  %v2701_v24 = vld [vmem:[%s5588_s3 + $0x290] sm:$0xff] }
 0x311   : > { %v1877_v5 = vmul.f32 %v2695_v29, %v1863_v48 }
 0x312   : > { %v1882_v43 = vadd.f32 %v1874_v31, %v4450_v1  ;;  %v1883_v39 = vadd.f32 %v1875_v63, %v1834_v9  ;;  %v2703_v9 = vld [vmem:[%s5588_s3 + $0x2a0] sm:$0xff] }
 0x313   : > { %v1885_v49 = vadd.f32 %v1877_v5, %v1836_v30 }
 0x314   : > { %2124 = vrot.lane.b32.xlu1 %v3676_v50, %s2906_s21 }
 0x315   : > { %2167 = vrot.lane.b32.xlu0 %v3640_v40, %s2907_s22  ;;  %2159 = vrot.lane.b32.xlu2 %v3616_v32, %s2907_s22 }
 0x316   : > { %v1851_v1 = vpop.permute.xlu1 %1850 }
 0x317   : > { %v1857_v30 = vsel %vm668_vm13, %v1851_v1, %v1855_v45  ;;  %v1859_v35 = vsel %vm668_vm13, %v4506_v16, %v1851_v1  ;;  %v1904_v59 = vpop.permute.xlu2 %1903  ;;  %v1894_v54 = vpop.permute.xlu0 %1893  ;;  %vm5716_vm13 = vmmov %vm5712_vm9 }
 0x318   : > { %v1879_v29 = vmul.f32 %v2697_v56, %v1859_v35  ;;  %v1880_v0 = vmul.f32 %v2698_v28, %v1857_v30  ;;  %v1912_v44 = vsel %vm5705_vm1, %v1904_v59, %v4575_v7  ;;  %v1907_v31 = vsel %vm5706_vm2, %v1894_v54, %v4608_v14  ;;  %v2700_v56 = vld [vmem:[%s5588_s3 + $0x288] sm:$0xff]  ;;  %vm5717_vm1 = vmmov %vm5712_vm9 }
 0x319   : > { %v1926_v63 = vmul.f32 %v2703_v9, %v1912_v44  ;;  %v1924_v48 = vmul.f32 %v2701_v24, %v1907_v31  ;;  %vm5718_vm2 = vmmov %vm5717_vm1 }
 0x31a   : > { %v1887_v45 = vadd.f32 %v1879_v29, %v4488_v2  ;;  %v1888_v5 = vadd.f32 %v1880_v0, %v1839_v4  ;;  %v2706_v2 = vld [vmem:[%s5588_s3 + $0x2b8] sm:$0xff]  ;;  %v2708_v29 = vld [vmem:[%s5588_s3 + $0x2c8] sm:$0xff] }
 0x31b   : > { %v4643_v42 = vadd.f32 %v1926_v63, %v1885_v49  ;;  %v4645_v16 = vadd.f32 %v1924_v48, %v1883_v39 }
 0x31c   : > { %2163 = vrot.lane.b32.xlu1 %v3618_v20, %s2907_s22 }
 0x31d   : > { %2173 = vrot.lane.b32.xlu0 %v3676_v50, %s2907_s22  ;;  %2165 = vrot.lane.b32.xlu2 %v3662_v47, %s2907_s22 }
 0x31e   : > { %v1890_v28 = vpop.permute.xlu1 %1889 }
 0x31f   : > { %v1909_v39 = vsel %vm5707_vm4, %v1890_v28, %v1894_v54  ;;  %v4661_v49 = vpop.permute.xlu2 %1942  ;;  %v1900_v4 = vpop.permute.xlu0 %1899  ;;  %v2704_v54 = vld [vmem:[%s5588_s3 + $0x2a8] sm:$0xff]  ;;  %vm5719_vm4 = vmmov %vm5717_vm1 }
 0x320   : > { %v1923_v1 = vmul.f32 %v2700_v56, %v1909_v39  ;;  %v1906_v9 = vsel %vm5708_vm6, %v1900_v4, %v1904_v59  ;;  %v2705_v59 = vld [vmem:[%s5588_s3 + $0x2b0] sm:$0xff]  ;;  %vm5720_vm6 = vcmp.lt.s32.totalorder %v3071_v13, 1 }
 0x321   : > { %v1929_v24 = vmul.f32 %v2706_v2, %v1906_v9 }
 0x322   : > { %v1931_v30 = vadd.f32 %v1923_v1, %v1882_v43 }
 0x323   : > { %v4665_v35 = vadd.f32 %v1929_v24, %v1888_v5 }
 0x324   : > { %2169 = vrot.lane.b32.xlu1 %v3684_v52, %s2907_s22 }
 0x325   : > { %2212 = vrot.lane.b32.xlu0 %v3618_v20, %s5709_s13  ;;  %2171 = vrot.lane.b32.xlu2 %v3632_v33, %s2907_s22 }
 0x326   : > { %v1896_v43 = vpop.permute.xlu1 %1895 }
 0x327   : > { %v1908_v0 = vsel %vm5710_vm7, %v1896_v43, %v1900_v4  ;;  %v1910_v44 = vsel %vm5711_vm8, %v4575_v7, %v1896_v43  ;;  %v4687_v31 = vpop.permute.xlu2 %1948  ;;  %v1939_v63 = vpop.permute.xlu0 %1938  ;;  %v2699_v7 = vld [vmem:[%s5588_s3 + $0x280] sm:$0xff]  ;;  %v2713_v4 = vld [vmem:[%s5588_s3 + $0x2f0] sm:$0xff]  ;;  %vm5721_vm7 = vmmov %vm5720_vm6 }
 0x328   : > { %v1927_v48 = vmul.f32 %v2704_v54, %v1910_v44  ;;  %v1928_v5 = vmul.f32 %v2705_v59, %v1908_v0  ;;  %v1958_v56 = vsel %vm5712_vm9, %v1939_v63, %v4661_v49  ;;  %vm5722_vm8 = vmmov %vm5717_vm1 }
 0x329   : > { %v1972_v2 = vmul.f32 %v2708_v29, %v1958_v56  ;;  %v2510_v56 = vld [vmem:[#allocation3] sm:$0x1]  ;;  %vm5723_vm9 = vmmov %vm5717_vm1 }
 0x32a   : > { %v1935_v39 = vadd.f32 %v1927_v48, %v4552_v18  ;;  %v1936_v1 = vadd.f32 %v1928_v5, %v1887_v45  ;;  %v2702_v18 = vld [vmem:[%s5588_s3 + $0x298] sm:$0xff] }
 0x32b   : > { %v4693_v9 = vadd.f32 %v1972_v2, %v1931_v30 }
 0x32c   : > { %2208 = vrot.lane.b32.xlu1 %v3616_v32, %s5709_s13 }
 0x32d   : > { %2218 = vrot.lane.b32.xlu0 %v3684_v52, %s5709_s13  ;;  %2210 = vrot.lane.b32.xlu2 %v3660_v46, %s5709_s13 }
 0x32e   : > { %v1902_v45 = vpop.permute.xlu1 %1901 }
 0x32f   : > { %v1905_v24 = vsel %vm5713_vm10, %v4608_v14, %v1902_v45  ;;  %v1911_v30 = vsel %vm5714_vm11, %v1902_v45, %v1890_v28  ;;  %v4715_v54 = vpop.permute.xlu2 %1987  ;;  %v1945_v59 = vpop.permute.xlu0 %1944  ;;  %v2712_v14 = vld [vmem:[%s5588_s3 + $0x2e8] sm:$0xff]  ;;  %vm5724_vm10 = vmmov %vm5720_vm6 }
 0x330   : > { %v1922_v43 = vmul.f32 %v2699_v7, %v1911_v30  ;;  %v1925_v29 = vmul.f32 %v2702_v18, %v1905_v24  ;;  %v1957_v0 = vsel %vm5715_vm12, %v1945_v59, %v4687_v31  ;;  %vm5725_vm11 = vmmov %vm5720_vm6 }
 0x331   : > { %v1977_v44 = vmul.f32 %v2713_v4, %v1957_v0  ;;  %vm5726_vm12 = vmmov %vm5720_vm6 }
 0x332   : > { %v1930_v48 = vadd.f32 %v1922_v43, %v4550_v3  ;;  %v1933_v5 = vadd.f32 %v1925_v29, %v4586_v62  ;;  %v2707_v3 = vld [vmem:[%s5588_s3 + $0x2c0] sm:$0xff]  ;;  %v2710_v43 = vld [vmem:[%s5588_s3 + $0x2d8] sm:$0xff] }
 0x333   : > { %v4722_v2 = vadd.f32 %v1977_v44, %v1936_v1 }
 0x334   : > { %2214 = vrot.lane.b32.xlu1 %v3662_v47, %s5709_s13 }
 0x335   : > { %2513 = vperm.xlu0 %2865, %v2510_v56   ;;  %2216 = vrot.lane.b32.xlu2 %v3640_v40, %s5709_s13 }
 0x336   : > { %v1941_v28 = vpop.permute.xlu1 %1940 }
 0x337   : > { %v1959_v62 = vsel %vm5716_vm13, %v1941_v28, %v1945_v59  ;;  %v4736_v1 = vpop.permute.xlu2 %1993  ;;  %v1951_v7 = vpop.permute.xlu0 %1950  ;;  %v2709_v59 = vld [vmem:[%s5588_s3 + $0x2d0] sm:$0xff]  ;;  %vm5727_vm13 = vmmov %vm5720_vm6 }
 0x338   : > { %v1976_v18 = vmul.f32 %v2712_v14, %v1959_v62  ;;  %v1960_v45 = vsel %vm5717_vm1, %v1951_v7, %v1939_v63  ;;  %v2715_v63 = vld [vmem:[%s5588_s3 + $0x300] sm:$0xff]  ;;  %vm5728_vm1 = vmmov %vm5720_vm6 }
 0x339   : > { %v1971_v4 = vmul.f32 %v2707_v3, %v1960_v45 }
 0x33a   : > { %v1984_v24 = vadd.f32 %v1976_v18, %v1935_v39  ;;  %v2720_v39 = vld [vmem:[%s5588_s3 + $0x328] sm:$0xff] }
 0x33b   : > { %v1979_v30 = vadd.f32 %v1971_v4, %v1930_v48 }
 0x33c   : > { %2220 = vrot.lane.b32.xlu1 %v3632_v33, %s5709_s13 }
 0x33d   : > { %2222 = vrot.lane.b32.xlu2 %v3676_v50, %s5709_s13 }
 0x33e   : > { %v1947_v29 = vpop.permute.xlu1 %1946 }
 0x33f   : > { %v1954_v0 = vsel %vm5718_vm2, %v1947_v29, %v1951_v7  ;;  %v1956_v44 = vsel %vm5719_vm4, %v4661_v49, %v1947_v29  ;;  %v2000_v48 = vpop.permute.xlu2 %1999  ;;  %v1990_v56 = vpop.permute.xlu0 %1989  ;;  %vm5729_vm2 = vmmov %vm5728_vm1  ;;  %vm5730_vm4 = vcmp.lt.s32.totalorder %v3071_v13, 127 }
 0x340   : > { %v1973_v14 = vmul.f32 %v2709_v59, %v1956_v44  ;;  %v1974_v3 = vmul.f32 %v2710_v43, %v1954_v0  ;;  %v2009_v62 = vsel %vm5720_vm6, %v2000_v48, %v4715_v54  ;;  %v2008_v18 = vsel %vm5721_vm7, %v1990_v56, %v4736_v1  ;;  %v2711_v59 = vld [vmem:[%s5588_s3 + $0x2e0] sm:$0xff]  ;;  %v2714_v43 = vld [vmem:[%s5588_s3 + $0x2f8] sm:$0xff]  ;;  %vm5731_vm6 = vmmov %vm5730_vm4 }
 0x341   : > { %v2020_v45 = vmul.f32 %v2715_v63, %v2009_v62  ;;  %v2025_v4 = vmul.f32 %v2720_v39, %v2008_v18  ;;  %v2718_v63 = vld [vmem:[%s5588_s3 + $0x318] sm:$0xff]  ;;  %vm5732_vm7 = vmmov %vm5730_vm4 }
 0x342   : > { %v1981_v7 = vadd.f32 %v1973_v14, %v4645_v16  ;;  %v1982_v11 = vadd.f32 %v1974_v3, %v1933_v5 }
 0x343   : > { %v4768_v19 = vadd.f32 %v2020_v45, %v1979_v30  ;;  %v4770_v49 = vadd.f32 %v2025_v4, %v1984_v24 }
 0x346   : > { %v1953_v29 = vpop.permute.xlu1 %1952 }
 0x347   : > { %v1955_v16 = vsel %vm5722_vm8, %v4687_v31, %v1953_v29  ;;  %v1961_v5 = vsel %vm5723_vm9, %v1953_v29, %v1941_v28  ;;  %v4786_v24 = vpop.permute.xlu2 %2063  ;;  %v1996_v30 = vpop.permute.xlu0 %1995  ;;  %v2716_v31 = vld [vmem:[%s5588_s3 + $0x308] sm:$0xff]  ;;  %v2717_v28 = vld [vmem:[%s5588_s3 + $0x310] sm:$0xff]  ;;  %vm5734_vm8 = vmmov %vm5730_vm4 }
 0x348   : > { %v1975_v39 = vmul.f32 %v2711_v59, %v1961_v5  ;;  %v1978_v0 = vmul.f32 %v2714_v43, %v1955_v16  ;;  %v2003_v44 = vsel %vm5724_vm10, %v1996_v30, %v2000_v48  ;;  %v2719_v48 = vld [vmem:[%s5588_s3 + $0x320] sm:$0xff]  ;;  %vm5735_vm9 = vmmov %vm5730_vm4 }
 0x349   : > { %v2023_v14 = vmul.f32 %v2718_v63, %v2003_v44  ;;  %vm5738_vm10 = vmmov %vm5730_vm4 }
 0x34a   : > { %v1983_v3 = vadd.f32 %v1975_v39, %v4643_v42  ;;  %v1986_v62 = vadd.f32 %v1978_v0, %v4665_v35  ;;  %v2722_v0 = vld [vmem:[%s5588_s3 + $0x338] sm:$0xff] }
 0x34b   : > { %v4792_v18 = vadd.f32 %v2023_v14, %v1982_v11  ;;  %v2730_v14 = vld [vmem:[%s5588_s3 + $0x378] sm:$0xff] }
 0x34e   : > { %v1992_v45 = vpop.permute.xlu1 %1991 }
 0x34f   : > { %v2005_v42 = vsel %vm5725_vm11, %v1992_v45, %v1996_v30  ;;  %v2007_v11 = vsel %vm5726_vm12, %v4715_v54, %v1992_v45  ;;  %v4808_v35 = vpop.permute.xlu2 %2069  ;;  %v2002_v4 = vpop.permute.xlu0 %2001  ;;  %v2724_v30 = vld [vmem:[%s5588_s3 + $0x348] sm:$0xff]  ;;  %v2721_v54 = vld [vmem:[%s5588_s3 + $0x330] sm:$0xff]  ;;  %vm5739_vm11 = vmmov %vm5730_vm4  ;;  %vm5766_vm12 = vcmp.lt.s32.totalorder %v3071_v13, 121 }
 0x350   : > { %v2021_v59 = vmul.f32 %v2716_v31, %v2007_v11  ;;  %v2022_v43 = vmul.f32 %v2717_v28, %v2005_v42  ;;  %v2010_v29 = vsel %vm5727_vm13, %v2002_v4, %v1990_v56  ;;  %v2046_v31 = vmul.f32 %v3618_v20, %v2724_v30  ;;  %v2738_v11 = vld [vmem:[%s5588_s3 + $0x3b8] sm:$0xff]  ;;  %v2723_v30 = vld [vmem:[%s5588_s3 + $0x340] sm:$0xff]  ;;  %vm5767_vm13 = vmmov %vm5766_vm12 }
 0x351   : > { %v2024_v63 = vmul.f32 %v2719_v48, %v2010_v29  ;;  %v2052_v29 = vmul.f32 %v3676_v50, %v2730_v14 }
 0x352   : > { %v2029_v16 = vadd.f32 %v2021_v59, %v4693_v9  ;;  %v4813_v5 = vadd.f32 %v2022_v43, %v1981_v7  ;;  %v2732_v9 = vld [vmem:[%s5588_s3 + $0x388] sm:$0xff] }
 0x353   : > { %v2032_v39 = vadd.f32 %v2024_v63, %v1983_v3 }
 0x356   : > { %v1998_v44 = vpop.permute.xlu1 %1997 }
 0x357   : > { %v2004_v56 = vsel %vm5728_vm1, %v1998_v44, %v2002_v4  ;;  %v2006_v7 = vsel %vm5729_vm2, %v4736_v1, %v1998_v44  ;;  %v4835_v3 = vpop.permute.xlu2 %2075  ;;  %v2066_v28 = vpop.permute.xlu0 %2065  ;;  %v2054_v4 = vadd.f32 %v2046_v31, %v2029_v16  ;;  %v2731_v44 = vld [vmem:[%s5588_s3 + $0x380] sm:$0xff]  ;;  %vm5785_vm1 = vmmov %vm5730_vm4 }
 0x358   : > { %v2026_v45 = vmul.f32 %v2721_v54, %v2006_v7  ;;  %v2027_v48 = vmul.f32 %v2722_v0, %v2004_v56  ;;  %v2079_v42 = vsel %vm5730_vm4, %v2066_v28, %v4808_v35  ;;  %v2084_v1 = vsel %vm5731_vm6, %v4835_v3, %v4786_v24  ;;  %vm5786_vm2 = vmmov %vm5766_vm12 }
 0x359   : > { %v2095_v59 = vmul.f32 %v2732_v9, %v2079_v42  ;;  %v2101_v0 = vmul.f32 %v2738_v11, %v2084_v1  ;;  %vm5795_vm4 = vmmov %vm5786_vm2 }
 0x35a   : > { %v4849_v20 = vadd.f32 %v2026_v45, %v4722_v2  ;;  %v2035_v43 = vadd.f32 %v2027_v48, %v1986_v62  ;;  %v2045_v2 = vmul.f32 %v3616_v32, %v2723_v30  ;;  %v2727_v45 = vld [vmem:[%s5588_s3 + $0x360] sm:$0xff]  ;;  %v2728_v32 = vld [vmem:[%s5588_s3 + $0x368] sm:$0xff]  ;;  %vm5798_vm6 = vmmov %vm5786_vm2 }
 0x35b   : > { %v4852_v63 = vadd.f32 %v2095_v59, %v2054_v4  ;;  %v2736_v48 = vld [vmem:[%s5588_s3 + $0x3a8] sm:$0xff]  ;;  %v2049_v11 = vmul.f32 %v3660_v46, %v2727_v45 }
 0x35c   : > { %v2060_v54 = vadd.f32 %v2052_v29, %v2035_v43  ;;  %v2053_v7 = vadd.f32 %v2045_v2, %v4768_v19  ;;  %v2050_v19 = vmul.f32 %v3662_v47, %v2728_v32 }
 0x35d   : > { %v2057_v29 = vadd.f32 %v2049_v11, %v2032_v39  ;;  %v2733_v39 = vld [vmem:[%s5588_s3 + $0x390] sm:$0xff] }
 0x35e   : > { %v4860_v16 = vadd.f32 %v2101_v0, %v2060_v54  ;;  %v2062_v9 = vpop.permute.xlu1 %2061  ;;  %v2058_v30 = vadd.f32 %v2050_v19, %v4770_v49  ;;  %v2734_v49 = vld [vmem:[%s5588_s3 + $0x398] sm:$0xff] }
 0x35f   : > { %v2081_v50 = vsel %vm5732_vm7, %v2062_v9, %v2066_v28  ;;  %v4865_v62 = vpop.permute.xlu2 %2114  ;;  %v4867_v56 = vpop.permute.xlu0 %2071  ;;  %v2735_v28 = vld [vmem:[%s5588_s3 + $0x3a0] sm:$0xff]  ;;  %vm5799_vm7 = vmmov %vm5786_vm2 }
 0x360   : > { %v2094_v14 = vmul.f32 %v2731_v44, %v2081_v50  ;;  %v2725_v44 = vld [vmem:[%s5588_s3 + $0x350] sm:$0xff] }
 0x361   : > { %v2047_v2 = vmul.f32 %v3640_v40, %v2725_v44  ;;  %v2779_v44 = vld [vmem:[%s5588_s3 + $0x500] sm:$0xff] }
 0x362   : > { %v4870_v31 = vadd.f32 %v2094_v14, %v2053_v7 }
 0x364   : > { %5733 = vst [vmem:[#allocation53_spill] sm:$0xff] %v4870_v31 }
 0x366   : > { %v2068_v42 = vpop.permute.xlu1 %2067 }
 0x367   : > { %v2080_v1 = vsel %vm5734_vm8, %v2068_v42, %v4867_v56  ;;  %v2082_v4 = vsel %vm5735_vm9, %v4786_v24, %v2068_v42  ;;  %v4892_v59 = vpop.permute.xlu2 %2120  ;;  %v4894_v43 = vpop.permute.xlu0 %2110  ;;  %v2726_v24 = vld [vmem:[%s5588_s3 + $0x358] sm:$0xff]  ;;  %vm5804_vm8 = vmmov %vm5786_vm2 }
 0x368   : > { %v2098_v54 = vmul.f32 %v2735_v28, %v2082_v4  ;;  %v2099_v47 = vmul.f32 %v2736_v48, %v2080_v1  ;;  %v2048_v50 = vmul.f32 %v3632_v33, %v2726_v24  ;;  %v2055_v48 = vadd.f32 %v2047_v2, %v4813_v5  ;;  %v2772_v5 = vld [vmem:[%s5588_s3 + $0x4c8] sm:$0xff]  ;;  %v2771_v24 = vld [vmem:[%s5588_s3 + $0x4c0] sm:$0xff]  ;;  %vm5807_vm9 = vmmov %vm5786_vm2 }
 0x369   : > { %v2764_v2 = vld [vmem:[%s5588_s3 + $0x488] sm:$0xff] }
 0x36a   : > { %v4897_v0 = vadd.f32 %v2098_v54, %v2057_v29  ;;  %v4899_v46 = vadd.f32 %v2099_v47, %v2058_v30  ;;  %v2056_v19 = vadd.f32 %v2048_v50, %v4792_v18  ;;  %v2766_v18 = vld [vmem:[%s5588_s3 + $0x498] sm:$0xff]  ;;  %v2729_v54 = vld [vmem:[%s5588_s3 + $0x370] sm:$0xff]  ;;  %v2763_v47 = vld [vmem:[%s5588_s3 + $0x480] sm:$0xff] }
 0x36b   : > { %v2765_v50 = vld [vmem:[%s5588_s3 + $0x490] sm:$0xff]  ;;  %v5012_v31 = vmul.f32 %v3684_v52, %v2729_v54  ;;  %v2770_v52 = vld [vmem:[%s5588_s3 + $0x4b8] sm:$0xff] }
 0x36c   : > { %5736 = vst [vmem:[#allocation54_spill] sm:$0xff] %v4897_v0  ;;  %v5000_v0 = vmul.f32 %v2772_v5, %v3733_v25  ;;  %v5018_v25 = vmul.f32 %v2779_v44, %v3755_v15  ;;  %v2776_v44 = vld [vmem:[%s5588_s3 + $0x4e8] sm:$0xff] }
 0x36d   : > { %5737 = vst [vmem:[#allocation55_spill] sm:$0xff] %v4899_v46  ;;  %v2780_v46 = vld [vmem:[%s5588_s3 + $0x508] sm:$0xff] }
 0x36e   : > { %v2074_v7 = vpop.permute.xlu1 %2073  ;;  %5746 = vst [vmem:[#allocation62_spill] sm:$0xff] %v5018_v25 }
 0x36f   : > { %v2077_v14 = vsel %vm5738_vm10, %v4808_v35, %v2074_v7  ;;  %v2083_v45 = vsel %vm5739_vm11, %v2074_v7, %v2062_v9  ;;  %v4920_v32 = vpop.permute.xlu2 %2159  ;;  %v4922_v28 = vpop.permute.xlu0 %2116 }
 0x370   : > { %v2096_v42 = vmul.f32 %v2733_v39, %v2077_v14  ;;  %v2097_v40 = vmul.f32 %v2734_v49, %v2083_v45  ;;  %v2796_v39 = vld [vmem:[%s5588_s3 + $0x588] sm:$0xff]  ;;  %v2787_v49 = vld [vmem:[%s5588_s3 + $0x540] sm:$0xff] }
 0x371   : > { %v2795_v14 = vld [vmem:[%s5588_s3 + $0x580] sm:$0xff]  ;;  %v5024_v5 = vmul.f32 %v2796_v39, %v3783_v12  ;;  %v5036_v15 = vmul.f32 %v2787_v49, %v3803_v22  ;;  %v5042_v12 = vmul.f32 %v2765_v50, %v3810_v27  ;;  %v2777_v22 = vld [vmem:[%s5588_s3 + $0x4f0] sm:$0xff]  ;;  %v2802_v49 = vld [vmem:[%s5588_s3 + $0x5b8] sm:$0xff] }
 0x372   : > { %v4926_v11 = vadd.f32 %v2096_v42, %v2055_v48  ;;  %v4928_v33 = vadd.f32 %v2097_v40, %v2056_v19  ;;  %v2767_v45 = vld [vmem:[%s5588_s3 + $0x4a0] sm:$0xff]  ;;  %v2782_v48 = vld [vmem:[%s5588_s3 + $0x518] sm:$0xff]  ;;  %v2773_v40 = vld [vmem:[%s5588_s3 + $0x4d0] sm:$0xff]  ;;  %v5045_v54 = vmul.f32 %v2795_v14, %v3832_v37 }
 0x373   : > { %5747 = vst [vmem:[#allocation63_spill] sm:$0xff] %v5036_v15  ;;  %v5060_v27 = vmul.f32 %v2782_v48, %v3845_v34  ;;  %v5063_v37 = vmul.f32 %v2773_v40, %v3873_v55  ;;  %v2799_v39 = vld [vmem:[%s5588_s3 + $0x5a0] sm:$0xff]  ;;  %v5081_v55 = vmul.f32 %v2780_v46, %v3924_v8  ;;  %v2769_v50 = vld [vmem:[%s5588_s3 + $0x4b0] sm:$0xff]  ;;  %v5131_v48 = vmul.f32 %v2802_v49, %v4056_v23  ;;  %v2740_v49 = vld [vmem:[%s5588_s3 + $0x3c8] sm:$0xff] }
 0x374   : > { %5740 = vst [vmem:[#allocation56_spill] sm:$0xff] %v4926_v11  ;;  %v2774_v11 = vld [vmem:[%s5588_s3 + $0x4d8] sm:$0xff]  ;;  %v2803_v40 = vld [vmem:[%s5588_s3 + $0x5c0] sm:$0xff] }
 0x375   : > { %5741 = vst [vmem:[#allocation57_spill] sm:$0xff] %v4928_v33  ;;  %v2788_v33 = vld [vmem:[%s5588_s3 + $0x548] sm:$0xff]  ;;  %v5760_v14 = vld [vmem:[#allocation11_spill] sm:$0xff]  ;;  %v5764_v23 = vld [vmem:[#allocation14_spill] sm:$0xff] }
 0x376   : > { %v4930_v1 = vpop.permute.xlu1 %2112  ;;  %5748 = vst [vmem:[#allocation64_spill] sm:$0xff] %v5042_v12  ;;  %v5078_v34 = vmul.f32 %v2788_v33, %v3895_v10  ;;  %v2800_v10 = vld [vmem:[%s5588_s3 + $0x5a8] sm:$0xff] }
 0x377   : > { %v4932_v35 = vpop.permute.xlu2 %2165  ;;  %v4934_v4 = vpop.permute.xlu0 %2122  ;;  %5749 = vst [vmem:[#allocation65_spill] sm:$0xff] %v5045_v54 }
 0x378   : > { %5742 = vst [vmem:[#allocation58_spill] sm:$0xff] %v4932_v35  ;;  %v2791_v35 = vld [vmem:[%s5588_s3 + $0x560] sm:$0xff] }
 0x379   : > { %5743 = vst [vmem:[#allocation59_spill] sm:$0xff] %v4934_v4  ;;  %v2775_v4 = vld [vmem:[%s5588_s3 + $0x4e0] sm:$0xff] }
 0x37a   : > { %5751 = vst [vmem:[#allocation67_spill] sm:$0xff] %v5060_v27 }
 0x37b   : > { %5752 = vst [vmem:[#allocation68_spill] sm:$0xff] %v5063_v37 }
 0x37e   : > { %v4936_v9 = vpop.permute.xlu1 %2118 }
 0x37f   : > { %v4938_v29 = vpop.permute.xlu2 %2171  ;;  %v4940_v30 = vpop.permute.xlu0 %2161 }
 0x380   : > { %5744 = vst [vmem:[#allocation60_spill] sm:$0xff] %v4938_v29  ;;  %v4997_v29 = vmul.f32 %v2766_v18, %v3728_v57  ;;  %v5015_v57 = vmul.f32 %v2763_v47, %v3745_v61  ;;  %v5021_v18 = vmul.f32 %v2771_v24, %v3776_v53  ;;  %v2783_v61 = vld [vmem:[%s5588_s3 + $0x520] sm:$0xff]  ;;  %v5039_v53 = vmul.f32 %v2764_v2, %v3814_v6  ;;  %v2784_v47 = vld [vmem:[%s5588_s3 + $0x528] sm:$0xff] }
 0x381   : > { %v5057_v6 = vmul.f32 %v2767_v45, %v3841_v38  ;;  %v5066_v24 = vmul.f32 %v2774_v11, %v3877_v58  ;;  %v2794_v38 = vld [vmem:[%s5588_s3 + $0x578] sm:$0xff]  ;;  %v5084_v58 = vmul.f32 %v2791_v35, %v3965_v17  ;;  %v5087_v11 = vmul.f32 %v2775_v4, %v3992_v26  ;;  %v2768_v2 = vld [vmem:[%s5588_s3 + $0x4a8] sm:$0xff]  ;;  %v2801_v35 = vld [vmem:[%s5588_s3 + $0x5b0] sm:$0xff] }
 0x382   : > { %5745 = vst [vmem:[#allocation61_spill] sm:$0xff] %v4997_v29  ;;  %v2778_v29 = vld [vmem:[%s5588_s3 + $0x4f8] sm:$0xff]  ;;  %v5102_v17 = vmul.f32 %v2770_v52, %v4004_v51  ;;  %v5108_v33 = vmul.f32 %v2784_v47, %v4029_v36  ;;  %v2785_v4 = vld [vmem:[%s5588_s3 + $0x530] sm:$0xff]  ;;  %v5125_v36 = vmul.f32 %v2777_v22, %v4033_v60  ;;  %v5128_v45 = vmul.f32 %v2799_v39, %v5760_v14  ;;  %v2792_v52 = vld [vmem:[%s5588_s3 + $0x568] sm:$0xff] }
 0x383   : > { %5750 = vst [vmem:[#allocation66_spill] sm:$0xff] %v5057_v6  ;;  %v5099_v8 = vmul.f32 %v2778_v29, %v3999_v41  ;;  %v5756_v26 = vld [vmem:[#allocation10_spill] sm:$0xff]  ;;  %v5122_v29 = vmul.f32 %v2776_v44, %v4037_v21  ;;  %v5763_v47 = vld [vmem:[#allocation12_spill] sm:$0xff]  ;;  %v5150_v22 = vmul.f32 %v2768_v2, %v5764_v23  ;;  %v5768_v14 = vld [vmem:[#allocation13_spill] sm:$0xff] }
 0x384   : > { %5753 = vst [vmem:[#allocation69_spill] sm:$0xff] %v5066_v24  ;;  %v5105_v46 = vmul.f32 %v2783_v61, %v5756_v26  ;;  %v2786_v41 = vld [vmem:[%s5588_s3 + $0x538] sm:$0xff]  ;;  %v2793_v21 = vld [vmem:[%s5588_s3 + $0x570] sm:$0xff]  ;;  %v5147_v44 = vmul.f32 %v2794_v38, %v5763_v47  ;;  %v2804_v39 = vld [vmem:[%s5588_s3 + $0x5c8] sm:$0xff]  ;;  %v2128_v26 = vsel %vm5766_vm12, %v4865_v62, %v4936_v9  ;;  %v5170_v47 = vmul.f32 %v2769_v50, %v5768_v14 }
 0x385   : > { %5754 = vst [vmem:[#allocation70_spill] sm:$0xff] %v5084_v58  ;;  %v2746_v38 = vld [vmem:[%s5588_s3 + $0x3f8] sm:$0xff]  ;;  %v5769_v23 = vld [vmem:[#allocation16_spill] sm:$0xff]  ;;  %v2809_v58 = vld [vmem:[%s5588_s3 + $0x5f0] sm:$0xff]  ;;  %v2144_v6 = vmul.f32 %v2740_v49, %v2128_v26 }
 0x386   : > { %v4972_v7 = vpop.permute.xlu1 %2124  ;;  %5755 = vst [vmem:[#allocation71_spill] sm:$0xff] %v5087_v11  ;;  %v5173_v27 = vmul.f32 %v2800_v10, %v5769_v23  ;;  %v5771_v24 = vld [vmem:[#allocation15_spill] sm:$0xff]  ;;  %v5775_v10 = vld [vmem:[#allocation18_spill] sm:$0xff]  ;;  %v5788_v26 = vld [vmem:[#allocation33_spill] sm:$0xff] }
 0x387   : > { %v4983_v19 = vpop.permute.xlu2 %2210  ;;  %v4985_v42 = vpop.permute.xlu0 %2167  ;;  %5757 = vst [vmem:[#allocation10_spill] sm:$0xff] %v5105_v46  ;;  %v2133_v2 = vsel %vm5767_vm13, %v4972_v7, %v4930_v1  ;;  %v5176_v37 = vmul.f32 %v2801_v35, %v5771_v24  ;;  %v2810_v46 = vld [vmem:[%s5588_s3 + $0x5f8] sm:$0xff]  ;;  %v2811_v50 = vld [vmem:[%s5588_s3 + $0x600] sm:$0xff]  ;;  %v5191_v14 = vmul.f32 %v2786_v41, %v5775_v10  ;;  %v5778_v10 = vld [vmem:[#allocation21_spill] sm:$0xff] }
 0x388   : > { %5758 = vst [vmem:[#allocation72_spill] sm:$0xff] %v5108_v33  ;;  %v5776_v24 = vld [vmem:[#allocation19_spill] sm:$0xff] }
 0x389   : > { %5759 = vst [vmem:[#allocation73_spill] sm:$0xff] %v5122_v29  ;;  %v5194_v35 = vmul.f32 %v2803_v40, %v5776_v24  ;;  %v2754_v41 = vld [vmem:[%s5588_s3 + $0x438] sm:$0xff]  ;;  %v5214_v24 = vmul.f32 %v2792_v52, %v5778_v10  ;;  %v2817_v29 = vld [vmem:[%s5588_s3 + $0x630] sm:$0xff]  ;;  %v2739_v49 = vld [vmem:[%s5588_s3 + $0x3c0] sm:$0xff] }
 0x38a   : > { %5761 = vst [vmem:[#allocation11_spill] sm:$0xff] %v5128_v45  ;;  %v5773_v45 = vld [vmem:[#allocation17_spill] sm:$0xff]  ;;  %v2818_v11 = vld [vmem:[%s5588_s3 + $0x638] sm:$0xff] }
 0x38b   : > { %5765 = vst [vmem:[#allocation12_spill] sm:$0xff] %v5150_v22  ;;  %v5179_v12 = vmul.f32 %v2785_v4, %v5773_v45  ;;  %v2812_v4 = vld [vmem:[%s5588_s3 + $0x608] sm:$0xff]  ;;  %v5782_v22 = vld [vmem:[#allocation26_spill] sm:$0xff] }
 0x38c   : > { %5770 = vst [vmem:[#allocation14_spill] sm:$0xff] %v5173_v27  ;;  %v2748_v45 = vld [vmem:[%s5588_s3 + $0x408] sm:$0xff]  ;;  %v5229_v52 = vmul.f32 %v2804_v39, %v5782_v22  ;;  %v2130_v22 = vsel %vm5786_vm2, %v4894_v43, %v4865_v62 }
 0x38d   : > { %5772 = vst [vmem:[#allocation13_spill] sm:$0xff] %v5176_v37  ;;  %v5780_v27 = vld [vmem:[#allocation20_spill] sm:$0xff]  ;;  %v2150_v37 = vmul.f32 %v2746_v38, %v2133_v2  ;;  %v5783_v10 = vld [vmem:[#allocation29_spill] sm:$0xff]  ;;  %v5252_v38 = vmul.f32 %v2811_v50, %v5788_v26  ;;  %v2129_v26 = vsel %vm5798_vm6, %v4922_v28, %v4892_v59 }
 0x38e   : > { %v5119_v51 = vpop.permute.xlu1 %2163  ;;  %5774 = vst [vmem:[#allocation16_spill] sm:$0xff] %v5179_v12  ;;  %v5217_v33 = vmul.f32 %v2793_v21, %v5780_v27  ;;  %v5232_v27 = vmul.f32 %v2809_v58, %v5783_v10  ;;  %v2737_v21 = vld [vmem:[%s5588_s3 + $0x3b0] sm:$0xff]  ;;  %v2756_v50 = vld [vmem:[%s5588_s3 + $0x448] sm:$0xff] }
 0x38f   : > { %v5142_v60 = vpop.permute.xlu2 %2216  ;;  %v5144_v61 = vpop.permute.xlu0 %2173  ;;  %5777 = vst [vmem:[#allocation15_spill] sm:$0xff] %v5194_v35  ;;  %v2177_v23 = vsel %vm926_vm15, %v5119_v51, %v4985_v42  ;;  %v2826_v35 = vld [vmem:[%s5588_s3 + $0x678] sm:$0xff]  ;;  %v5794_v12 = vld [vmem:[#allocation37_spill] sm:$0xff] }
 0x390   : > { %5762 = vst [vmem:[#allocation74_spill] sm:$0xff] %v5142_v60  ;;  %v2182_v40 = vsel %vm926_vm15, %v5144_v61, %v4940_v30  ;;  %v5787_v58 = vld [vmem:[#allocation30_spill] sm:$0xff]  ;;  %v2193_v2 = vmul.f32 %v2748_v45, %v2177_v23  ;;  %v5264_v25 = vmul.f32 %v2826_v35, %v5794_v12  ;;  %v2143_v45 = vmul.f32 %v2739_v49, %v2130_v22 }
 0x391   : > { %5779 = vst [vmem:[#allocation17_spill] sm:$0xff] %v5214_v24  ;;  %v2078_v24 = vsel %vm5785_vm1, %v4867_v56, %v4835_v3  ;;  %v5249_v39 = vmul.f32 %v2810_v46, %v5787_v58  ;;  %v2199_v10 = vmul.f32 %v2754_v41, %v2182_v40  ;;  %v5791_v3 = vld [vmem:[#allocation34_spill] sm:$0xff]  ;;  %v2158_v12 = vadd.f32 %v2150_v37, %v4860_v16  ;;  %v2747_v37 = vld [vmem:[%s5588_s3 + $0x400] sm:$0xff] }
 0x392   : > { %5781 = vst [vmem:[#allocation18_spill] sm:$0xff] %v5217_v33  ;;  %v5258_v56 = vmul.f32 %v2818_v11, %v5791_v3  ;;  %v5792_v33 = vld [vmem:[#allocation35_spill] sm:$0xff]  ;;  %v2820_v11 = vld [vmem:[%s5588_s3 + $0x648] sm:$0xff]  ;;  %v2745_v23 = vld [vmem:[%s5588_s3 + $0x3f0] sm:$0xff]  ;;  %v2127_v41 = vsel %vm5795_vm4, %v4892_v59, %v4972_v7  ;;  %v2179_v40 = vsel %vm926_vm15, %v4920_v32, %v5119_v51  ;;  %v2059_v58 = vadd.f32 %v5012_v31, %v4849_v20 }
 0x393   : > { %5784 = vst [vmem:[#allocation19_spill] sm:$0xff] %v5232_v27  ;;  %v5790_v27 = vld [vmem:[#allocation32_spill] sm:$0xff]  ;;  %v5261_v15 = vmul.f32 %v2817_v29, %v5792_v33  ;;  %v2762_v46 = vld [vmem:[%s5588_s3 + $0x478] sm:$0xff]  ;;  %v2152_v33 = vadd.f32 %v2144_v6, %v4852_v63  ;;  %v2753_v3 = vld [vmem:[%s5588_s3 + $0x430] sm:$0xff]  ;;  %v2131_v31 = vsel %vm5799_vm7, %v4930_v1, %v4922_v28  ;;  %v2149_v59 = vmul.f32 %v2745_v23, %v2127_v41 }
 0x394   : > { %5789 = vst [vmem:[#allocation21_spill] sm:$0xff] %v5252_v38  ;;  %v5255_v54 = vmul.f32 %v2812_v4, %v5790_v27  ;;  %v2100_v4 = vmul.f32 %v2737_v21, %v2078_v24  ;;  %v2819_v6 = vld [vmem:[%s5588_s3 + $0x640] sm:$0xff]  ;;  %v2828_v7 = vld [vmem:[%s5588_s3 + $0x688] sm:$0xff]  ;;  %v2207_v24 = vadd.f32 %v2199_v10, %v2158_v12  ;;  %v5796_v49 = vld [vmem:[#allocation38_spill] sm:$0xff] }
 0x395   : > { %5793 = vst [vmem:[#allocation20_spill] sm:$0xff] %v5261_v15  ;;  %v2201_v51 = vadd.f32 %v2193_v2, %v2152_v33  ;;  %v5304_v22 = vmul.f32 %v2820_v11, %v5796_v49  ;;  %v2744_v10 = vld [vmem:[%s5588_s3 + $0x3e8] sm:$0xff]  ;;  %v2743_v20 = vld [vmem:[%s5588_s3 + $0x3e0] sm:$0xff] }
 0x396   : > { %v2170_v62 = vpop.permute.xlu1 %2169  ;;  %v5800_v11 = vld [vmem:[#allocation39_spill] sm:$0xff]  ;;  %v5802_v49 = vld [vmem:[#allocation53_spill] sm:$0xff]  ;;  %v2148_v1 = vmul.f32 %v2744_v10, %v2129_v26  ;;  %v2147_v23 = vmul.f32 %v2743_v20, %v2131_v31 }
 0x397   : > { %v2223_v29 = vpop.permute.xlu2 %2222  ;;  %v2213_v35 = vpop.permute.xlu0 %2212  ;;  %5797 = vst [vmem:[#allocation26_spill] sm:$0xff] %v5304_v22  ;;  %v2176_v2 = vsel %vm926_vm15, %v2170_v62, %v5144_v61  ;;  %v5329_v33 = vmul.f32 %v2819_v6, %v5800_v11  ;;  %v5801_v61 = vld [vmem:[#allocation50_spill] sm:$0xff]  ;;  %v2151_v15 = vadd.f32 %v2143_v45, %v5802_v49  ;;  %v2755_v28 = vld [vmem:[%s5588_s3 + $0x440] sm:$0xff] }
 0x398   : > { %v2231_v63 = vsel %vm968_vm14, %v2223_v29, %v4983_v19  ;;  %v2226_v16 = vsel %vm968_vm14, %v2213_v35, %v5142_v60  ;;  %v5332_v12 = vmul.f32 %v2828_v7, %v5801_v61  ;;  %v2198_v38 = vmul.f32 %v2753_v3, %v2176_v2  ;;  %v5803_v41 = vld [vmem:[#allocation59_spill] sm:$0xff]  ;;  %v5806_v3 = vld [vmem:[#allocation52_spill] sm:$0xff] }
 0x399   : > { %v2248_v27 = vmul.f32 %v2762_v46, %v2231_v63  ;;  %v2242_v21 = vmul.f32 %v2756_v50, %v2226_v16  ;;  %v2108_v63 = vadd.f32 %v2100_v4, %v2059_v58  ;;  %v2192_v16 = vmul.f32 %v2747_v37, %v2179_v40  ;;  %v5805_v4 = vld [vmem:[#allocation58_spill] sm:$0xff]  ;;  %v2751_v7 = vld [vmem:[%s5588_s3 + $0x420] sm:$0xff] }
 0x39a   : > { %v2132_v6 = vsel %vm5804_vm8, %v5803_v41, %v4894_v43  ;;  %v2180_v45 = vsel %vm926_vm15, %v4940_v30, %v5805_v4  ;;  %v2126_v2 = vsel %vm5807_vm9, %v4936_v9, %v5803_v41  ;;  %v5808_v31 = vld [vmem:[#allocation55_spill] sm:$0xff] }
 0x39b   : > { %v2256_v46 = vadd.f32 %v2248_v27, %v2207_v24  ;;  %v2250_v50 = vadd.f32 %v2242_v21, %v2201_v51  ;;  %v2157_v43 = vadd.f32 %v2149_v59, %v2108_v63  ;;  %v2200_v27 = vadd.f32 %v2192_v16, %v2151_v15  ;;  %v2750_v41 = vld [vmem:[%s5588_s3 + $0x418] sm:$0xff] }
 0x39c   : > { %v2178_v21 = vsel %vm926_vm15, %v5805_v4, %v2170_v62  ;;  %v2196_v10 = vmul.f32 %v2751_v7, %v2180_v45  ;;  %v5831_v13 = vld [vmem:[#allocation20_spill] sm:$0xff] }
 0x39d   : > { %v2281_v60 = vadd.f32 %v5102_v17, %v2256_v46  ;;  %v2275_v22 = vadd.f32 %v5039_v53, %v2250_v50  ;;  %v2761_v53 = vld [vmem:[%s5588_s3 + $0x470] sm:$0xff]  ;;  %v2834_v17 = vld [vmem:[%s5588_s3 + $0x6b8] sm:$0xff] }
 0x39e   : > { %v5348_v40 = vpop.permute.xlu1 %2208  ;;  %v2473_v62 = vmul.f32 %v2834_v17, %v5806_v3  ;;  %v5809_v46 = vld [vmem:[#allocation54_spill] sm:$0xff] }
 0x39f   : > { %v2306_v37 = vadd.f32 %v5099_v8, %v2281_v60  ;;  %v2300_v51 = vadd.f32 %v5000_v0, %v2275_v22  ;;  %v2228_v30 = vsel %vm968_vm14, %v5348_v40, %v2213_v35  ;;  %v2219_v24 = vpop.permute.xlu0 %2218  ;;  %v2742_v8 = vld [vmem:[%s5588_s3 + $0x3d8] sm:$0xff]  ;;  %v2752_v0 = vld [vmem:[%s5588_s3 + $0x428] sm:$0xff]  ;;  %v2206_v60 = vadd.f32 %v2198_v38, %v2157_v43 }
 0x3a0   : > { %v2241_v58 = vmul.f32 %v2755_v28, %v2228_v30  ;;  %v2225_v26 = vsel %vm968_vm14, %v2219_v24, %v2223_v29  ;;  %v2741_v29 = vld [vmem:[%s5588_s3 + $0x3d0] sm:$0xff]  ;;  %v2156_v38 = vadd.f32 %v2148_v1, %v5808_v31  ;;  %v2155_v50 = vadd.f32 %v2147_v23, %v5809_v46  ;;  %v2758_v46 = vld [vmem:[%s5588_s3 + $0x458] sm:$0xff] }
 0x3a1   : > { %v2331_v35 = vadd.f32 %v5191_v14, %v2306_v37  ;;  %v2325_v15 = vadd.f32 %v5081_v55, %v2300_v51  ;;  %v2247_v22 = vmul.f32 %v2761_v53, %v2225_v26  ;;  %v2146_v11 = vmul.f32 %v2742_v8, %v2132_v6  ;;  %v5811_v53 = vld [vmem:[#allocation62_spill] sm:$0xff]  ;;  %v5820_v31 = vld [vmem:[#allocation13_spill] sm:$0xff] }
 0x3a2   : > { %v2249_v20 = vadd.f32 %v2241_v58, %v2200_v27  ;;  %v2197_v61 = vmul.f32 %v2752_v0, %v2178_v21  ;;  %v2145_v16 = vmul.f32 %v2741_v29, %v2126_v2  ;;  %v2204_v23 = vadd.f32 %v2196_v10, %v2155_v50  ;;  %v5813_v21 = vld [vmem:[#allocation63_spill] sm:$0xff]  ;;  %v5814_v8 = vld [vmem:[#allocation18_spill] sm:$0xff]  ;;  %v5819_v2 = vld [vmem:[#allocation12_spill] sm:$0xff] }
 0x3a3   : > { %v2356_v14 = vadd.f32 %v5147_v44, %v2331_v35  ;;  %v2350_v55 = vadd.f32 %v5078_v34, %v2325_v15  ;;  %v2255_v59 = vadd.f32 %v2247_v22, %v2206_v60  ;;  %v2760_v44 = vld [vmem:[%s5588_s3 + $0x468] sm:$0xff]  ;;  %v5815_v35 = vld [vmem:[#allocation26_spill] sm:$0xff]  ;;  %v2827_v50 = vld [vmem:[%s5588_s3 + $0x680] sm:$0xff] }
 0x3a4   : > { %v2274_v63 = vadd.f32 %v5015_v57, %v2249_v20  ;;  %v5810_v34 = vld [vmem:[#allocation60_spill] sm:$0xff]  ;;  %v2205_v45 = vadd.f32 %v2197_v61, %v2156_v38  ;;  %v5816_v15 = vld [vmem:[#allocation57_spill] sm:$0xff] }
 0x3a5   : > { %v2381_v49 = vadd.f32 %v5131_v48, %v2356_v14  ;;  %v2375_v9 = vadd.f32 %v5024_v5, %v2350_v55  ;;  %v2280_v28 = vadd.f32 %v5170_v47, %v2255_v59  ;;  %v2181_v1 = vsel %vm926_vm15, %v5810_v34, %v4920_v32  ;;  %v2759_v5 = vld [vmem:[%s5588_s3 + $0x460] sm:$0xff]  ;;  %v2749_v32 = vld [vmem:[%s5588_s3 + $0x410] sm:$0xff] }
 0x3a6   : > { %v2175_v57 = vsel %vm926_vm15, %v4985_v42, %v5810_v34  ;;  %v2299_v48 = vadd.f32 %v5021_v18, %v2274_v63  ;;  %v2215_v47 = vpop.permute.xlu1 %2214  ;;  %v2195_v27 = vmul.f32 %v2750_v41, %v2181_v1  ;;  %v2154_v22 = vadd.f32 %v2146_v11, %v5816_v15  ;;  %v5821_v14 = vld [vmem:[#allocation66_spill] sm:$0xff]  ;;  %v5825_v34 = vld [vmem:[#allocation71_spill] sm:$0xff]  ;;  %v5827_v41 = vld [vmem:[#allocation21_spill] sm:$0xff] }
 0x3a7   : > { %v2406_v6 = vadd.f32 %v5249_v39, %v2381_v49  ;;  %v2400_v4 = vadd.f32 %v5229_v52, %v2375_v9  ;;  %v2305_v42 = vadd.f32 %v5125_v36, %v2280_v28  ;;  %v2227_v18 = vsel %vm968_vm14, %v2215_v47, %v2219_v24  ;;  %v5812_v39 = vld [vmem:[#allocation16_spill] sm:$0xff]  ;;  %v2757_v59 = vld [vmem:[%s5588_s3 + $0x450] sm:$0xff]  ;;  %v5824_v28 = vld [vmem:[#allocation19_spill] sm:$0xff] }
 0x3a8   : > { %v2324_v17 = vadd.f32 %v5811_v53, %v2299_v48  ;;  %v2229_v7 = vsel %vm968_vm14, %v4983_v19, %v2215_v47  ;;  %v2246_v43 = vmul.f32 %v2760_v44, %v2227_v18  ;;  %v2194_v36 = vmul.f32 %v2749_v32, %v2175_v57  ;;  %v2833_v47 = vld [vmem:[%s5588_s3 + $0x6b0] sm:$0xff]  ;;  %v2790_v15 = vld [vmem:[%s5588_s3 + $0x558] sm:$0xff] }
 0x3a9   : > { %v2431_v37 = vadd.f32 %v5258_v56, %v2406_v6  ;;  %v2425_v51 = vadd.f32 %v5255_v54, %v2400_v4  ;;  %v2330_v30 = vadd.f32 %v5812_v39, %v2305_v42  ;;  %v2245_v52 = vmul.f32 %v2759_v5, %v2229_v7  ;;  %v5817_v56 = vld [vmem:[#allocation56_spill] sm:$0xff]  ;;  %v5818_v54 = vld [vmem:[#allocation65_spill] sm:$0xff] }
 0x3aa   : > { %v2349_v58 = vadd.f32 %v5813_v21, %v2324_v17  ;;  %v2254_v24 = vadd.f32 %v2246_v43, %v2205_v45  ;;  %v2153_v3 = vadd.f32 %v2145_v16, %v5817_v56  ;;  %v2203_v11 = vadd.f32 %v2195_v27, %v2154_v22  ;;  %v5823_v16 = vld [vmem:[#allocation73_spill] sm:$0xff]  ;;  %v5828_v6 = vld [vmem:[#allocation72_spill] sm:$0xff]  ;;  %v5830_v17 = vld [vmem:[#allocation43_spill] sm:$0xff] }
 0x3ab   : > { %v2456_v26 = vadd.f32 %v5264_v25, %v2431_v37  ;;  %v2355_v0 = vadd.f32 %v5814_v8, %v2330_v30  ;;  %v2253_v60 = vadd.f32 %v2245_v52, %v2204_v23  ;;  %v2450_v19 = vadd.f32 %v5815_v35, %v2425_v51  ;;  %v5826_v23 = vld [vmem:[#allocation74_spill] sm:$0xff]  ;;  %v2808_v5 = vld [vmem:[%s5588_s3 + $0x5e8] sm:$0xff]  ;;  %v2807_v39 = vld [vmem:[%s5588_s3 + $0x5e0] sm:$0xff] }
 0x3ac   : > { %v2374_v29 = vadd.f32 %v5818_v54, %v2349_v58  ;;  %v2279_v10 = vadd.f32 %v5819_v2, %v2254_v24  ;;  %v2202_v61 = vadd.f32 %v2194_v36, %v2153_v3  ;;  %v5829_v45 = vld [vmem:[#allocation40_spill] sm:$0xff]  ;;  %v2466_v7 = vmul.f32 %v2827_v50, %v5830_v17  ;;  %v5832_v43 = vld [vmem:[#allocation10_spill] sm:$0xff]  ;;  %v5833_v30 = vld [vmem:[#allocation17_spill] sm:$0xff] }
 0x3ad   : > { %v5434_v20 = vadd.f32 %v2473_v62, %v2456_v26  ;;  %v2380_v38 = vadd.f32 %v5820_v31, %v2355_v0  ;;  %v2278_v55 = vadd.f32 %v5821_v14, %v2253_v60  ;;  %v5439_v25 = vadd.f32 %v5332_v12, %v2450_v19  ;;  %v2825_v62 = vld [vmem:[%s5588_s3 + $0x670] sm:$0xff]  ;;  %v5822_v12 = vld [vmem:[#allocation15_spill] sm:$0xff]  ;;  %v2816_v26 = vld [vmem:[%s5588_s3 + $0x628] sm:$0xff] }
 0x3ae   : > { %v2399_v63 = vadd.f32 %v5822_v12, %v2374_v29  ;;  %v2304_v49 = vadd.f32 %v5823_v16, %v2279_v10  ;;  %v2221_v9 = vpop.permute.xlu1 %2220  ;;  %v2447_v53 = vmul.f32 %v2825_v62, %v5829_v45  ;;  %v2781_v51 = vld [vmem:[%s5588_s3 + $0x510] sm:$0xff]  ;;  %v5835_v8 = vld [vmem:[#allocation51_spill] sm:$0xff]  ;;  %v5838_v29 = vld [vmem:[#allocation64_spill] sm:$0xff] }
 0x3af   : > { %v2405_v44 = vadd.f32 %v5824_v28, %v2380_v38  ;;  %v2303_v1 = vadd.f32 %v5825_v34, %v2278_v55  ;;  %v2224_v57 = vsel %vm968_vm14, %v5826_v23, %v2221_v9  ;;  %v2230_v48 = vsel %vm968_vm14, %v2221_v9, %v5348_v40  ;;  %v5834_v58 = vld [vmem:[#allocation22_spill] sm:$0xff]  ;;  %v2815_v22 = vld [vmem:[%s5588_s3 + $0x620] sm:$0xff]  ;;  %v5839_v10 = vld [vmem:[#allocation61_spill] sm:$0xff] }
 0x3b0   : > { %v2424_v32 = vadd.f32 %v5827_v41, %v2399_v63  ;;  %v2329_v4 = vadd.f32 %v5828_v6, %v2304_v49  ;;  %v2243_v42 = vmul.f32 %v2757_v59, %v2224_v57  ;;  %v2244_v18 = vmul.f32 %v2758_v46, %v2230_v48  ;;  %v5836_v35 = vld [vmem:[#allocation70_spill] sm:$0xff]  ;;  %v5840_v38 = vld [vmem:[#allocation7_spill] sm:$0xff]  ;;  %v2824_v46 = vld [vmem:[%s5588_s3 + $0x668] sm:$0xff] }
 0x3b1   : > { %v2430_v40 = vadd.f32 %v5831_v13, %v2405_v44  ;;  %v2328_v37 = vadd.f32 %v5832_v43, %v2303_v1  ;;  %v2396_v24 = vmul.f32 %v2808_v5, %v5834_v58  ;;  %v2472_v0 = vmul.f32 %v2833_v47, %v5835_v8  ;;  %v5837_v56 = vld [vmem:[#allocation14_spill] sm:$0xff]  ;;  %v5841_v55 = vld [vmem:[#allocation23_spill] sm:$0xff]  ;;  %v5843_v63 = vld [vmem:[#allocation36_spill] sm:$0xff] }
 0x3b2   : > { %v2354_v52 = vadd.f32 %v5833_v30, %v2329_v4  ;;  %v2449_v27 = vadd.f32 %v5329_v33, %v2424_v32  ;;  %v2251_v36 = vadd.f32 %v2243_v42, %v2202_v61  ;;  %v2252_v21 = vadd.f32 %v2244_v18, %v2203_v11  ;;  %v2789_v33 = vld [vmem:[%s5588_s3 + $0x550] sm:$0xff]  ;;  %v5842_v50 = vld [vmem:[#allocation11_spill] sm:$0xff]  ;;  %v5844_v28 = vld [vmem:[#allocation68_spill] sm:$0xff] }
 0x3b3   : > { %v2455_v60 = vadd.f32 %v2447_v53, %v2430_v40  ;;  %v2353_v19 = vadd.f32 %v5836_v35, %v2328_v37  ;;  %v2318_v14 = vmul.f32 %v2781_v51, %v5840_v38  ;;  %v2395_v59 = vmul.f32 %v2807_v39, %v5841_v55  ;;  %v2797_v61 = vld [vmem:[%s5588_s3 + $0x590] sm:$0xff]  ;;  %v2798_v12 = vld [vmem:[%s5588_s3 + $0x598] sm:$0xff]  ;;  %v2823_v49 = vld [vmem:[%s5588_s3 + $0x660] sm:$0xff] }
 0x3b4   : > { %v2379_v3 = vadd.f32 %v5837_v56, %v2354_v52  ;;  %v2474_v54 = vadd.f32 %v2466_v7, %v2449_v27  ;;  %v2276_v2 = vadd.f32 %v5838_v29, %v2251_v36  ;;  %v2277_v31 = vadd.f32 %v5839_v10, %v2252_v21  ;;  %v5845_v34 = vld [vmem:[#allocation69_spill] sm:$0xff]  ;;  %v5847_v48 = vld [vmem:[#allocation6_spill] sm:$0xff]  ;;  %v5848_v47 = vld [vmem:[#allocation28_spill] sm:$0xff] }
 0x3b5   : > { %v5506_v62 = vadd.f32 %v2472_v0, %v2455_v60  ;;  %v2378_v11 = vadd.f32 %v5842_v50, %v2353_v19  ;;  %v2421_v16 = vmul.f32 %v2816_v26, %v5843_v63  ;;  %v5846_v23 = vld [vmem:[#allocation5_spill] sm:$0xff]  ;;  %v2343_v5 = vmul.f32 %v2789_v33, %v5847_v48  ;;  %v2806_v4 = vld [vmem:[%s5588_s3 + $0x5d8] sm:$0xff]  ;;  %v2831_v45 = vld [vmem:[%s5588_s3 + $0x6a0] sm:$0xff] }
 0x3b6   : > { %v2404_v9 = vadd.f32 %v2396_v24, %v2379_v3  ;;  %v2301_v44 = vadd.f32 %v5844_v28, %v2276_v2  ;;  %v2302_v1 = vadd.f32 %v5845_v34, %v2277_v31  ;;  %v2344_v57 = vmul.f32 %v2790_v15, %v5846_v23  ;;  %v2832_v32 = vld [vmem:[%s5588_s3 + $0x6a8] sm:$0xff]  ;;  %v5850_v7 = vld [vmem:[#allocation67_spill] sm:$0xff]  ;;  %v2805_v39 = vld [vmem:[%s5588_s3 + $0x5d0] sm:$0xff] }
 0x3b7   : > { %v2420_v41 = vmul.f32 %v2815_v22, %v5848_v47  ;;  %v2403_v6 = vadd.f32 %v2395_v59, %v2378_v11  ;;  %v5849_v42 = vld [vmem:[#allocation41_spill] sm:$0xff]  ;;  %v5851_v40 = vld [vmem:[#allocation8_spill] sm:$0xff]  ;;  %v5853_v30 = vld [vmem:[#allocation42_spill] sm:$0xff]  ;;  %vm5865_vm14 = vcmask 1041408  }
 0x3b8   : > { %v2446_v18 = vmul.f32 %v2824_v46, %v5849_v42  ;;  %v2429_v53 = vadd.f32 %v2421_v16, %v2404_v9  ;;  %v2326_v17 = vadd.f32 %v2318_v14, %v2301_v44  ;;  %v2327_v13 = vadd.f32 %v5850_v7, %v2302_v1  ;;  %v5852_v37 = vld [vmem:[#allocation9_spill] sm:$0xff]  ;;  %v2814_v36 = vld [vmem:[%s5588_s3 + $0x618] sm:$0xff]  ;;  %v5855_v0 = vld [vmem:[#allocation24_spill] sm:$0xff] }
 0x3b9   : > { %v2368_v43 = vmul.f32 %v2797_v61, %v5851_v40  ;;  %v2369_v51 = vmul.f32 %v2798_v12, %v5852_v37  ;;  %v2445_v52 = vmul.f32 %v2823_v49, %v5853_v30  ;;  %v2428_v27 = vadd.f32 %v2420_v41, %v2403_v6  ;;  %v5854_v21 = vld [vmem:[#allocation46_spill] sm:$0xff]  ;;  %v5856_v19 = vld [vmem:[#allocation47_spill] sm:$0xff]  ;;  %v5857_v22 = vld [vmem:[#allocation25_spill] sm:$0xff]  ;;  %v2514_v40 = vpop.permute.xlu0 %2513 }
 0x3ba   : > { %v2471_v58 = vmul.f32 %v2832_v32, %v5854_v21  ;;  %v2454_v24 = vadd.f32 %v2446_v18, %v2429_v53  ;;  %v2351_v26 = vadd.f32 %v2343_v5, %v2326_v17  ;;  %v2352_v8 = vadd.f32 %v2344_v57, %v2327_v13  ;;  %v2813_v35 = vld [vmem:[%s5588_s3 + $0x610] sm:$0xff]  ;;  %v5858_v31 = vld [vmem:[#allocation27_spill] sm:$0xff]  ;;  %v5860_v63 = vld [vmem:[#allocation44_spill] sm:$0xff] }
 0x3bb   : > { %v2394_v60 = vmul.f32 %v2806_v4, %v5855_v0  ;;  %v2470_v15 = vmul.f32 %v2831_v45, %v5856_v19  ;;  %v2453_v33 = vadd.f32 %v2445_v52, %v2428_v27  ;;  %v2393_v56 = vmul.f32 %v2805_v39, %v5857_v22  ;;  %v2821_v3 = vld [vmem:[%s5588_s3 + $0x650] sm:$0xff]  ;;  %v2822_v14 = vld [vmem:[%s5588_s3 + $0x658] sm:$0xff]  ;;  %v5862_v57 = vld [vmem:[#allocation48_spill] sm:$0xff] }
 0x3bc   : > { %v2479_v29 = vadd.f32 %v2471_v58, %v2454_v24  ;;  %v2376_v2 = vadd.f32 %v2368_v43, %v2351_v26  ;;  %v2377_v10 = vadd.f32 %v2369_v51, %v2352_v8  ;;  %v2419_v38 = vmul.f32 %v2814_v36, %v5858_v31  ;;  %v5859_v59 = vld [vmem:[#allocation31_spill] sm:$0xff]  ;;  %v2829_v49 = vld [vmem:[%s5588_s3 + $0x690] sm:$0xff] }
 0x3bd   : > { %v2478_v55 = vadd.f32 %v2470_v15, %v2453_v33  ;;  %v2418_v46 = vmul.f32 %v2813_v35, %v5859_v59  ;;  %v2830_v50 = vld [vmem:[%s5588_s3 + $0x698] sm:$0xff]  ;;  %v2443_v16 = vmul.f32 %v2821_v3, %v5860_v63  ;;  %v5861_v28 = vld [vmem:[#allocation45_spill] sm:$0xff]  ;;  %v2516_v52 = vperm.slane %v2514_v40, 0 }
 0x3be   : > { %v2489_v11 = vadd.f32 %v2479_v29, %v5439_v25  ;;  %v2401_v61 = vadd.f32 %v2393_v56, %v2376_v2  ;;  %v2402_v12 = vadd.f32 %v2394_v60, %v2377_v10  ;;  %v2444_v44 = vmul.f32 %v2822_v14, %v5861_v28  ;;  %v5863_v47 = vld [vmem:[#allocation49_spill] sm:$0xff] }
 0x3bf   : > { %v2482_v9 = vadd.f32 %v2478_v55, %v2474_v54  ;;  %v2469_v48 = vmul.f32 %v2830_v50, %v5862_v57  ;;  %v2468_v41 = vmul.f32 %v2829_v49, %v5863_v47 }
 0x3c0   : > { %v2490_v34 = vrot.slane %v2489_v11, 4  ;;  %v2426_v1 = vadd.f32 %v2418_v46, %v2401_v61  ;;  %v2427_v23 = vadd.f32 %v2419_v38, %v2402_v12 }
 0x3c1   : > { %v2483_v5 = vrot.slane %v2482_v9, 4 }
 0x3c2   : > { %v2491_v25 = vadd.f32 %v2490_v34, %v2489_v11  ;;  %v2451_v32 = vadd.f32 %v2443_v16, %v2426_v1  ;;  %v2452_v6 = vadd.f32 %v2444_v44, %v2427_v23 }
 0x3c3   : > { %v2484_v4 = vadd.f32 %v2483_v5, %v2482_v9 }
 0x3c4   : > { %v2492_v42 = vrot.slane %v2491_v25, 2  ;;  %v2476_v18 = vadd.f32 %v2468_v41, %v2451_v32  ;;  %v2477_v45 = vadd.f32 %v2469_v48, %v2452_v6 }
 0x3c5   : > { %v2485_v53 = vrot.slane %v2484_v4, 2 }
 0x3c6   : > { %v2493_v17 = vadd.f32 %v2492_v42, %v2491_v25  ;;  %v2496_v54 = vadd.f32 %v5506_v62, %v2476_v18  ;;  %v2503_v7 = vadd.f32 %v5434_v20, %v2477_v45 }
 0x3c7   : > { %v2486_v13 = vadd.f32 %v2485_v53, %v2484_v4 }
 0x3c8   : > { %v2494_v43 = vrot.slane %v2493_v17, 1  ;;  %v2497_v37 = vrot.slane %v2496_v54, 4  ;;  %v2504_v51 = vrot.slane %v2503_v7, 4 }
 0x3c9   : > { %v2487_v39 = vrot.slane %v2486_v13, 1 }
 0x3ca   : > { %v2495_v30 = vadd.f32 %v2494_v43, %v2493_v17  ;;  %v2498_v27 = vadd.f32 %v2497_v37, %v2496_v54  ;;  %v2505_v36 = vadd.f32 %v2504_v51, %v2503_v7 }
 0x3cb   : > { %v2488_v21 = vadd.f32 %v2487_v39, %v2486_v13 }
 0x3cc   : > { %v2518_v58 = vadd.f32 %v2516_v52, %v2495_v30  ;;  %v2499_v24 = vrot.slane %v2498_v27, 2  ;;  %v2506_v26 = vrot.slane %v2505_v36, 2 }
 0x3cd   : > { %v2517_v8 = vadd.f32 %v2516_v52, %v2488_v21 }
 0x3ce   : > { %v2525_v0 = vrot.slane %v2518_v58, 7  ;;  %v2500_v62 = vadd.f32 %v2499_v24, %v2498_v27  ;;  %v2507_v60 = vadd.f32 %v2506_v26, %v2505_v36 }
 0x3d0   : > { %v2528_v20 = vsel %vm311_vm3, %v2517_v8, %v2525_v0  ;;  %v2501_v35 = vrot.slane %v2500_v62, 1  ;;  %v2508_v19 = vrot.slane %v2507_v60, 1 }
 0x3d2   : > { %v2502_v15 = vadd.f32 %v2501_v35, %v2500_v62  ;;  %v2509_v33 = vadd.f32 %v2508_v19, %v2507_v60 }
 0x3d4   : > { %v2519_v22 = vadd.f32 %v2516_v52, %v2502_v15  ;;  %v2520_v56 = vadd.f32 %v2516_v52, %v2509_v33 }
 0x3d6   : > { %v2526_v3 = vrot.slane %v2519_v22, 6  ;;  %v2527_v29 = vrot.slane %v2520_v56, 5 }
 0x3d8   : > { %v2529_v2 = vsel %vm313_vm0, %v2526_v3, %v2527_v29 }
 0x3d9   : > { %v2530_v10 = vsel %vm5865_vm14, %v2528_v20, %v2529_v2 }
 0x3da   : > { %2532 = vst.msk [vmem:[%s248_s9] sm:$0xf] %vm3105_vm5, %v2530_v10 }
 0x3db PF: > { %s18_s23 = sadd.s32 1, %s2889_s23  }
 0x3dc   : > { %p15_p4 = scmp.ge.s32.totalorder %s18_s23, 4  }
 0x3de   :  { %17 = sbr.rel (!%p15_p4) target bundleno = 3 (0x3), region = 152 }

</bundles_post_ra>
